<compile_context>
chip_gen: v5e
topology: v5e:2x2
jax: 0.10.0
libtpu: 0.0.40
codegen_flags: <defaults>
</compile_context>

<pallas_src>
import jax
import jax.numpy as jnp
from jax import lax
from jax.experimental import pallas as pl
from jax.experimental.pallas import tpu as pltpu


def _round_up(x: int, m: int) -> int:
    return (x + m - 1) // m * m


def lstm_encoder_kernel(ids_ref, emb_ref, wih_ref, whh_ref, b_ref,
                        h0_ref, c0_ref,
                        out_ref, hn_ref, cn_ref,
                        x_sc, xp_sc):
    S, Hp = out_ref.shape

    # ---- Phase 1: gather the S embedding rows into VMEM scratch (static S). ----
    for t in range(S):
        tok = ids_ref[t]                                   # scalar id from SMEM
        x_sc[pl.ds(t, 1), :] = emb_ref[pl.ds(tok, 1), :]   # (1, Ep) row copy

    # ---- Phase 2: hoisted input projection -- one (S,Ep)x(Ep,4Hp) GEMM + bias. ----
    xp_sc[...] = (jnp.dot(x_sc[...], wih_ref[...],
                          preferred_element_type=jnp.float32)
                  + b_ref[...])                            # (S, 4Hp)

    # ---- Phase 3: serial LSTM recurrence; h/c live in the fori_loop carry. ----
    def step(t, carry):
        h, c = carry                                       # (1, Hp) f32 each
        gates = (xp_sc[pl.ds(t, 1), :]
                 + jnp.dot(h.astype(whh_ref.dtype), whh_ref[...],
                           preferred_element_type=jnp.float32))   # (1, 4Hp)
        sig = jax.nn.sigmoid(gates)                        # one full-width EUP pass
        i_g = sig[:, 0:Hp]
        f_g = sig[:, Hp:2 * Hp]
        o_g = sig[:, 3 * Hp:4 * Hp]
        g_g = jnp.tanh(gates[:, 2 * Hp:3 * Hp])
        c_new = f_g * c + i_g * g_g
        h_new = o_g * jnp.tanh(c_new)
        out_ref[pl.ds(t, 1), :] = h_new                    # lane-dense, unmasked store
        return (h_new, c_new)

    h_fin, c_fin = lax.fori_loop(0, S, step, (h0_ref[...], c0_ref[...]),
                                 unroll=True)
    hn_ref[...] = h_fin
    cn_ref[...] = c_fin


def encoder_forward(inputs, h0, c0, params):
    """Mirrors Encoder.forward: returns (out, (h_n, c_n)) with PyTorch shapes."""
    emb_table, w_ih, w_hh, b_ih, b_hh = params
    S = int(inputs.shape[0])
    V, E = emb_table.shape
    H = int(h0.shape[-1])
    Hp = _round_up(H, 128)                   # lane-dense hidden width
    Ep = _round_up(E, 128)                   # lane-dense embedding width

    # --- one-time weight prep (XLA, outside kernel): pad to lane multiples,
    #     gate-blocked [i|f|g|o] column layout, transpose for right-matmul. ---
    emb_p = jnp.pad(emb_table.astype(jnp.float32), ((0, 0), (0, Ep - E)))

    wih4 = jnp.pad(w_ih.reshape(4, H, E).astype(jnp.float32),
                   ((0, 0), (0, Hp - H), (0, Ep - E)))             # (4, Hp, Ep)
    wih_t = wih4.reshape(4 * Hp, Ep).T                             # (Ep, 4Hp) f32

    whh4 = jnp.pad(w_hh.reshape(4, H, H).astype(jnp.float32),
                   ((0, 0), (0, Hp - H), (0, Hp - H)))             # (4, Hp, Hp)
    whh_t = whh4.reshape(4 * Hp, Hp).T.astype(jnp.bfloat16)        # (Hp, 4Hp) bf16

    bias = jnp.pad((b_ih + b_hh).reshape(4, H).astype(jnp.float32),
                   ((0, 0), (0, Hp - H))).reshape(1, 4 * Hp)       # (1, 4Hp)

    h0_p = jnp.pad(h0.reshape(1, H).astype(jnp.float32), ((0, 0), (0, Hp - H)))
    c0_p = jnp.pad(c0.reshape(1, H).astype(jnp.float32), ((0, 0), (0, Hp - H)))

    vmem = pl.BlockSpec(memory_space=pltpu.MemorySpace.VMEM)
    smem = pl.BlockSpec(memory_space=pltpu.MemorySpace.SMEM)

    # TODO(synk): for realistic vocab sizes keep the embedding table HBM-resident
    # (memory_space=pl.ANY) and DMA the S rows with pltpu.make_async_copy (v7x has
    # only 64 MiB VMEM); for a batch of sequences add a "parallel" grid axis.
    out_p, hn_p, cn_p = pl.pallas_call(
        lstm_encoder_kernel,
        out_shape=(jax.ShapeDtypeStruct((S, Hp), jnp.float32),
                   jax.ShapeDtypeStruct((1, Hp), jnp.float32),
                   jax.ShapeDtypeStruct((1, Hp), jnp.float32)),
        in_specs=[smem, vmem, vmem, vmem, vmem, vmem, vmem],
        out_specs=(vmem, vmem, vmem),
        scratch_shapes=[pltpu.VMEM((S, Ep), jnp.float32),          # gathered X
                        pltpu.VMEM((S, 4 * Hp), jnp.float32)],     # X @ Wih^T + b
    )(inputs.astype(jnp.int32), emb_p, wih_t, whh_t, bias, h0_p, c0_p)

    # PyTorch shapes: out (S, 1, H); h_n, c_n (1, 1, H) -- slice off lane padding.
    out = out_p[:, :H].reshape(S, 1, H)
    h_n = hn_p[:, :H].reshape(1, 1, H)
    c_n = cn_p[:, :H].reshape(1, 1, H)
    return out, (h_n, c_n)


def encoder_reference(inputs, h0, c0, params):
    """Pure-JAX (f32) reference of the PyTorch forward, for correctness checking."""
    emb_table, w_ih, w_hh, b_ih, b_hh = params
    H = h0.shape[-1]
    embed = jnp.take(emb_table, inputs, axis=0)       # (S, E)

    def cell(carry, x_t):
        h, c = carry
        gates = x_t @ w_ih.T + b_ih + h @ w_hh.T + b_hh
        i = jax.nn.sigmoid(gates[0:H])
        f = jax.nn.sigmoid(gates[H:2 * H])
        g = jnp.tanh(gates[2 * H:3 * H])
        o = jax.nn.sigmoid(gates[3 * H:4 * H])
        c_new = f * c + i * g
        h_new = o * jnp.tanh(c_new)
        return (h_new, c_new), h_new

    (h_n, c_n), outs = lax.scan(cell, (h0.reshape(H), c0.reshape(H)), embed)
    return outs.reshape(-1, 1, H), (h_n.reshape(1, 1, H), c_n.reshape(1, 1, H))


if __name__ == "__main__":
    # Small shapes consistent with the module.
    input_size = 16      # vocab
    embedding_size = 32
    hidden_size = 32
    seq_len = 8

    key = jax.random.PRNGKey(0)
    k_emb, k_wih, k_whh, k_bih, k_bhh, k_ids, k_h0, k_c0 = jax.random.split(key, 8)

    bound = 1.0 / jnp.sqrt(hidden_size)
    emb_table = jax.random.normal(k_emb, (input_size, embedding_size), jnp.float32)
    w_ih = jax.random.uniform(k_wih, (4 * hidden_size, embedding_size),
                              jnp.float32, -bound, bound)
    w_hh = jax.random.uniform(k_whh, (4 * hidden_size, hidden_size),
                              jnp.float32, -bound, bound)
    b_ih = jax.random.uniform(k_bih, (4 * hidden_size,), jnp.float32, -bound, bound)
    b_hh = jax.random.uniform(k_bhh, (4 * hidden_size,), jnp.float32, -bound, bound)
    params = (emb_table, w_ih, w_hh, b_ih, b_hh)

    inputs = jax.random.randint(k_ids, (seq_len,), 0, input_size, jnp.int32)
    h0 = jax.random.normal(k_h0, (1, 1, hidden_size), jnp.float32)
    c0 = jax.random.normal(k_c0, (1, 1, hidden_size), jnp.float32)

    out, (h_n, c_n) = encoder_forward(inputs, h0, c0, params)
    jax.block_until_ready((out, h_n, c_n))

    out_ref, (h_ref, c_ref) = encoder_reference(inputs, h0, c0, params)
    assert out.shape == (seq_len, 1, hidden_size)
    assert h_n.shape == (1, 1, hidden_size) and c_n.shape == (1, 1, hidden_size)
    # W_hh is kept in bf16 on the recurrent path -> loosen tolerance vs f32 reference.
    assert jnp.allclose(out, out_ref, atol=3e-2)
    assert jnp.allclose(h_n, h_ref, atol=3e-2)
    assert jnp.allclose(c_n, c_ref, atol=3e-2)

    print("KERNEL_OK")
</pallas_src>

<mosaic_0001>
module attributes {stable_mosaic.version = 11 : i64} {
  func.func @lstm_encoder_kernel(%arg0: memref<8xi32, #tpu.memory_space<smem>>, %arg1: memref<16x128xf32, #tpu.memory_space<vmem>>, %arg2: memref<128x512xf32, #tpu.memory_space<vmem>>, %arg3: memref<128x512xbf16, #tpu.memory_space<vmem>>, %arg4: memref<1x512xf32, #tpu.memory_space<vmem>>, %arg5: memref<1x128xf32, #tpu.memory_space<vmem>>, %arg6: memref<1x128xf32, #tpu.memory_space<vmem>>, %arg7: memref<8x128xf32, #tpu.memory_space<vmem>>, %arg8: memref<1x128xf32, #tpu.memory_space<vmem>>, %arg9: memref<1x128xf32, #tpu.memory_space<vmem>>, %arg10: memref<8x128xf32, #tpu.memory_space<vmem>>, %arg11: memref<8x512xf32, #tpu.memory_space<vmem>>) attributes {dimension_semantics = [], scalar_prefetch = 0 : i64, scratch_operands = 2 : i64, tpu.core_type = #tpu.core_type<tc>} {
    %c0 = arith.constant 0 : index
    %0 = memref.load %arg0[%c0] : memref<8xi32, #tpu.memory_space<smem>>
    %1 = arith.index_cast %0 : i32 to index
    %c0_0 = arith.constant 0 : index
    %2 = vector.load %arg1[%1, %c0_0] : memref<16x128xf32, #tpu.memory_space<vmem>>, vector<1x128xf32>
    %c0_1 = arith.constant 0 : index
    %c0_2 = arith.constant 0 : index
    %3 = vector.load %arg10[%c0_1, %c0_2] : memref<8x128xf32, #tpu.memory_space<vmem>>, vector<1x128xf32>
    tpu.vector_store %arg10[%c0_1, %c0_2], %2 {strides = array<i32>} : memref<8x128xf32, #tpu.memory_space<vmem>>, vector<1x128xf32>,
    %c1 = arith.constant 1 : index
    %4 = memref.load %arg0[%c1] : memref<8xi32, #tpu.memory_space<smem>>
    %5 = arith.index_cast %4 : i32 to index
    %c0_3 = arith.constant 0 : index
    %6 = vector.load %arg1[%5, %c0_3] : memref<16x128xf32, #tpu.memory_space<vmem>>, vector<1x128xf32>
    %c1_4 = arith.constant 1 : index
    %c0_5 = arith.constant 0 : index
    %7 = vector.load %arg10[%c1_4, %c0_5] : memref<8x128xf32, #tpu.memory_space<vmem>>, vector<1x128xf32>
    tpu.vector_store %arg10[%c1_4, %c0_5], %6 {strides = array<i32>} : memref<8x128xf32, #tpu.memory_space<vmem>>, vector<1x128xf32>,
    %c2 = arith.constant 2 : index
    %8 = memref.load %arg0[%c2] : memref<8xi32, #tpu.memory_space<smem>>
    %9 = arith.index_cast %8 : i32 to index
    %c0_6 = arith.constant 0 : index
    %10 = vector.load %arg1[%9, %c0_6] : memref<16x128xf32, #tpu.memory_space<vmem>>, vector<1x128xf32>
    %c2_7 = arith.constant 2 : index
    %c0_8 = arith.constant 0 : index
    %11 = vector.load %arg10[%c2_7, %c0_8] : memref<8x128xf32, #tpu.memory_space<vmem>>, vector<1x128xf32>
    tpu.vector_store %arg10[%c2_7, %c0_8], %10 {strides = array<i32>} : memref<8x128xf32, #tpu.memory_space<vmem>>, vector<1x128xf32>,
    %c3 = arith.constant 3 : index
    %12 = memref.load %arg0[%c3] : memref<8xi32, #tpu.memory_space<smem>>
    %13 = arith.index_cast %12 : i32 to index
    %c0_9 = arith.constant 0 : index
    %14 = vector.load %arg1[%13, %c0_9] : memref<16x128xf32, #tpu.memory_space<vmem>>, vector<1x128xf32>
    %c3_10 = arith.constant 3 : index
    %c0_11 = arith.constant 0 : index
    %15 = vector.load %arg10[%c3_10, %c0_11] : memref<8x128xf32, #tpu.memory_space<vmem>>, vector<1x128xf32>
    tpu.vector_store %arg10[%c3_10, %c0_11], %14 {strides = array<i32>} : memref<8x128xf32, #tpu.memory_space<vmem>>, vector<1x128xf32>,
    %c4 = arith.constant 4 : index
    %16 = memref.load %arg0[%c4] : memref<8xi32, #tpu.memory_space<smem>>
    %17 = arith.index_cast %16 : i32 to index
    %c0_12 = arith.constant 0 : index
    %18 = vector.load %arg1[%17, %c0_12] : memref<16x128xf32, #tpu.memory_space<vmem>>, vector<1x128xf32>
    %c4_13 = arith.constant 4 : index
    %c0_14 = arith.constant 0 : index
    %19 = vector.load %arg10[%c4_13, %c0_14] : memref<8x128xf32, #tpu.memory_space<vmem>>, vector<1x128xf32>
    tpu.vector_store %arg10[%c4_13, %c0_14], %18 {strides = array<i32>} : memref<8x128xf32, #tpu.memory_space<vmem>>, vector<1x128xf32>,
    %c5 = arith.constant 5 : index
    %20 = memref.load %arg0[%c5] : memref<8xi32, #tpu.memory_space<smem>>
    %21 = arith.index_cast %20 : i32 to index
    %c0_15 = arith.constant 0 : index
    %22 = vector.load %arg1[%21, %c0_15] : memref<16x128xf32, #tpu.memory_space<vmem>>, vector<1x128xf32>
    %c5_16 = arith.constant 5 : index
    %c0_17 = arith.constant 0 : index
    %23 = vector.load %arg10[%c5_16, %c0_17] : memref<8x128xf32, #tpu.memory_space<vmem>>, vector<1x128xf32>
    tpu.vector_store %arg10[%c5_16, %c0_17], %22 {strides = array<i32>} : memref<8x128xf32, #tpu.memory_space<vmem>>, vector<1x128xf32>,
    %c6 = arith.constant 6 : index
    %24 = memref.load %arg0[%c6] : memref<8xi32, #tpu.memory_space<smem>>
    %25 = arith.index_cast %24 : i32 to index
    %c0_18 = arith.constant 0 : index
    %26 = vector.load %arg1[%25, %c0_18] : memref<16x128xf32, #tpu.memory_space<vmem>>, vector<1x128xf32>
    %c6_19 = arith.constant 6 : index
    %c0_20 = arith.constant 0 : index
    %27 = vector.load %arg10[%c6_19, %c0_20] : memref<8x128xf32, #tpu.memory_space<vmem>>, vector<1x128xf32>
    tpu.vector_store %arg10[%c6_19, %c0_20], %26 {strides = array<i32>} : memref<8x128xf32, #tpu.memory_space<vmem>>, vector<1x128xf32>,
    %c7 = arith.constant 7 : index
    %28 = memref.load %arg0[%c7] : memref<8xi32, #tpu.memory_space<smem>>
    %29 = arith.index_cast %28 : i32 to index
    %c0_21 = arith.constant 0 : index
    %30 = vector.load %arg1[%29, %c0_21] : memref<16x128xf32, #tpu.memory_space<vmem>>, vector<1x128xf32>
    %c7_22 = arith.constant 7 : index
    %c0_23 = arith.constant 0 : index
    %31 = vector.load %arg10[%c7_22, %c0_23] : memref<8x128xf32, #tpu.memory_space<vmem>>, vector<1x128xf32>
    tpu.vector_store %arg10[%c7_22, %c0_23], %30 {strides = array<i32>} : memref<8x128xf32, #tpu.memory_space<vmem>>, vector<1x128xf32>,
    %c0_24 = arith.constant 0 : index
    %c0_25 = arith.constant 0 : index
    %32 = vector.load %arg10[%c0_24, %c0_25] : memref<8x128xf32, #tpu.memory_space<vmem>>, vector<8x128xf32>
    %c0_26 = arith.constant 0 : index
    %c0_27 = arith.constant 0 : index
    %33 = vector.load %arg2[%c0_26, %c0_27] : memref<128x512xf32, #tpu.memory_space<vmem>>, vector<128x512xf32>
    %cst = arith.constant dense<0.000000e+00> : vector<8x512xf32>
    %34 = tpu.matmul %32, %33, %cst {dimension_numbers = #tpu.dot_dimension_numbers<[1], [0], [0], [1], [0, 0, 1, 1], [], []>} : vector<8x128xf32>, vector<128x512xf32>, vector<8x512xf32> -> vector<8x512xf32>
    %c0_28 = arith.constant 0 : index
    %c0_29 = arith.constant 0 : index
    %35 = vector.load %arg4[%c0_28, %c0_29] : memref<1x512xf32, #tpu.memory_space<vmem>>, vector<1x512xf32>
    %36 = vector.broadcast %35 : vector<1x512xf32> to vector<8x512xf32>
    %37 = arith.addf %34, %36 : vector<8x512xf32>
    %c0_30 = arith.constant 0 : index
    %c0_31 = arith.constant 0 : index
    %38 = vector.load %arg11[%c0_30, %c0_31] : memref<8x512xf32, #tpu.memory_space<vmem>>, vector<8x512xf32>
    tpu.vector_store %arg11[%c0_30, %c0_31], %37 {strides = array<i32>} : memref<8x512xf32, #tpu.memory_space<vmem>>, vector<8x512xf32>,
    %c0_32 = arith.constant 0 : index
    %c0_33 = arith.constant 0 : index
    %39 = vector.load %arg5[%c0_32, %c0_33] : memref<1x128xf32, #tpu.memory_space<vmem>>, vector<1x128xf32>
    %c0_34 = arith.constant 0 : index
    %c0_35 = arith.constant 0 : index
    %40 = vector.load %arg6[%c0_34, %c0_35] : memref<1x128xf32, #tpu.memory_space<vmem>>, vector<1x128xf32>
    %c0_i32 = arith.constant 0 : i32
    %41 = arith.index_cast %c0_i32 : i32 to index
    %c0_36 = arith.constant 0 : index
    %42 = vector.load %arg11[%41, %c0_36] : memref<8x512xf32, #tpu.memory_space<vmem>>, vector<1x512xf32>
    %43 = arith.truncf %39 : vector<1x128xf32> to vector<1x128xbf16>
    %c0_37 = arith.constant 0 : index
    %c0_38 = arith.constant 0 : index
    %44 = vector.load %arg3[%c0_37, %c0_38] : memref<128x512xbf16, #tpu.memory_space<vmem>>, vector<128x512xbf16>
    %cst_39 = arith.constant dense<0.000000e+00> : vector<1x512xf32>
    %45 = tpu.matmul %43, %44, %cst_39 {dimension_numbers = #tpu.dot_dimension_numbers<[1], [0], [0], [1], [0, 0, 1, 1], [], []>} : vector<1x128xbf16>, vector<128x512xbf16>, vector<1x512xf32> -> vector<1x512xf32>
    %46 = arith.addf %42, %45 : vector<1x512xf32>
    %47 = arith.negf %46 : vector<1x512xf32>
    %48 = math.exp %47 : vector<1x512xf32>
    %cst_40 = arith.constant 1.000000e+00 : f32
    %49 = vector.broadcast %cst_40 : f32 to vector<1x512xf32>
    %50 = arith.addf %49, %48 : vector<1x512xf32>
    %51 = arith.divf %49, %50 : vector<1x512xf32>
    %52 = vector.extract_strided_slice %51 {offsets = [0, 0], sizes = [1, 128], strides = [1, 1]} : vector<1x512xf32> to vector<1x128xf32>
    %53 = vector.extract_strided_slice %51 {offsets = [0, 128], sizes = [1, 128], strides = [1, 1]} : vector<1x512xf32> to vector<1x128xf32>
    %54 = vector.extract_strided_slice %51 {offsets = [0, 384], sizes = [1, 128], strides = [1, 1]} : vector<1x512xf32> to vector<1x128xf32>
    %55 = vector.extract_strided_slice %46 {offsets = [0, 256], sizes = [1, 128], strides = [1, 1]} : vector<1x512xf32> to vector<1x128xf32>
    %56 = math.tanh %55 : vector<1x128xf32>
    %57 = arith.mulf %53, %40 : vector<1x128xf32>
    %58 = arith.mulf %52, %56 : vector<1x128xf32>
    %59 = arith.addf %57, %58 : vector<1x128xf32>
    %60 = math.tanh %59 : vector<1x128xf32>
    %61 = arith.mulf %54, %60 : vector<1x128xf32>
    %62 = arith.index_cast %c0_i32 : i32 to index
    %c0_41 = arith.constant 0 : index
    %63 = vector.load %arg7[%62, %c0_41] : memref<8x128xf32, #tpu.memory_space<vmem>>, vector<1x128xf32>
    tpu.vector_store %arg7[%62, %c0_41], %61 {strides = array<i32>} : memref<8x128xf32, #tpu.memory_space<vmem>>, vector<1x128xf32>,
    %c1_i32 = arith.constant 1 : i32
    %64 = arith.index_cast %c1_i32 : i32 to index
    %c0_42 = arith.constant 0 : index
    %65 = vector.load %arg11[%64, %c0_42] : memref<8x512xf32, #tpu.memory_space<vmem>>, vector<1x512xf32>
    %66 = arith.truncf %61 : vector<1x128xf32> to vector<1x128xbf16>
    %c0_43 = arith.constant 0 : index
    %c0_44 = arith.constant 0 : index
    %67 = vector.load %arg3[%c0_43, %c0_44] : memref<128x512xbf16, #tpu.memory_space<vmem>>, vector<128x512xbf16>
    %cst_45 = arith.constant dense<0.000000e+00> : vector<1x512xf32>
    %68 = tpu.matmul %66, %67, %cst_45 {dimension_numbers = #tpu.dot_dimension_numbers<[1], [0], [0], [1], [0, 0, 1, 1], [], []>} : vector<1x128xbf16>, vector<128x512xbf16>, vector<1x512xf32> -> vector<1x512xf32>
    %69 = arith.addf %65, %68 : vector<1x512xf32>
    %70 = arith.negf %69 : vector<1x512xf32>
    %71 = math.exp %70 : vector<1x512xf32>
    %cst_46 = arith.constant 1.000000e+00 : f32
    %72 = vector.broadcast %cst_46 : f32 to vector<1x512xf32>
    %73 = arith.addf %72, %71 : vector<1x512xf32>
    %74 = arith.divf %72, %73 : vector<1x512xf32>
    %75 = vector.extract_strided_slice %74 {offsets = [0, 0], sizes = [1, 128], strides = [1, 1]} : vector<1x512xf32> to vector<1x128xf32>
    %76 = vector.extract_strided_slice %74 {offsets = [0, 128], sizes = [1, 128], strides = [1, 1]} : vector<1x512xf32> to vector<1x128xf32>
    %77 = vector.extract_strided_slice %74 {offsets = [0, 384], sizes = [1, 128], strides = [1, 1]} : vector<1x512xf32> to vector<1x128xf32>
    %78 = vector.extract_strided_slice %69 {offsets = [0, 256], sizes = [1, 128], strides = [1, 1]} : vector<1x512xf32> to vector<1x128xf32>
    %79 = math.tanh %78 : vector<1x128xf32>
    %80 = arith.mulf %76, %59 : vector<1x128xf32>
    %81 = arith.mulf %75, %79 : vector<1x128xf32>
    %82 = arith.addf %80, %81 : vector<1x128xf32>
    %83 = math.tanh %82 : vector<1x128xf32>
    %84 = arith.mulf %77, %83 : vector<1x128xf32>
    %85 = arith.index_cast %c1_i32 : i32 to index
    %c0_47 = arith.constant 0 : index
    %86 = vector.load %arg7[%85, %c0_47] : memref<8x128xf32, #tpu.memory_space<vmem>>, vector<1x128xf32>
    tpu.vector_store %arg7[%85, %c0_47], %84 {strides = array<i32>} : memref<8x128xf32, #tpu.memory_space<vmem>>, vector<1x128xf32>,
    %c2_i32 = arith.constant 2 : i32
    %87 = arith.index_cast %c2_i32 : i32 to index
    %c0_48 = arith.constant 0 : index
    %88 = vector.load %arg11[%87, %c0_48] : memref<8x512xf32, #tpu.memory_space<vmem>>, vector<1x512xf32>
    %89 = arith.truncf %84 : vector<1x128xf32> to vector<1x128xbf16>
    %c0_49 = arith.constant 0 : index
    %c0_50 = arith.constant 0 : index
    %90 = vector.load %arg3[%c0_49, %c0_50] : memref<128x512xbf16, #tpu.memory_space<vmem>>, vector<128x512xbf16>
    %cst_51 = arith.constant dense<0.000000e+00> : vector<1x512xf32>
    %91 = tpu.matmul %89, %90, %cst_51 {dimension_numbers = #tpu.dot_dimension_numbers<[1], [0], [0], [1], [0, 0, 1, 1], [], []>} : vector<1x128xbf16>, vector<128x512xbf16>, vector<1x512xf32> -> vector<1x512xf32>
    %92 = arith.addf %88, %91 : vector<1x512xf32>
    %93 = arith.negf %92 : vector<1x512xf32>
    %94 = math.exp %93 : vector<1x512xf32>
    %cst_52 = arith.constant 1.000000e+00 : f32
    %95 = vector.broadcast %cst_52 : f32 to vector<1x512xf32>
    %96 = arith.addf %95, %94 : vector<1x512xf32>
    %97 = arith.divf %95, %96 : vector<1x512xf32>
    %98 = vector.extract_strided_slice %97 {offsets = [0, 0], sizes = [1, 128], strides = [1, 1]} : vector<1x512xf32> to vector<1x128xf32>
    %99 = vector.extract_strided_slice %97 {offsets = [0, 128], sizes = [1, 128], strides = [1, 1]} : vector<1x512xf32> to vector<1x128xf32>
    %100 = vector.extract_strided_slice %97 {offsets = [0, 384], sizes = [1, 128], strides = [1, 1]} : vector<1x512xf32> to vector<1x128xf32>
    %101 = vector.extract_strided_slice %92 {offsets = [0, 256], sizes = [1, 128], strides = [1, 1]} : vector<1x512xf32> to vector<1x128xf32>
    %102 = math.tanh %101 : vector<1x128xf32>
    %103 = arith.mulf %99, %82 : vector<1x128xf32>
    %104 = arith.mulf %98, %102 : vector<1x128xf32>
    %105 = arith.addf %103, %104 : vector<1x128xf32>
    %106 = math.tanh %105 : vector<1x128xf32>
    %107 = arith.mulf %100, %106 : vector<1x128xf32>
    %108 = arith.index_cast %c2_i32 : i32 to index
    %c0_53 = arith.constant 0 : index
    %109 = vector.load %arg7[%108, %c0_53] : memref<8x128xf32, #tpu.memory_space<vmem>>, vector<1x128xf32>
    tpu.vector_store %arg7[%108, %c0_53], %107 {strides = array<i32>} : memref<8x128xf32, #tpu.memory_space<vmem>>, vector<1x128xf32>,
    %c3_i32 = arith.constant 3 : i32
    %110 = arith.index_cast %c3_i32 : i32 to index
    %c0_54 = arith.constant 0 : index
    %111 = vector.load %arg11[%110, %c0_54] : memref<8x512xf32, #tpu.memory_space<vmem>>, vector<1x512xf32>
    %112 = arith.truncf %107 : vector<1x128xf32> to vector<1x128xbf16>
    %c0_55 = arith.constant 0 : index
    %c0_56 = arith.constant 0 : index
    %113 = vector.load %arg3[%c0_55, %c0_56] : memref<128x512xbf16, #tpu.memory_space<vmem>>, vector<128x512xbf16>
    %cst_57 = arith.constant dense<0.000000e+00> : vector<1x512xf32>
    %114 = tpu.matmul %112, %113, %cst_57 {dimension_numbers = #tpu.dot_dimension_numbers<[1], [0], [0], [1], [0, 0, 1, 1], [], []>} : vector<1x128xbf16>, vector<128x512xbf16>, vector<1x512xf32> -> vector<1x512xf32>
    %115 = arith.addf %111, %114 : vector<1x512xf32>
    %116 = arith.negf %115 : vector<1x512xf32>
    %117 = math.exp %116 : vector<1x512xf32>
    %cst_58 = arith.constant 1.000000e+00 : f32
    %118 = vector.broadcast %cst_58 : f32 to vector<1x512xf32>
    %119 = arith.addf %118, %117 : vector<1x512xf32>
    %120 = arith.divf %118, %119 : vector<1x512xf32>
    %121 = vector.extract_strided_slice %120 {offsets = [0, 0], sizes = [1, 128], strides = [1, 1]} : vector<1x512xf32> to vector<1x128xf32>
    %122 = vector.extract_strided_slice %120 {offsets = [0, 128], sizes = [1, 128], strides = [1, 1]} : vector<1x512xf32> to vector<1x128xf32>
    %123 = vector.extract_strided_slice %120 {offsets = [0, 384], sizes = [1, 128], strides = [1, 1]} : vector<1x512xf32> to vector<1x128xf32>
    %124 = vector.extract_strided_slice %115 {offsets = [0, 256], sizes = [1, 128], strides = [1, 1]} : vector<1x512xf32> to vector<1x128xf32>
    %125 = math.tanh %124 : vector<1x128xf32>
    %126 = arith.mulf %122, %105 : vector<1x128xf32>
    %127 = arith.mulf %121, %125 : vector<1x128xf32>
    %128 = arith.addf %126, %127 : vector<1x128xf32>
    %129 = math.tanh %128 : vector<1x128xf32>
    %130 = arith.mulf %123, %129 : vector<1x128xf32>
    %131 = arith.index_cast %c3_i32 : i32 to index
    %c0_59 = arith.constant 0 : index
    %132 = vector.load %arg7[%131, %c0_59] : memref<8x128xf32, #tpu.memory_space<vmem>>, vector<1x128xf32>
    tpu.vector_store %arg7[%131, %c0_59], %130 {strides = array<i32>} : memref<8x128xf32, #tpu.memory_space<vmem>>, vector<1x128xf32>,
    %c4_i32 = arith.constant 4 : i32
    %133 = arith.index_cast %c4_i32 : i32 to index
    %c0_60 = arith.constant 0 : index
    %134 = vector.load %arg11[%133, %c0_60] : memref<8x512xf32, #tpu.memory_space<vmem>>, vector<1x512xf32>
    %135 = arith.truncf %130 : vector<1x128xf32> to vector<1x128xbf16>
    %c0_61 = arith.constant 0 : index
    %c0_62 = arith.constant 0 : index
    %136 = vector.load %arg3[%c0_61, %c0_62] : memref<128x512xbf16, #tpu.memory_space<vmem>>, vector<128x512xbf16>
    %cst_63 = arith.constant dense<0.000000e+00> : vector<1x512xf32>
    %137 = tpu.matmul %135, %136, %cst_63 {dimension_numbers = #tpu.dot_dimension_numbers<[1], [0], [0], [1], [0, 0, 1, 1], [], []>} : vector<1x128xbf16>, vector<128x512xbf16>, vector<1x512xf32> -> vector<1x512xf32>
    %138 = arith.addf %134, %137 : vector<1x512xf32>
    %139 = arith.negf %138 : vector<1x512xf32>
    %140 = math.exp %139 : vector<1x512xf32>
    %cst_64 = arith.constant 1.000000e+00 : f32
    %141 = vector.broadcast %cst_64 : f32 to vector<1x512xf32>
    %142 = arith.addf %141, %140 : vector<1x512xf32>
    %143 = arith.divf %141, %142 : vector<1x512xf32>
    %144 = vector.extract_strided_slice %143 {offsets = [0, 0], sizes = [1, 128], strides = [1, 1]} : vector<1x512xf32> to vector<1x128xf32>
    %145 = vector.extract_strided_slice %143 {offsets = [0, 128], sizes = [1, 128], strides = [1, 1]} : vector<1x512xf32> to vector<1x128xf32>
    %146 = vector.extract_strided_slice %143 {offsets = [0, 384], sizes = [1, 128], strides = [1, 1]} : vector<1x512xf32> to vector<1x128xf32>
    %147 = vector.extract_strided_slice %138 {offsets = [0, 256], sizes = [1, 128], strides = [1, 1]} : vector<1x512xf32> to vector<1x128xf32>
    %148 = math.tanh %147 : vector<1x128xf32>
    %149 = arith.mulf %145, %128 : vector<1x128xf32>
    %150 = arith.mulf %144, %148 : vector<1x128xf32>
    %151 = arith.addf %149, %150 : vector<1x128xf32>
    %152 = math.tanh %151 : vector<1x128xf32>
    %153 = arith.mulf %146, %152 : vector<1x128xf32>
    %154 = arith.index_cast %c4_i32 : i32 to index
    %c0_65 = arith.constant 0 : index
    %155 = vector.load %arg7[%154, %c0_65] : memref<8x128xf32, #tpu.memory_space<vmem>>, vector<1x128xf32>
    tpu.vector_store %arg7[%154, %c0_65], %153 {strides = array<i32>} : memref<8x128xf32, #tpu.memory_space<vmem>>, vector<1x128xf32>,
    %c5_i32 = arith.constant 5 : i32
    %156 = arith.index_cast %c5_i32 : i32 to index
    %c0_66 = arith.constant 0 : index
    %157 = vector.load %arg11[%156, %c0_66] : memref<8x512xf32, #tpu.memory_space<vmem>>, vector<1x512xf32>
    %158 = arith.truncf %153 : vector<1x128xf32> to vector<1x128xbf16>
    %c0_67 = arith.constant 0 : index
    %c0_68 = arith.constant 0 : index
    %159 = vector.load %arg3[%c0_67, %c0_68] : memref<128x512xbf16, #tpu.memory_space<vmem>>, vector<128x512xbf16>
    %cst_69 = arith.constant dense<0.000000e+00> : vector<1x512xf32>
    %160 = tpu.matmul %158, %159, %cst_69 {dimension_numbers = #tpu.dot_dimension_numbers<[1], [0], [0], [1], [0, 0, 1, 1], [], []>} : vector<1x128xbf16>, vector<128x512xbf16>, vector<1x512xf32> -> vector<1x512xf32>
    %161 = arith.addf %157, %160 : vector<1x512xf32>
    %162 = arith.negf %161 : vector<1x512xf32>
    %163 = math.exp %162 : vector<1x512xf32>
    %cst_70 = arith.constant 1.000000e+00 : f32
    %164 = vector.broadcast %cst_70 : f32 to vector<1x512xf32>
    %165 = arith.addf %164, %163 : vector<1x512xf32>
    %166 = arith.divf %164, %165 : vector<1x512xf32>
    %167 = vector.extract_strided_slice %166 {offsets = [0, 0], sizes = [1, 128], strides = [1, 1]} : vector<1x512xf32> to vector<1x128xf32>
    %168 = vector.extract_strided_slice %166 {offsets = [0, 128], sizes = [1, 128], strides = [1, 1]} : vector<1x512xf32> to vector<1x128xf32>
    %169 = vector.extract_strided_slice %166 {offsets = [0, 384], sizes = [1, 128], strides = [1, 1]} : vector<1x512xf32> to vector<1x128xf32>
    %170 = vector.extract_strided_slice %161 {offsets = [0, 256], sizes = [1, 128], strides = [1, 1]} : vector<1x512xf32> to vector<1x128xf32>
    %171 = math.tanh %170 : vector<1x128xf32>
    %172 = arith.mulf %168, %151 : vector<1x128xf32>
    %173 = arith.mulf %167, %171 : vector<1x128xf32>
    %174 = arith.addf %172, %173 : vector<1x128xf32>
    %175 = math.tanh %174 : vector<1x128xf32>
    %176 = arith.mulf %169, %175 : vector<1x128xf32>
    %177 = arith.index_cast %c5_i32 : i32 to index
    %c0_71 = arith.constant 0 : index
    %178 = vector.load %arg7[%177, %c0_71] : memref<8x128xf32, #tpu.memory_space<vmem>>, vector<1x128xf32>
    tpu.vector_store %arg7[%177, %c0_71], %176 {strides = array<i32>} : memref<8x128xf32, #tpu.memory_space<vmem>>, vector<1x128xf32>,
    %c6_i32 = arith.constant 6 : i32
    %179 = arith.index_cast %c6_i32 : i32 to index
    %c0_72 = arith.constant 0 : index
    %180 = vector.load %arg11[%179, %c0_72] : memref<8x512xf32, #tpu.memory_space<vmem>>, vector<1x512xf32>
    %181 = arith.truncf %176 : vector<1x128xf32> to vector<1x128xbf16>
    %c0_73 = arith.constant 0 : index
    %c0_74 = arith.constant 0 : index
    %182 = vector.load %arg3[%c0_73, %c0_74] : memref<128x512xbf16, #tpu.memory_space<vmem>>, vector<128x512xbf16>
    %cst_75 = arith.constant dense<0.000000e+00> : vector<1x512xf32>
    %183 = tpu.matmul %181, %182, %cst_75 {dimension_numbers = #tpu.dot_dimension_numbers<[1], [0], [0], [1], [0, 0, 1, 1], [], []>} : vector<1x128xbf16>, vector<128x512xbf16>, vector<1x512xf32> -> vector<1x512xf32>
    %184 = arith.addf %180, %183 : vector<1x512xf32>
    %185 = arith.negf %184 : vector<1x512xf32>
    %186 = math.exp %185 : vector<1x512xf32>
    %cst_76 = arith.constant 1.000000e+00 : f32
    %187 = vector.broadcast %cst_76 : f32 to vector<1x512xf32>
    %188 = arith.addf %187, %186 : vector<1x512xf32>
    %189 = arith.divf %187, %188 : vector<1x512xf32>
    %190 = vector.extract_strided_slice %189 {offsets = [0, 0], sizes = [1, 128], strides = [1, 1]} : vector<1x512xf32> to vector<1x128xf32>
    %191 = vector.extract_strided_slice %189 {offsets = [0, 128], sizes = [1, 128], strides = [1, 1]} : vector<1x512xf32> to vector<1x128xf32>
    %192 = vector.extract_strided_slice %189 {offsets = [0, 384], sizes = [1, 128], strides = [1, 1]} : vector<1x512xf32> to vector<1x128xf32>
    %193 = vector.extract_strided_slice %184 {offsets = [0, 256], sizes = [1, 128], strides = [1, 1]} : vector<1x512xf32> to vector<1x128xf32>
    %194 = math.tanh %193 : vector<1x128xf32>
    %195 = arith.mulf %191, %174 : vector<1x128xf32>
    %196 = arith.mulf %190, %194 : vector<1x128xf32>
    %197 = arith.addf %195, %196 : vector<1x128xf32>
    %198 = math.tanh %197 : vector<1x128xf32>
    %199 = arith.mulf %192, %198 : vector<1x128xf32>
    %200 = arith.index_cast %c6_i32 : i32 to index
    %c0_77 = arith.constant 0 : index
    %201 = vector.load %arg7[%200, %c0_77] : memref<8x128xf32, #tpu.memory_space<vmem>>, vector<1x128xf32>
    tpu.vector_store %arg7[%200, %c0_77], %199 {strides = array<i32>} : memref<8x128xf32, #tpu.memory_space<vmem>>, vector<1x128xf32>,
    %c7_i32 = arith.constant 7 : i32
    %202 = arith.index_cast %c7_i32 : i32 to index
    %c0_78 = arith.constant 0 : index
    %203 = vector.load %arg11[%202, %c0_78] : memref<8x512xf32, #tpu.memory_space<vmem>>, vector<1x512xf32>
    %204 = arith.truncf %199 : vector<1x128xf32> to vector<1x128xbf16>
    %c0_79 = arith.constant 0 : index
    %c0_80 = arith.constant 0 : index
    %205 = vector.load %arg3[%c0_79, %c0_80] : memref<128x512xbf16, #tpu.memory_space<vmem>>, vector<128x512xbf16>
    %cst_81 = arith.constant dense<0.000000e+00> : vector<1x512xf32>
    %206 = tpu.matmul %204, %205, %cst_81 {dimension_numbers = #tpu.dot_dimension_numbers<[1], [0], [0], [1], [0, 0, 1, 1], [], []>} : vector<1x128xbf16>, vector<128x512xbf16>, vector<1x512xf32> -> vector<1x512xf32>
    %207 = arith.addf %203, %206 : vector<1x512xf32>
    %208 = arith.negf %207 : vector<1x512xf32>
    %209 = math.exp %208 : vector<1x512xf32>
    %cst_82 = arith.constant 1.000000e+00 : f32
    %210 = vector.broadcast %cst_82 : f32 to vector<1x512xf32>
    %211 = arith.addf %210, %209 : vector<1x512xf32>
    %212 = arith.divf %210, %211 : vector<1x512xf32>
    %213 = vector.extract_strided_slice %212 {offsets = [0, 0], sizes = [1, 128], strides = [1, 1]} : vector<1x512xf32> to vector<1x128xf32>
    %214 = vector.extract_strided_slice %212 {offsets = [0, 128], sizes = [1, 128], strides = [1, 1]} : vector<1x512xf32> to vector<1x128xf32>
    %215 = vector.extract_strided_slice %212 {offsets = [0, 384], sizes = [1, 128], strides = [1, 1]} : vector<1x512xf32> to vector<1x128xf32>
    %216 = vector.extract_strided_slice %207 {offsets = [0, 256], sizes = [1, 128], strides = [1, 1]} : vector<1x512xf32> to vector<1x128xf32>
    %217 = math.tanh %216 : vector<1x128xf32>
    %218 = arith.mulf %214, %197 : vector<1x128xf32>
    %219 = arith.mulf %213, %217 : vector<1x128xf32>
    %220 = arith.addf %218, %219 : vector<1x128xf32>
    %221 = math.tanh %220 : vector<1x128xf32>
    %222 = arith.mulf %215, %221 : vector<1x128xf32>
    %223 = arith.index_cast %c7_i32 : i32 to index
    %c0_83 = arith.constant 0 : index
    %224 = vector.load %arg7[%223, %c0_83] : memref<8x128xf32, #tpu.memory_space<vmem>>, vector<1x128xf32>
    tpu.vector_store %arg7[%223, %c0_83], %222 {strides = array<i32>} : memref<8x128xf32, #tpu.memory_space<vmem>>, vector<1x128xf32>,
    %c8_i32 = arith.constant 8 : i32
    %c0_84 = arith.constant 0 : index
    %c0_85 = arith.constant 0 : index
    %225 = vector.load %arg8[%c0_84, %c0_85] : memref<1x128xf32, #tpu.memory_space<vmem>>, vector<1x128xf32>
    tpu.vector_store %arg8[%c0_84, %c0_85], %222 {strides = array<i32>} : memref<1x128xf32, #tpu.memory_space<vmem>>, vector<1x128xf32>,
    %c0_86 = arith.constant 0 : index
    %c0_87 = arith.constant 0 : index
    %226 = vector.load %arg9[%c0_86, %c0_87] : memref<1x128xf32, #tpu.memory_space<vmem>>, vector<1x128xf32>
    tpu.vector_store %arg9[%c0_86, %c0_87], %220 {strides = array<i32>} : memref<1x128xf32, #tpu.memory_space<vmem>>, vector<1x128xf32>,
    return
  }
}

</mosaic_0001>

<bundles_post_ra>
// kernel: tpu_custom_call.1
= control target key start
LH: loop header
LB: loop body
LE: loop exit
PB: predicated region body
PF: predicated region fallthrough
CT: control target
= control target key end

     0   :  { %15 = vsyncpa [#allocation7], 0  ;;  %s4436_s0 = inlined_call_operand.hbm [shape: s32[8], index: 0, kind: input, shape index: {}]   ;;  %s4437_s1 = inlined_call_operand.hbm [shape: f32[16,128], index: 1, kind: input, shape index: {}]   ;;  %s4438_s2 = inlined_call_operand.hbm [shape: f32[128,512], index: 2, kind: input, shape index: {}]   ;;  %s4439_s3 = inlined_call_operand.hbm [shape: bf16[128,512], index: 3, kind: input, shape index: {}]   ;;  %s4440_s4 = inlined_call_operand.hbm [shape: f32[1,512], index: 4, kind: input, shape index: {}]   ;;  %s4441_s5 = inlined_call_operand.vmem [shape: f32[1,128], index: 5, kind: input, shape index: {}]   ;;  %s4442_s6 = inlined_call_operand.vmem [shape: f32[1,128], index: 6, kind: input, shape index: {}]   ;;  %s4443_s7 = inlined_call_operand.hbm [shape: f32[8,128], index: 7, kind: output, shape index: {0}]   ;;  %s4444_s8 = inlined_call_operand.hbm [shape: f32[1,128], index: 8, kind: output, shape index: {1}]   ;;  %s4445_s9 = inlined_call_operand.hbm [shape: f32[1,128], index: 9, kind: output, shape index: {2}]  }
   0x1   :  { %16 = vsyncpa [#allocation5], 0 }
   0x2   :  { %17 = vsyncpa [#allocation10], 0 }
   0x3   :  { %18 = vsyncpa [#allocation13], 0 }
   0x4   :  { %19 = vsyncpa [#allocation6], 0  ;;  %s47_s11 = sshll.u32 %s4438_s2, 4  ;;  %s48_s11 = int_to_ptr.hbm [resolvable:$true] %s47_s11 }
   0x5   :  { %20 = vsyncpa [#allocation16], 0  ;;  %s4270_s12 = smov [#allocation9]   ;;  %s26_s16 = sshll.u32 %s4436_s0, 4  ;;  %s27_s16 = int_to_ptr.hbm [resolvable:$true] %s26_s16 }
   0x6   :  { %s49_s13 = sshll.u32 %s4270_s12, 4  ;;  %s4271_s17 = smov 512   ;;  %s50_s13 = int_to_ptr.vmem [resolvable:$true] %s49_s13 }
   0x7   :  { %s4272_s18 = smov 32   ;;  %s4273_s19 = smov [#allocation4]  }
   0x8   :  { %55 = dma.hbm_to_vmem [thread:$0]  %s48_s11, 8192, %s50_s13, [#allocation10], %s4271_s17, %s4271_s17, %s4272_s18  }
   0x9   :  { %29 = dma.hbm_to_smem %s27_s16, 16, %s4273_s19, [#allocation7]  }
   0xa   :  { %s34_s22 = sshll.u32 %s4437_s1, 4  ;;  %s4274_s2 = smov [#allocation8]   ;;  %s35_s22 = int_to_ptr.hbm [resolvable:$true] %s34_s22 }
   0xb   :  { %s36_s23 = sshll.u32 %s4274_s2, 4  ;;  %s60_s26 = sshll.u32 %s4439_s3, 4  ;;  %s37_s23 = int_to_ptr.vmem [resolvable:$true] %s36_s23  ;;  %s61_s26 = int_to_ptr.hbm [resolvable:$true] %s60_s26 }
   0xc   :  { %s4275_s27 = smov 128   ;;  %s4276_s0 = smov 8  }
   0xd   :  { %42 = dma.hbm_to_vmem [thread:$0]  %s35_s22, 256, %s37_s23, [#allocation5], %s4275_s27, %s4275_s27, %s4276_s0  }
   0xe   :  { %s4277_s28 = smov [#allocation11]   ;;  %s4278_s30 = smov 256  }
   0xf   :  { %s62_s29 = sshll.u32 %s4277_s28, 4  ;;  %s4279_s10 = smov 16   ;;  %s63_s29 = int_to_ptr.vmem [resolvable:$true] %s62_s29 }
  0x10   :  { %68 = dma.hbm_to_vmem [thread:$0]  %s61_s26, 4096, %s63_s29, [#allocation10], %s4278_s30, %s4278_s30, %s4279_s10  }
  0x11   :  { %s74_s12 = sshll.u32 %s4440_s4, 4  ;;  %s4280_s13 = smov [#allocation12]   ;;  %s75_s12 = int_to_ptr.hbm [resolvable:$true] %s74_s12 }
  0x12   :  { %s76_s14 = sshll.u32 %s4280_s13, 4  ;;  %s77_s14 = int_to_ptr.vmem [resolvable:$true] %s76_s14 }
  0x13   :  { %79 = dma.hbm_to_vmem [thread:$0]  %s75_s12, 64, %s77_s14, [#allocation13]  }
  0x14   :  { %4258 = dma.done.wait [#allocation7], 16  }
  0x15   :  { %4259 = vsyncadd [#allocation7], 4294967280 }
  0x16   :  { %4260 = dma.done.wait [#allocation5], 256  }
  0x17   :  { %4261 = vsyncadd [#allocation5], 4294967040 }
  0x18   :  { %4262 = dma.done.wait [#allocation10], 12288  }
  0x19   :  { %4263 = vsyncadd [#allocation10], 4294955008 }
  0x1a   :  { %4264 = dma.done.wait [#allocation13], 64  }
  0x1b   :  { %4265 = vsyncadd [#allocation13], 4294967232 }
  0x1c   :  { %104 = sfence }
  0x1d   :  { %v198_v0 = vld [vmem:[#allocation9 + $0x1e0] sm:$0xff]  ;;  %v199_v1 = vld [vmem:[#allocation9 + $0x1e8] sm:$0xff]  ;;  %v200_v2 = vld [vmem:[#allocation9 + $0x1f0] sm:$0xff]  ;;  %s4349_s3 = sld [smem:[#allocation4]]  ;;  %vm551_vm0 = vcmask 1040384   ;;  %vm553_vm1 = vcmask 1042434  }
  0x1e   :  { %212 = vmatpush.msra.mxu0 %v198_v0  ;;  %232 = vmatpush.msra.mxu1 %v199_v1  ;;  %v201_v3 = vld [vmem:[#allocation9 + $0x1f8] sm:$0xff]  ;;  %v194_v4 = vld [vmem:[#allocation9 + $0x1c0] sm:$0xff]  ;;  %v195_v5 = vld [vmem:[#allocation9 + $0x1c8] sm:$0xff]  ;;  %s4351_s4 = sld [smem:[#allocation4 + $0x1]]  ;;  %vm555_vm2 = vcmask 1041408   ;;  %s2653_s1 = sshll.u32 %s4443_s7, 4  ;;  %s2654_s1 = int_to_ptr.hbm [resolvable:$true] %s2653_s1 }
  0x1f   :  { %252 = vmatpush.msra.mxu2 %v200_v2  ;;  %272 = vmatpush.msra.mxu3 %v201_v3  ;;  %v196_v6 = vld [vmem:[#allocation9 + $0x1d0] sm:$0xff]  ;;  %v197_v7 = vld [vmem:[#allocation9 + $0x1d8] sm:$0xff]  ;;  %v190_v8 = vld [vmem:[#allocation9 + $0x1a0] sm:$0xff]  ;;  %s4353_s15 = sld [smem:[#allocation4 + $0x2]]  ;;  %s4282_s12 = smov [#allocation15]  }
  0x20   :  { %213 = vmatpush.msra.mxu0 %v194_v4  ;;  %233 = vmatpush.msra.mxu1 %v195_v5  ;;  %v191_v9 = vld [vmem:[#allocation9 + $0x1a8] sm:$0xff]  ;;  %v192_v10 = vld [vmem:[#allocation9 + $0x1b0] sm:$0xff]  ;;  %v193_v11 = vld [vmem:[#allocation9 + $0x1b8] sm:$0xff]  ;;  %s4355_s16 = sld [smem:[#allocation4 + $0x3]]  ;;  %s2662_s13 = sshll.u32 %s4282_s12, 4  ;;  %s2663_s13 = int_to_ptr.vmem [resolvable:$true] %s2662_s13 }
  0x21   :  { %253 = vmatpush.msra.mxu2 %v196_v6  ;;  %273 = vmatpush.msra.mxu3 %v197_v7  ;;  %v186_v12 = vld [vmem:[#allocation9 + $0x180] sm:$0xff]  ;;  %v187_v13 = vld [vmem:[#allocation9 + $0x188] sm:$0xff]  ;;  %v188_v14 = vld [vmem:[#allocation9 + $0x190] sm:$0xff]  ;;  %s4357_s17 = sld [smem:[#allocation4 + $0x4]] }
  0x22   :  { %214 = vmatpush.msra.mxu0 %v190_v8  ;;  %234 = vmatpush.msra.mxu1 %v191_v9  ;;  %v189_v15 = vld [vmem:[#allocation9 + $0x198] sm:$0xff]  ;;  %v182_v16 = vld [vmem:[#allocation9 + $0x160] sm:$0xff]  ;;  %v183_v17 = vld [vmem:[#allocation9 + $0x168] sm:$0xff]  ;;  %s4359_s18 = sld [smem:[#allocation4 + $0x5]] }
  0x23   :  { %254 = vmatpush.msra.mxu2 %v192_v10  ;;  %274 = vmatpush.msra.mxu3 %v193_v11  ;;  %v184_v18 = vld [vmem:[#allocation9 + $0x170] sm:$0xff]  ;;  %v185_v19 = vld [vmem:[#allocation9 + $0x178] sm:$0xff]  ;;  %v178_v20 = vld [vmem:[#allocation9 + $0x140] sm:$0xff]  ;;  %s4361_s19 = sld [smem:[#allocation4 + $0x6]]  ;;  %s106_s21 = scalar_lea.vmem [#allocation8], %s4349_s3 }
  0x24   :  { %215 = vmatpush.msra.mxu0 %v186_v12  ;;  %235 = vmatpush.msra.mxu1 %v187_v13  ;;  %v179_v21 = vld [vmem:[#allocation9 + $0x148] sm:$0xff]  ;;  %v180_v22 = vld [vmem:[#allocation9 + $0x150] sm:$0xff]  ;;  %v181_v23 = vld [vmem:[#allocation9 + $0x158] sm:$0xff]  ;;  %s4363_s20 = sld [smem:[#allocation4 + $0x7]]  ;;  %s110_s22 = scalar_lea.vmem [#allocation8], %s4351_s4 }
  0x25   :  { %255 = vmatpush.msra.mxu2 %v188_v14  ;;  %275 = vmatpush.msra.mxu3 %v189_v15  ;;  %v174_v24 = vld [vmem:[#allocation9 + $0x120] sm:$0xff]  ;;  %v175_v25 = vld [vmem:[#allocation9 + $0x128] sm:$0xff]  ;;  %v176_v26 = vld [vmem:[#allocation9 + $0x130] sm:$0xff]  ;;  %s114_s2 = scalar_lea.vmem [#allocation8], %s4353_s15  ;;  %s2664_s4 = sshll.u32 %s4444_s8, 4  ;;  %s2665_s4 = int_to_ptr.hbm [resolvable:$true] %s2664_s4 }
  0x26   :  { %216 = vmatpush.msra.mxu0 %v182_v16  ;;  %236 = vmatpush.msra.mxu1 %v183_v17  ;;  %v177_v27 = vld [vmem:[#allocation9 + $0x138] sm:$0xff]  ;;  %v170_v28 = vld [vmem:[#allocation9 + $0x100] sm:$0xff]  ;;  %v171_v29 = vld [vmem:[#allocation9 + $0x108] sm:$0xff]  ;;  %s118_s23 = scalar_lea.vmem [#allocation8], %s4355_s16  ;;  %s4283_s15 = smov [#allocation17]  }
  0x27   :  { %256 = vmatpush.msra.mxu2 %v184_v18  ;;  %276 = vmatpush.msra.mxu3 %v185_v19  ;;  %v172_v30 = vld [vmem:[#allocation9 + $0x110] sm:$0xff]  ;;  %v173_v31 = vld [vmem:[#allocation9 + $0x118] sm:$0xff]  ;;  %v166_v32 = vld [vmem:[#allocation9 + $0xe0] sm:$0xff]  ;;  %s122_s24 = scalar_lea.vmem [#allocation8], %s4357_s17  ;;  %s2673_s16 = sshll.u32 %s4283_s15, 4  ;;  %s2674_s16 = int_to_ptr.vmem [resolvable:$true] %s2673_s16 }
  0x28   :  { %217 = vmatpush.msra.mxu0 %v178_v20  ;;  %237 = vmatpush.msra.mxu1 %v179_v21  ;;  %v167_v33 = vld [vmem:[#allocation9 + $0xe8] sm:$0xff]  ;;  %v168_v34 = vld [vmem:[#allocation9 + $0xf0] sm:$0xff]  ;;  %v169_v35 = vld [vmem:[#allocation9 + $0xf8] sm:$0xff]  ;;  %s126_s25 = scalar_lea.vmem [#allocation8], %s4359_s18 }
  0x29   :  { %257 = vmatpush.msra.mxu2 %v180_v22  ;;  %277 = vmatpush.msra.mxu3 %v181_v23  ;;  %v162_v36 = vld [vmem:[#allocation9 + $0xc0] sm:$0xff]  ;;  %v163_v37 = vld [vmem:[#allocation9 + $0xc8] sm:$0xff]  ;;  %v164_v38 = vld [vmem:[#allocation9 + $0xd0] sm:$0xff]  ;;  %s130_s26 = scalar_lea.vmem [#allocation8], %s4361_s19  ;;  %s2675_s19 = sshll.u32 %s4445_s9, 4  ;;  %s2676_s19 = int_to_ptr.hbm [resolvable:$true] %s2675_s19 }
  0x2a   :  { %218 = vmatpush.msra.mxu0 %v174_v24  ;;  %238 = vmatpush.msra.mxu1 %v175_v25  ;;  %v165_v39 = vld [vmem:[#allocation9 + $0xd8] sm:$0xff]  ;;  %v158_v40 = vld [vmem:[#allocation9 + $0xa0] sm:$0xff]  ;;  %v159_v41 = vld [vmem:[#allocation9 + $0xa8] sm:$0xff]  ;;  %s134_s27 = scalar_lea.vmem [#allocation8], %s4363_s20 }
  0x2b   :  { %258 = vmatpush.msra.mxu2 %v176_v26  ;;  %278 = vmatpush.msra.mxu3 %v177_v27  ;;  %v160_v42 = vld [vmem:[#allocation9 + $0xb0] sm:$0xff]  ;;  %v161_v43 = vld [vmem:[#allocation9 + $0xb8] sm:$0xff]  ;;  %v154_v44 = vld [vmem:[#allocation9 + $0x80] sm:$0xff] }
  0x2c   :  { %219 = vmatpush.msra.mxu0 %v170_v28  ;;  %239 = vmatpush.msra.mxu1 %v171_v29  ;;  %v155_v45 = vld [vmem:[#allocation9 + $0x88] sm:$0xff]  ;;  %v156_v46 = vld [vmem:[#allocation9 + $0x90] sm:$0xff]  ;;  %v157_v47 = vld [vmem:[#allocation9 + $0x98] sm:$0xff] }
  0x2d   :  { %259 = vmatpush.msra.mxu2 %v172_v30  ;;  %279 = vmatpush.msra.mxu3 %v173_v31  ;;  %v150_v48 = vld [vmem:[#allocation9 + $0x60] sm:$0xff]  ;;  %v151_v49 = vld [vmem:[#allocation9 + $0x68] sm:$0xff]  ;;  %v152_v50 = vld [vmem:[#allocation9 + $0x70] sm:$0xff] }
  0x2e   :  { %220 = vmatpush.msra.mxu0 %v166_v32  ;;  %240 = vmatpush.msra.mxu1 %v167_v33  ;;  %v153_v51 = vld [vmem:[#allocation9 + $0x78] sm:$0xff]  ;;  %v146_v52 = vld [vmem:[#allocation9 + $0x40] sm:$0xff]  ;;  %v147_v53 = vld [vmem:[#allocation9 + $0x48] sm:$0xff] }
  0x2f   :  { %260 = vmatpush.msra.mxu2 %v168_v34  ;;  %280 = vmatpush.msra.mxu3 %v169_v35  ;;  %v148_v54 = vld [vmem:[#allocation9 + $0x50] sm:$0xff]  ;;  %v149_v55 = vld [vmem:[#allocation9 + $0x58] sm:$0xff]  ;;  %v142_v56 = vld [vmem:[#allocation9 + $0x20] sm:$0xff] }
  0x30   :  { %221 = vmatpush.msra.mxu0 %v162_v36  ;;  %241 = vmatpush.msra.mxu1 %v163_v37  ;;  %v143_v57 = vld [vmem:[#allocation9 + $0x28] sm:$0xff]  ;;  %v144_v58 = vld [vmem:[#allocation9 + $0x30] sm:$0xff]  ;;  %v145_v59 = vld [vmem:[#allocation9 + $0x38] sm:$0xff] }
  0x31   :  { %261 = vmatpush.msra.mxu2 %v164_v38  ;;  %281 = vmatpush.msra.mxu3 %v165_v39  ;;  %v2826_v60 = vld [vmem:[#allocation11 + $0xe0] sm:$0xf]  ;;  %v3774_v61 = vld [vmem:[#allocation11 + $0xec] sm:$0xf0]  ;;  %v3772_v62 = vld [vmem:[#allocation11 + $0xe4] sm:$0xf] }
  0x32   :  { %222 = vmatpush.msra.mxu0 %v158_v40  ;;  %242 = vmatpush.msra.mxu1 %v159_v41  ;;  %v2828_v63 = vld [vmem:[#allocation11 + $0xf0] sm:$0xf0]  ;;  %v2834_v0 = vld [vmem:[#allocation11 + $0xe8] sm:$0xf]  ;;  %v3775_v1 = vld [vmem:[#allocation11 + $0xf4] sm:$0xf0]  ;;  %v2827_v8 = vor.u32 %v3774_v61, %v2826_v60 }
  0x33   :  { %262 = vmatpush.msra.mxu2 %v160_v42  ;;  %282 = vmatpush.msra.mxu3 %v161_v43  ;;  %v3773_v2 = vld [vmem:[#allocation11 + $0xec] sm:$0xf]  ;;  %v2836_v3 = vld [vmem:[#allocation11 + $0xf8] sm:$0xf0]  ;;  %v138_v4 = vld [vmem:[#allocation9] sm:$0xff]  ;;  %v2831_v9 = vor.u32 %v3772_v62, %v2828_v63  ;;  %v2835_v12 = vor.u32 %v3775_v1, %v2834_v0 }
  0x34   :  { %223 = vmatpush.msra.mxu0 %v154_v44  ;;  %243 = vmatpush.msra.mxu1 %v155_v45  ;;  %v139_v5 = vld [vmem:[#allocation9 + $0x8] sm:$0xff]  ;;  %v140_v6 = vld [vmem:[#allocation9 + $0x10] sm:$0xff]  ;;  %v141_v7 = vld [vmem:[#allocation9 + $0x18] sm:$0xff]  ;;  %v2839_v13 = vor.u32 %v3773_v2, %v2836_v3 }
  0x35   :  { %263 = vmatpush.msra.mxu2 %v156_v46  ;;  %283 = vmatpush.msra.mxu3 %v157_v47  ;;  %v2810_v10 = vld [vmem:[#allocation11 + $0xc0] sm:$0xf]  ;;  %v3770_v11 = vld [vmem:[#allocation11 + $0xcc] sm:$0xf0]  ;;  %v3768_v14 = vld [vmem:[#allocation11 + $0xc4] sm:$0xf] }
  0x36   :  { %224 = vmatpush.msra.mxu0 %v150_v48  ;;  %244 = vmatpush.msra.mxu1 %v151_v49  ;;  %v2812_v15 = vld [vmem:[#allocation11 + $0xd0] sm:$0xf0]  ;;  %v2818_v16 = vld [vmem:[#allocation11 + $0xc8] sm:$0xf]  ;;  %v3771_v17 = vld [vmem:[#allocation11 + $0xd4] sm:$0xf0]  ;;  %v2811_v20 = vor.u32 %v3770_v11, %v2810_v10 }
  0x37   :  { %264 = vmatpush.msra.mxu2 %v152_v50  ;;  %284 = vmatpush.msra.mxu3 %v153_v51  ;;  %v3769_v18 = vld [vmem:[#allocation11 + $0xcc] sm:$0xf]  ;;  %v2820_v19 = vld [vmem:[#allocation11 + $0xd8] sm:$0xf0]  ;;  %v2815_v21 = vor.u32 %v3768_v14, %v2812_v15  ;;  %v2794_v22 = vld [vmem:[#allocation11 + $0xa0] sm:$0xf]  ;;  %v2819_v24 = vor.u32 %v3771_v17, %v2818_v16 }
  0x38   :  { %225 = vmatpush.msra.mxu0 %v146_v52  ;;  %245 = vmatpush.msra.mxu1 %v147_v53  ;;  %v3766_v23 = vld [vmem:[#allocation11 + $0xac] sm:$0xf0]  ;;  %v2823_v25 = vor.u32 %v3769_v18, %v2820_v19  ;;  %v3764_v26 = vld [vmem:[#allocation11 + $0xa4] sm:$0xf]  ;;  %v2796_v27 = vld [vmem:[#allocation11 + $0xb0] sm:$0xf0] }
  0x39   :  { %265 = vmatpush.msra.mxu2 %v148_v54  ;;  %285 = vmatpush.msra.mxu3 %v149_v55  ;;  %v2802_v28 = vld [vmem:[#allocation11 + $0xa8] sm:$0xf]  ;;  %v3767_v29 = vld [vmem:[#allocation11 + $0xb4] sm:$0xf0]  ;;  %v3765_v30 = vld [vmem:[#allocation11 + $0xac] sm:$0xf]  ;;  %v2795_v36 = vor.u32 %v3766_v23, %v2794_v22  ;;  %v2799_v37 = vor.u32 %v3764_v26, %v2796_v27 }
  0x3a   :  { %226 = vmatpush.msra.mxu0 %v142_v56  ;;  %246 = vmatpush.msra.mxu1 %v143_v57  ;;  %v2804_v31 = vld [vmem:[#allocation11 + $0xb8] sm:$0xf0]  ;;  %v2778_v32 = vld [vmem:[#allocation11 + $0x80] sm:$0xf]  ;;  %v3762_v33 = vld [vmem:[#allocation11 + $0x8c] sm:$0xf0]  ;;  %v2803_v43 = vor.u32 %v3767_v29, %v2802_v28 }
  0x3b   :  { %266 = vmatpush.msra.mxu2 %v144_v58  ;;  %286 = vmatpush.msra.mxu3 %v145_v59  ;;  %v3760_v34 = vld [vmem:[#allocation11 + $0x84] sm:$0xf]  ;;  %v2780_v35 = vld [vmem:[#allocation11 + $0x90] sm:$0xf0]  ;;  %v2786_v38 = vld [vmem:[#allocation11 + $0x88] sm:$0xf]  ;;  %v2807_v44 = vor.u32 %v3765_v30, %v2804_v31  ;;  %v2779_v54 = vor.u32 %v3762_v33, %v2778_v32 }
  0x3c   :  { %227 = vmatpush.msra.mxu0 %v138_v4  ;;  %247 = vmatpush.msra.mxu1 %v139_v5  ;;  %v3763_v39 = vld [vmem:[#allocation11 + $0x94] sm:$0xf0]  ;;  %v3761_v40 = vld [vmem:[#allocation11 + $0x8c] sm:$0xf]  ;;  %v107_v41 = vld [vmem:[%s106_s21] sm:$0x1]  ;;  %v2783_v55 = vor.u32 %v3760_v34, %v2780_v35 }
  0x3d   :  { %267 = vmatpush.msra.mxu2 %v140_v6  ;;  %287 = vmatpush.msra.mxu3 %v141_v7  ;;  %v111_v42 = vld [vmem:[%s110_s22] sm:$0x1]  ;;  %108 = vst [vmem:[#allocation2] sm:$0x1] %v107_v41  ;;  %v2788_v47 = vld [vmem:[#allocation11 + $0x98] sm:$0xf0]  ;;  %v2787_v58 = vor.u32 %v3763_v39, %v2786_v38 }
  0x3e   :  { %492 = vmatpush.bf16.msrb.mxu0 %v2827_v8  ;;  %505 = vmatpush.bf16.msrb.mxu1 %v2831_v9  ;;  %v115_v45 = vld [vmem:[%s114_s2] sm:$0x1]  ;;  %112 = vst [vmem:[#allocation2 + $0x1] sm:$0x1] %v111_v42  ;;  %v2762_v49 = vld [vmem:[#allocation11 + $0x60] sm:$0xf]  ;;  %v2791_v59 = vor.u32 %v3761_v40, %v2788_v47 }
  0x3f   :  { %518 = vmatpush.bf16.msrb.mxu2 %v2835_v12  ;;  %531 = vmatpush.bf16.msrb.mxu3 %v2839_v13  ;;  %v119_v46 = vld [vmem:[%s118_s23] sm:$0x1]  ;;  %v3758_v50 = vld [vmem:[#allocation11 + $0x6c] sm:$0xf0]  ;;  %v3756_v51 = vld [vmem:[#allocation11 + $0x64] sm:$0xf] }
  0x40   :  { %v123_v48 = vld [vmem:[%s122_s24] sm:$0x1]  ;;  %v2764_v52 = vld [vmem:[#allocation11 + $0x70] sm:$0xf0]  ;;  %116 = vst [vmem:[#allocation2 + $0x2] sm:$0x1] %v115_v45  ;;  %v2763_v0 = vor.u32 %v3758_v50, %v2762_v49 }
  0x41   :  { %v127_v53 = vld [vmem:[%s126_s25] sm:$0x1]  ;;  %120 = vst [vmem:[#allocation2 + $0x3] sm:$0x1] %v119_v46  ;;  %v3759_v60 = vld [vmem:[#allocation11 + $0x74] sm:$0xf0]  ;;  %v2767_v1 = vor.u32 %v3756_v51, %v2764_v52 }
  0x42   :  { %493 = vmatpush.bf16.msrb.mxu0 %v2811_v20  ;;  %506 = vmatpush.bf16.msrb.mxu1 %v2815_v21  ;;  %v2770_v56 = vld [vmem:[#allocation11 + $0x68] sm:$0xf]  ;;  %124 = vst [vmem:[#allocation2 + $0x4] sm:$0x1] %v123_v48  ;;  %v3757_v62 = vld [vmem:[#allocation11 + $0x6c] sm:$0xf] }
  0x43   :  { %519 = vmatpush.bf16.msrb.mxu2 %v2819_v24  ;;  %532 = vmatpush.bf16.msrb.mxu3 %v2823_v25  ;;  %v131_v57 = vld [vmem:[%s130_s26] sm:$0x1]  ;;  %v2772_v63 = vld [vmem:[#allocation11 + $0x78] sm:$0xf0]  ;;  %128 = vst [vmem:[#allocation2 + $0x5] sm:$0x1] %v127_v53  ;;  %v2771_v4 = vor.u32 %v3759_v60, %v2770_v56 }
  0x44   :  { %v135_v61 = vld [vmem:[%s134_s27] sm:$0x1]  ;;  %132 = vst [vmem:[#allocation2 + $0x6] sm:$0x1] %v131_v57  ;;  %v2746_v2 = vld [vmem:[#allocation11 + $0x40] sm:$0xf]  ;;  %v2775_v5 = vor.u32 %v3757_v62, %v2772_v63 }
  0x45   :  { %v3754_v3 = vld [vmem:[#allocation11 + $0x4c] sm:$0xf0]  ;;  %136 = vst [vmem:[#allocation2 + $0x7] sm:$0x1] %v135_v61  ;;  %v3752_v6 = vld [vmem:[#allocation11 + $0x44] sm:$0xf] }
  0x46   :  { %494 = vmatpush.bf16.msrb.mxu0 %v2795_v36  ;;  %507 = vmatpush.bf16.msrb.mxu1 %v2799_v37  ;;  %v2748_v7 = vld [vmem:[#allocation11 + $0x50] sm:$0xf0]  ;;  %v2754_v8 = vld [vmem:[#allocation11 + $0x48] sm:$0xf]  ;;  %v3755_v9 = vld [vmem:[#allocation11 + $0x54] sm:$0xf0]  ;;  %v2747_v12 = vor.u32 %v3754_v3, %v2746_v2 }
  0x47   :  { %520 = vmatpush.bf16.msrb.mxu2 %v2803_v43  ;;  %533 = vmatpush.bf16.msrb.mxu3 %v2807_v44  ;;  %v3753_v10 = vld [vmem:[#allocation11 + $0x4c] sm:$0xf]  ;;  %v2756_v11 = vld [vmem:[#allocation11 + $0x58] sm:$0xf0]  ;;  %v2751_v13 = vor.u32 %v3752_v6, %v2748_v7  ;;  %v2730_v14 = vld [vmem:[#allocation11 + $0x20] sm:$0xf]  ;;  %v2755_v16 = vor.u32 %v3755_v9, %v2754_v8 }
  0x48   :  { %v3750_v15 = vld [vmem:[#allocation11 + $0x2c] sm:$0xf0]  ;;  %v2759_v17 = vor.u32 %v3753_v10, %v2756_v11  ;;  %v3748_v18 = vld [vmem:[#allocation11 + $0x24] sm:$0xf]  ;;  %v2732_v19 = vld [vmem:[#allocation11 + $0x30] sm:$0xf0] }
  0x49   :  { %v2738_v20 = vld [vmem:[#allocation11 + $0x28] sm:$0xf]  ;;  %v3751_v21 = vld [vmem:[#allocation11 + $0x34] sm:$0xf0]  ;;  %v3749_v22 = vld [vmem:[#allocation11 + $0x2c] sm:$0xf]  ;;  %v2731_v25 = vor.u32 %v3750_v15, %v2730_v14  ;;  %v2735_v26 = vor.u32 %v3748_v18, %v2732_v19 }
  0x4a   :  { %495 = vmatpush.bf16.msrb.mxu0 %v2779_v54  ;;  %508 = vmatpush.bf16.msrb.mxu1 %v2783_v55  ;;  %v2740_v23 = vld [vmem:[#allocation11 + $0x38] sm:$0xf0]  ;;  %v2714_v27 = vld [vmem:[#allocation11] sm:$0xf]  ;;  %v3746_v28 = vld [vmem:[#allocation11 + $0xc] sm:$0xf0]  ;;  %v2739_v29 = vor.u32 %v3751_v21, %v2738_v20 }
  0x4b   :  { %521 = vmatpush.bf16.msrb.mxu2 %v2787_v58  ;;  %534 = vmatpush.bf16.msrb.mxu3 %v2791_v59  ;;  %v2743_v30 = vor.u32 %v3749_v22, %v2740_v23  ;;  %v3744_v31 = vld [vmem:[#allocation11 + $0x4] sm:$0xf]  ;;  %v2716_v32 = vld [vmem:[#allocation11 + $0x10] sm:$0xf0]  ;;  %v2722_v33 = vld [vmem:[#allocation11 + $0x8] sm:$0xf]  ;;  %v2715_v37 = vor.u32 %v3746_v28, %v2714_v27 }
  0x4c   :  { %v137_v24 = vld [vmem:[#allocation2] sm:$0xff]  ;;  %v3747_v34 = vld [vmem:[#allocation11 + $0x14] sm:$0xf0]  ;;  %v2724_v36 = vld [vmem:[#allocation11 + $0x18] sm:$0xf0]  ;;  %v2719_v38 = vor.u32 %v3744_v31, %v2716_v32 }
  0x4d   :  { %228 = vmatmul.f32.vlgmr.msra.gmra.mxu0 %v137_v24  ;;  %248 = vmatmul.f32.vlgmr.msra.gmra.mxu1 %v137_v24  ;;  %v3745_v35 = vld [vmem:[#allocation11 + $0xc] sm:$0xf]  ;;  %v296_v39 = vld [vmem:[%s4441_s5] sm:$0x1]  ;;  %v2723_v40 = vor.u32 %v3747_v34, %v2722_v33  ;;  %v202_v43 = vld [vmem:[#allocation12] sm:$0xf] }
  0x4e   :  { %496 = vmatpush.bf16.msrb.mxu0 %v2763_v0  ;;  %509 = vmatpush.bf16.msrb.mxu1 %v2767_v1  ;;  %v2727_v41 = vor.u32 %v3745_v35, %v2724_v36  ;;  %v299_v42 = vpack.c.bf16 %v296_v39, %v296_v39  ;;  %v204_v44 = vperm.slane %v202_v43, 0  ;;  %v205_v45 = vperm.slane %v202_v43, 1  ;;  %v2955_v50 = vld [vmem:[#allocation11 + $0xe0] sm:$0xf]  ;;  %v3806_v51 = vld [vmem:[#allocation11 + $0xec] sm:$0xf0] }
  0x4f   :  { %522 = vmatpush.bf16.msrb.mxu2 %v2771_v4  ;;  %535 = vmatpush.bf16.msrb.mxu3 %v2775_v5  ;;  %v3804_v52 = vld [vmem:[#allocation11 + $0xe4] sm:$0xf]  ;;  %v206_v53 = vperm.slane %v202_v43, 2  ;;  %v2956_v54 = vor.u32 %v3806_v51, %v2955_v50  ;;  %v2957_v55 = vld [vmem:[#allocation11 + $0xf0] sm:$0xf0]  ;;  %v207_v57 = vperm.slane %v202_v43, 3 }
  0x50   :  { %268 = vmatmul.f32.vlgmr.msra.gmra.mxu2 %v137_v24  ;;  %288 = vmatmul.f32.vlgmr.msra.gmra.mxu3 %v137_v24  ;;  %v2963_v56 = vld [vmem:[#allocation11 + $0xe8] sm:$0xf]  ;;  %v2960_v58 = vor.u32 %v3804_v52, %v2957_v55  ;;  %v3807_v59 = vld [vmem:[#allocation11 + $0xf4] sm:$0xf0]  ;;  %v3805_v60 = vld [vmem:[#allocation11 + $0xec] sm:$0xf] }
  0x51   :  { %v2964_v61 = vor.u32 %v3807_v59, %v2963_v56  ;;  %v2965_v62 = vld [vmem:[#allocation11 + $0xf8] sm:$0xf0]  ;;  %v2939_v63 = vld [vmem:[#allocation11 + $0xc0] sm:$0xf]  ;;  %v3802_v0 = vld [vmem:[#allocation11 + $0xcc] sm:$0xf0] }
  0x52   :  { %497 = vmatpush.bf16.msrb.mxu0 %v2747_v12  ;;  %510 = vmatpush.bf16.msrb.mxu1 %v2751_v13  ;;  %v2968_v1 = vor.u32 %v3805_v60, %v2965_v62  ;;  %v2940_v2 = vor.u32 %v3802_v0, %v2939_v63  ;;  %v3800_v3 = vld [vmem:[#allocation11 + $0xc4] sm:$0xf]  ;;  %v2941_v4 = vld [vmem:[#allocation11 + $0xd0] sm:$0xf0]  ;;  %v2947_v5 = vld [vmem:[#allocation11 + $0xc8] sm:$0xf] }
  0x53   :  { %523 = vmatpush.bf16.msrb.mxu2 %v2755_v16  ;;  %536 = vmatpush.bf16.msrb.mxu3 %v2759_v17  ;;  %v2944_v8 = vor.u32 %v3800_v3, %v2941_v4  ;;  %v3803_v9 = vld [vmem:[#allocation11 + $0xd4] sm:$0xf0]  ;;  %v3801_v10 = vld [vmem:[#allocation11 + $0xcc] sm:$0xf]  ;;  %v2949_v11 = vld [vmem:[#allocation11 + $0xd8] sm:$0xf0] }
  0x54   :  { %v2948_v14 = vor.u32 %v3803_v9, %v2947_v5  ;;  %v2952_v15 = vor.u32 %v3801_v10, %v2949_v11  ;;  %v2923_v16 = vld [vmem:[#allocation11 + $0xa0] sm:$0xf]  ;;  %v3798_v17 = vld [vmem:[#allocation11 + $0xac] sm:$0xf0]  ;;  %v3796_v18 = vld [vmem:[#allocation11 + $0xa4] sm:$0xf] }
  0x55   :  { %v2924_v21 = vor.u32 %v3798_v17, %v2923_v16  ;;  %v2925_v22 = vld [vmem:[#allocation11 + $0xb0] sm:$0xf0]  ;;  %v2931_v23 = vld [vmem:[#allocation11 + $0xa8] sm:$0xf]  ;;  %v3799_v24 = vld [vmem:[#allocation11 + $0xb4] sm:$0xf0] }
  0x56   :  { %498 = vmatpush.bf16.msrb.mxu0 %v2731_v25  ;;  %511 = vmatpush.bf16.msrb.mxu1 %v2735_v26  ;;  %v2928_v25 = vor.u32 %v3796_v18, %v2925_v22  ;;  %v3797_v26 = vld [vmem:[#allocation11 + $0xac] sm:$0xf]  ;;  %v2933_v27 = vld [vmem:[#allocation11 + $0xb8] sm:$0xf0]  ;;  %v3794_v31 = vld [vmem:[#allocation11 + $0x8c] sm:$0xf0] }
  0x57   :  { %524 = vmatpush.bf16.msrb.mxu2 %v2739_v29  ;;  %537 = vmatpush.bf16.msrb.mxu3 %v2743_v30  ;;  %v2932_v29 = vor.u32 %v3799_v24, %v2931_v23  ;;  %v2907_v30 = vld [vmem:[#allocation11 + $0x80] sm:$0xf]  ;;  %v2936_v32 = vor.u32 %v3797_v26, %v2933_v27  ;;  %v3792_v33 = vld [vmem:[#allocation11 + $0x84] sm:$0xf]  ;;  %v2909_v34 = vld [vmem:[#allocation11 + $0x90] sm:$0xf0] }
  0x58   :  { %v2915_v35 = vld [vmem:[#allocation11 + $0x88] sm:$0xf]  ;;  %v2908_v36 = vor.u32 %v3794_v31, %v2907_v30  ;;  %v2917_v39 = vld [vmem:[#allocation11 + $0x98] sm:$0xf0]  ;;  %v3791_v50 = vld [vmem:[#allocation11 + $0x74] sm:$0xf0] }
  0x59   :  { %v2875_v60 = vld [vmem:[#allocation11 + $0x40] sm:$0xf]  ;;  %v3784_v62 = vld [vmem:[#allocation11 + $0x44] sm:$0xf]  ;;  %v2883_v5 = vld [vmem:[#allocation11 + $0x48] sm:$0xf] }
  0x5a   :  { %499 = vmatpush.bf16.msrb.mxu0 %v2715_v37  ;;  %512 = vmatpush.bf16.msrb.mxu1 %v2719_v38  ;;  %v3795_v37 = vld [vmem:[#allocation11 + $0x94] sm:$0xf0]  ;;  %v3793_v38 = vld [vmem:[#allocation11 + $0x8c] sm:$0xf]  ;;  %v2885_v10 = vld [vmem:[#allocation11 + $0x58] sm:$0xf0] }
  0x5b   :  { %525 = vmatpush.bf16.msrb.mxu2 %v2723_v40  ;;  %538 = vmatpush.bf16.msrb.mxu3 %v2727_v41  ;;  %v2912_v40 = vor.u32 %v3792_v33, %v2909_v34  ;;  %v2891_v41 = vld [vmem:[#allocation11 + $0x60] sm:$0xf]  ;;  %v2916_v43 = vor.u32 %v3795_v37, %v2915_v35  ;;  %v3785_v9 = vld [vmem:[#allocation11 + $0x4c] sm:$0xf]  ;;  %v3780_v16 = vld [vmem:[#allocation11 + $0x24] sm:$0xf] }
  0x5c   :  { %v2861_v17 = vld [vmem:[#allocation11 + $0x30] sm:$0xf0]  ;;  %v3783_v22 = vld [vmem:[#allocation11 + $0x34] sm:$0xf0]  ;;  %v3781_v24 = vld [vmem:[#allocation11 + $0x2c] sm:$0xf] }
  0x5d   :  { %500 = vmatmul.bf16.vlgmr.msrb.gmra.mxu0 %v299_v42  ;;  %513 = vmatmul.bf16.vlgmr.msrb.gmra.mxu1 %v299_v42  ;;  %v2864_v26 = vor.u32 %v3780_v16, %v2861_v17  ;;  %v2843_v27 = vld [vmem:[#allocation11] sm:$0xf]  ;;  %v3776_v30 = vld [vmem:[#allocation11 + $0x4] sm:$0xf]  ;;  %v2845_v31 = vld [vmem:[#allocation11 + $0x10] sm:$0xf0] }
  0x5e   :  { %526 = vmatmul.bf16.vlgmr.msrb.gmra.mxu2 %v299_v42  ;;  %539 = vmatmul.bf16.vlgmr.msrb.gmra.mxu3 %v299_v42  ;;  %v3790_v42 = vld [vmem:[#allocation11 + $0x6c] sm:$0xf0]  ;;  %v2851_v33 = vld [vmem:[#allocation11 + $0x8] sm:$0xf]  ;;  %v3779_v34 = vld [vmem:[#allocation11 + $0x14] sm:$0xf0] }
  0x5f   :  { %788 = vmatpush.bf16.msra.mxu0 %v2956_v54  ;;  %801 = vmatpush.bf16.msra.mxu1 %v2960_v58  ;;  %v2892_v56 = vor.u32 %v3790_v42, %v2891_v41  ;;  %v2901_v58 = vld [vmem:[#allocation11 + $0x78] sm:$0xf0] }
  0x60   :  { %814 = vmatpush.bf16.msra.mxu2 %v2964_v61  ;;  %827 = vmatpush.bf16.msra.mxu3 %v2968_v1  ;;  %v3786_v61 = vld [vmem:[#allocation11 + $0x4c] sm:$0xf0]  ;;  %v2853_v37 = vld [vmem:[#allocation11 + $0x18] sm:$0xf0] }
  0x63   :  { %789 = vmatpush.bf16.msra.mxu0 %v2940_v2  ;;  %802 = vmatpush.bf16.msra.mxu1 %v2944_v8  ;;  %v2877_v2 = vld [vmem:[#allocation11 + $0x50] sm:$0xf0]  ;;  %v2876_v8 = vor.u32 %v3786_v61, %v2875_v60 }
  0x64   :  { %815 = vmatpush.bf16.msra.mxu2 %v2948_v14  ;;  %828 = vmatpush.bf16.msra.mxu3 %v2952_v15  ;;  %v2880_v11 = vor.u32 %v3784_v62, %v2877_v2  ;;  %v3836_v2 = vld [vmem:[#allocation11 + $0xe4] sm:$0xf] }
  0x67   :  { %790 = vmatpush.bf16.msra.mxu0 %v2924_v21  ;;  %803 = vmatpush.bf16.msra.mxu1 %v2928_v25  ;;  %v2867_v21 = vld [vmem:[#allocation11 + $0x28] sm:$0xf]  ;;  %v2869_v25 = vld [vmem:[#allocation11 + $0x38] sm:$0xf0] }
  0x68   :  { %816 = vmatpush.bf16.msra.mxu2 %v2932_v29  ;;  %829 = vmatpush.bf16.msra.mxu3 %v2936_v32  ;;  %v2868_v29 = vor.u32 %v3783_v22, %v2867_v21  ;;  %v2872_v32 = vor.u32 %v3781_v24, %v2869_v25  ;;  %v3078_v22 = vld [vmem:[#allocation11 + $0xd8] sm:$0xf0]  ;;  %v3830_v24 = vld [vmem:[#allocation11 + $0xac] sm:$0xf0] }
  0x6b   :  { %791 = vmatpush.bf16.msra.mxu0 %v2908_v36  ;;  %804 = vmatpush.bf16.msra.mxu1 %v2912_v40  ;;  %v3777_v36 = vld [vmem:[#allocation11 + $0xc] sm:$0xf]  ;;  %v2852_v40 = vor.u32 %v3779_v34, %v2851_v33  ;;  %v3062_v34 = vld [vmem:[#allocation11 + $0xb8] sm:$0xf0] }
  0x6c   :  { %817 = vmatpush.bf16.msra.mxu2 %v2916_v43  ;;  %v2856_v42 = vor.u32 %v3777_v36, %v2853_v37  ;;  %v3829_v33 = vld [vmem:[#allocation11 + $0xac] sm:$0xf]  ;;  %v3036_v37 = vld [vmem:[#allocation11 + $0x80] sm:$0xf] }
  0x6f   :  { %792 = vmatpush.bf16.msra.mxu0 %v2892_v56 }
  0x73   :  { %793 = vmatpush.bf16.msra.mxu0 %v2876_v8 }
  0xca   :  { %v229_v46 = vpop.f32.mrf.mxu0  ;;  %v249_v47 = vpop.f32.mrf.mxu1 }
  0xcb   :  { %v230_v48 = vadd.f32 %v229_v46, %v204_v44  ;;  %v250_v49 = vadd.f32 %v249_v47, %v205_v45  ;;  %v3788_v44 = vld [vmem:[#allocation11 + $0x64] sm:$0xf]  ;;  %v2893_v45 = vld [vmem:[#allocation11 + $0x70] sm:$0xf0] }
  0xcc   :  { %v2896_v59 = vor.u32 %v3788_v44, %v2893_v45 }
  0xcd   :  { %292 = vst [vmem:[#allocation3] sm:$0xff] %v230_v48  ;;  %v2920_v48 = vor.u32 %v3793_v38, %v2917_v39  ;;  %v2848_v38 = vor.u32 %v3776_v30, %v2845_v31 }
  0xce   :  { %293 = vst [vmem:[#allocation3 + $0x8] sm:$0xff] %v250_v49  ;;  %v2899_v49 = vld [vmem:[#allocation11 + $0x68] sm:$0xf]  ;;  %805 = vmatpush.bf16.msra.mxu1 %v2896_v59 }
  0xcf   :  { %v2900_v1 = vor.u32 %v3791_v50, %v2899_v49  ;;  %830 = vmatpush.bf16.msra.mxu3 %v2920_v48 }
  0xd1   :  { %818 = vmatpush.bf16.msra.mxu2 %v2900_v1  ;;  %v3838_v1 = vld [vmem:[#allocation11 + $0xec] sm:$0xf0] }
  0xd2   :  { %806 = vmatpush.bf16.msra.mxu1 %v2880_v11  ;;  %v3068_v11 = vld [vmem:[#allocation11 + $0xc0] sm:$0xf] }
  0xd3   :  { %v269_v6 = vpop.f32.mrf.mxu2  ;;  %v289_v7 = vpop.f32.mrf.mxu3 }
  0xd4   :  { %v270_v12 = vadd.f32 %v269_v6, %v206_v53  ;;  %v290_v13 = vadd.f32 %v289_v7, %v207_v57  ;;  %v3789_v57 = vld [vmem:[#allocation11 + $0x6c] sm:$0xf]  ;;  %v3787_v6 = vld [vmem:[#allocation11 + $0x54] sm:$0xf0] }
  0xd5   :  { %v2904_v4 = vor.u32 %v3789_v57, %v2901_v58  ;;  %v2884_v15 = vor.u32 %v3787_v6, %v2883_v5  ;;  %v3092_v5 = vld [vmem:[#allocation11 + $0xe8] sm:$0xf]  ;;  %v3839_v6 = vld [vmem:[#allocation11 + $0xf4] sm:$0xf0] }
  0xd6   :  { %294 = vst [vmem:[#allocation3 + $0x10] sm:$0xff] %v270_v12  ;;  %v2859_v12 = vld [vmem:[#allocation11 + $0x20] sm:$0xf]  ;;  %807 = vmatpush.bf16.msra.mxu1 %v2864_v26  ;;  %v3093_v8 = vor.u32 %v3839_v6, %v3092_v5  ;;  %v3828_v26 = vld [vmem:[#allocation11 + $0xa4] sm:$0xf] }
  0xd7   :  { %295 = vst [vmem:[#allocation3 + $0x18] sm:$0xff] %v290_v13  ;;  %v3782_v13 = vld [vmem:[#allocation11 + $0x2c] sm:$0xf0]  ;;  %831 = vmatpush.bf16.msra.mxu3 %v2904_v4  ;;  %819 = vmatpush.bf16.msra.mxu2 %v2884_v15  ;;  %v3086_v4 = vld [vmem:[#allocation11 + $0xf0] sm:$0xf0] }
  0xd8   :  { %v2860_v23 = vor.u32 %v3782_v13, %v2859_v12  ;;  %v3834_v13 = vld [vmem:[#allocation11 + $0xcc] sm:$0xf0]  ;;  %v3070_v15 = vld [vmem:[#allocation11 + $0xd0] sm:$0xf0]  ;;  %v3004_v6 = vld [vmem:[#allocation11 + $0x40] sm:$0xf] }
  0xd9   :  { %v3069_v16 = vor.u32 %v3834_v13, %v3068_v11  ;;  %v3012_v13 = vld [vmem:[#allocation11 + $0x48] sm:$0xf] }
  0xda   :  { %v501_v19 = vpop.f32.mrf.mxu0  ;;  %v514_v20 = vpop.f32.mrf.mxu1  ;;  %794 = vmatpush.bf16.msra.mxu0 %v2860_v23  ;;  %808 = vmatpush.bf16.msra.mxu1 %v2848_v38  ;;  %v3052_v23 = vld [vmem:[#allocation11 + $0xa0] sm:$0xf]  ;;  %v3826_v38 = vld [vmem:[#allocation11 + $0x8c] sm:$0xf0] }
  0xdb   :  { %v548_v28 = vrot.slane %v514_v20, 7  ;;  %v2888_v20 = vor.u32 %v3785_v9, %v2885_v10  ;;  %820 = vmatpush.bf16.msra.mxu2 %v2868_v29  ;;  %v3837_v9 = vld [vmem:[#allocation11 + $0xec] sm:$0xf]  ;;  %v3094_v10 = vld [vmem:[#allocation11 + $0xf8] sm:$0xf0]  ;;  %v3053_v31 = vor.u32 %v3830_v24, %v3052_v23 }
  0xdc   :  { %v3097_v12 = vor.u32 %v3837_v9, %v3094_v10  ;;  %v3814_v23 = vld [vmem:[#allocation11 + $0x2c] sm:$0xf0]  ;;  %v3812_v24 = vld [vmem:[#allocation11 + $0x24] sm:$0xf] }
  0xdd   :  { %v552_v51 = vsel %vm551_vm0, %v501_v19, %v548_v28  ;;  %v3778_v28 = vld [vmem:[#allocation11 + $0xc] sm:$0xf0]  ;;  %832 = vmatpush.bf16.msra.mxu3 %v2888_v20  ;;  %v3833_v20 = vld [vmem:[#allocation11 + $0xcc] sm:$0xf] }
  0xde   :  { %v298_v63 = vld [vmem:[#allocation3] ss:$8 sm:$0xf]  ;;  %v2844_v35 = vor.u32 %v3778_v28, %v2843_v27  ;;  %v3081_v25 = vor.u32 %v3833_v20, %v3078_v22  ;;  %v3054_v27 = vld [vmem:[#allocation11 + $0xb0] sm:$0xf0] }
  0xdf   :  { %821 = vmatpush.bf16.msra.mxu2 %v2852_v40  ;;  %v3060_v28 = vld [vmem:[#allocation11 + $0xa8] sm:$0xf]  ;;  %v3824_v40 = vld [vmem:[#allocation11 + $0x84] sm:$0xf]  ;;  %v2988_v20 = vld [vmem:[#allocation11 + $0x20] sm:$0xf] }
  0xe0   :  { %795 = vmatpush.bf16.msra.mxu0 %v2844_v35  ;;  %v3057_v35 = vor.u32 %v3828_v26, %v3054_v27 }
  0xe1   :  { %v527_v46 = vpop.f32.mrf.mxu2  ;;  %v540_v47 = vpop.f32.mrf.mxu3  ;;  %833 = vmatpush.bf16.msra.mxu3 %v2872_v32  ;;  %v3831_v32 = vld [vmem:[#allocation11 + $0xb4] sm:$0xf0] }
  0xe2   :  { %v549_v52 = vrot.slane %v527_v46, 6  ;;  %v550_v53 = vrot.slane %v540_v47, 5  ;;  %v503_v54 = vpop.f32.mrf.mxu0  ;;  %v516_v55 = vpop.f32.mrf.mxu1  ;;  %v3061_v36 = vor.u32 %v3831_v32, %v3060_v28  ;;  %v2996_v28 = vld [vmem:[#allocation11 + $0x28] sm:$0xf]  ;;  %v3813_v32 = vld [vmem:[#allocation11 + $0x2c] sm:$0xf] }
  0xe3   :  { %1107 = vmatpush.bf16.msrb.mxu2 %v3093_v8  ;;  %v3816_v8 = vld [vmem:[#allocation11 + $0x44] sm:$0xf] }
  0xe4   :  { %v554_v0 = vsel %vm553_vm1, %v549_v52, %v550_v53  ;;  %v297_v53 = vld [vmem:[%s4442_s6] sm:$0x1]  ;;  %s4281_s6 = smov [#allocation14]  }
  0xe5   :  { %v556_v3 = vsel %vm555_vm2, %v552_v51, %v554_v0  ;;  %834 = vmatpush.bf16.msra.mxu3 %v2856_v42  ;;  %v3084_v0 = vld [vmem:[#allocation11 + $0xe0] sm:$0xf]  ;;  %v3044_v42 = vld [vmem:[#allocation11 + $0x88] sm:$0xf]  ;;  %s2651_s30 = sshll.u32 %s4281_s6, 4  ;;  %s2652_s30 = int_to_ptr.vmem [resolvable:$true] %s2651_s30 }
  0xe6   :  { %v558_v7 = vadd.f32 %v556_v3, %v298_v63  ;;  %v3085_v3 = vor.u32 %v3838_v1, %v3084_v0 }
  0xe8   :  { %v2840_v14 = vmul.f32 -1.442695, %v558_v7  ;;  %v579_v45 = vrot.slane %v558_v7, 2  ;;  %v3089_v7 = vor.u32 %v3836_v2, %v3086_v4  ;;  %1081 = vmatpush.bf16.msrb.mxu0 %v3085_v3  ;;  %v594_v3 = vld [vmem:[#allocation3 + $0x1] ss:$8 sm:$0xf] }
  0xe9   :  { %v529_v18 = vpop.f32.mrf.mxu2  ;;  %v542_v19 = vpop.f32.mrf.mxu3  ;;  %1120 = vmatpush.bf16.msrb.mxu3 %v3097_v12  ;;  %v3006_v12 = vld [vmem:[#allocation11 + $0x50] sm:$0xf0] }
  0xea   :  { %4014 = vpow2.f32 %v2840_v14  ;;  %v3832_v14 = vld [vmem:[#allocation11 + $0xc4] sm:$0xf]  ;;  %1094 = vmatpush.bf16.msrb.mxu1 %v3089_v7  ;;  %v3076_v18 = vld [vmem:[#allocation11 + $0xc8] sm:$0xf]  ;;  %v3835_v19 = vld [vmem:[#allocation11 + $0xd4] sm:$0xf0] }
  0xeb   :  { %v3073_v17 = vor.u32 %v3832_v14, %v3070_v15  ;;  %v3077_v21 = vor.u32 %v3835_v19, %v3076_v18  ;;  %v3818_v7 = vld [vmem:[#allocation11 + $0x4c] sm:$0xf0]  ;;  %v3819_v14 = vld [vmem:[#allocation11 + $0x54] sm:$0xf0] }
  0xec   :  { %1082 = vmatpush.bf16.msrb.mxu0 %v3069_v16  ;;  %v3817_v16 = vld [vmem:[#allocation11 + $0x4c] sm:$0xf]  ;;  %v3005_v19 = vor.u32 %v3818_v7, %v3004_v6  ;;  %v3013_v22 = vor.u32 %v3819_v14, %v3012_v13  ;;  %v3215_v13 = vld [vmem:[#allocation11 + $0xf0] sm:$0xf0]  ;;  %v3871_v14 = vld [vmem:[#allocation11 + $0xf4] sm:$0xf0] }
  0xed   :  { %1108 = vmatpush.bf16.msrb.mxu2 %v3077_v21  ;;  %1121 = vmatpush.bf16.msrb.mxu3 %v3081_v25  ;;  %v3009_v21 = vor.u32 %v3816_v8, %v3006_v12  ;;  %v2990_v25 = vld [vmem:[#allocation11 + $0x30] sm:$0xf0] }
  0xee   :  { %1095 = vmatpush.bf16.msrb.mxu1 %v3073_v17  ;;  %v3014_v17 = vld [vmem:[#allocation11 + $0x58] sm:$0xf0] }
  0xef   :  { %v3017_v27 = vor.u32 %v3817_v16, %v3014_v17  ;;  %v3869_v17 = vld [vmem:[#allocation11 + $0xec] sm:$0xf] }
  0xf0   :  { %v4015_v39 = vpop.eup %4014  ;;  %1083 = vmatpush.bf16.msrb.mxu0 %v3053_v31 }
  0xf1   :  { %v562_v41 = vadd.f32 1.0, %v4015_v39  ;;  %v3065_v39 = vor.u32 %v3829_v33, %v3062_v34  ;;  %1109 = vmatpush.bf16.msrb.mxu2 %v3061_v36  ;;  %v2998_v33 = vld [vmem:[#allocation11 + $0x38] sm:$0xf0]  ;;  %v2989_v34 = vor.u32 %v3814_v23, %v2988_v20  ;;  %v3199_v23 = vld [vmem:[#allocation11 + $0xd0] sm:$0xf0] }
  0xf2   :  { %1096 = vmatpush.bf16.msrb.mxu1 %v3057_v35  ;;  %v2993_v35 = vor.u32 %v3812_v24, %v2990_v25 }
  0xf3   :  { %4016 = vrcp.f32 %v562_v41  ;;  %v574_v47 = vand.u32 2147483648, %v562_v41  ;;  %v572_v49 = vand.u32 2147483647, %v562_v41  ;;  %vm568_vm4 = vweird.f32 %v562_v41  ;;  %1122 = vmatpush.bf16.msrb.mxu3 %v3065_v39  ;;  %v3808_v39 = vld [vmem:[#allocation11 + $0x4] sm:$0xf] }
  0xf4   :  { %4018 = vtanh.f32 %v579_v45  ;;  %v3046_v45 = vld [vmem:[#allocation11 + $0x98] sm:$0xf0] }
  0xf5   :  { %v575_v51 = vor.u32 1.1754944e-38, %v574_v47  ;;  %vm573_vm6 = vcmp.eq.f32.partialorder %v572_v49, 8.507059e+37  ;;  %v3037_v47 = vor.u32 %v3826_v38, %v3036_v37  ;;  %v2972_v37 = vld [vmem:[#allocation11] sm:$0xf]  ;;  %v3810_v38 = vld [vmem:[#allocation11 + $0xc] sm:$0xf0] }
  0xf7   :  { %1084 = vmatpush.bf16.msrb.mxu0 %v3037_v47 }
  0xf9   :  { %v4017_v43 = vpop.eup %4016 }
  0xfa   :  { %v564_v44 = vmul.f32 %v4017_v43, %v562_v41  ;;  %vm569_vm3 = vweird.f32 %v4017_v43  ;;  %v4019_v56 = vpop.eup %4018  ;;  %v3038_v41 = vld [vmem:[#allocation11 + $0x90] sm:$0xf0] }
  0xfb   :  { %vm570_vm5 = vmor %vm568_vm4, %vm569_vm3 }
  0xfc   :  { %v565_v46 = vsub.f32 1.0, %v564_v44  ;;  %v3825_v44 = vld [vmem:[#allocation11 + $0x8c] sm:$0xf] }
  0xfe   :  { %v566_v48 = vmul.f32 %v4017_v43, %v565_v46 }
 0x100   :  { %v567_v50 = vadd.f32 %v4017_v43, %v566_v48  ;;  %v3041_v48 = vor.u32 %v3824_v40, %v3038_v41  ;;  %v3001_v40 = vor.u32 %v3813_v32, %v2998_v33  ;;  %v2974_v41 = vld [vmem:[#allocation11 + $0x10] sm:$0xf0]  ;;  %v3862_v32 = vld [vmem:[#allocation11 + $0xac] sm:$0xf0] }
 0x101   :  { %v2977_v47 = vor.u32 %v3808_v39, %v2974_v41  ;;  %v3861_v41 = vld [vmem:[#allocation11 + $0xac] sm:$0xf] }
 0x102   :  { %v571_v52 = vsel %vm570_vm5, %v4017_v43, %v567_v50  ;;  %v3827_v43 = vld [vmem:[#allocation11 + $0x94] sm:$0xf0]  ;;  %v3020_v50 = vld [vmem:[#allocation11 + $0x60] sm:$0xf]  ;;  %1097 = vmatpush.bf16.msrb.mxu1 %v3041_v48 }
 0x103   :  { %v576_v54 = vsel %vm573_vm6, %v575_v51, %v571_v52  ;;  %v3045_v49 = vor.u32 %v3827_v43, %v3044_v42  ;;  %v3822_v51 = vld [vmem:[#allocation11 + $0x6c] sm:$0xf0]  ;;  %v3820_v52 = vld [vmem:[#allocation11 + $0x64] sm:$0xf]  ;;  %v2980_v42 = vld [vmem:[#allocation11 + $0x8] sm:$0xf] }
 0x104   :  { %v583_v55 = vrot.slane %v576_v54, 1  ;;  %v586_v58 = vmul.f32 %v4019_v56, %v576_v54  ;;  %v589_v60 = vrot.slane %v576_v54, 3  ;;  %v3022_v54 = vld [vmem:[#allocation11 + $0x70] sm:$0xf0]  ;;  %v3823_v56 = vld [vmem:[#allocation11 + $0x74] sm:$0xf0]  ;;  %v3021_v2 = vor.u32 %v3822_v51, %v3020_v50 }
 0x105   :  { %1110 = vmatpush.bf16.msrb.mxu2 %v3045_v49  ;;  %v3025_v4 = vor.u32 %v3820_v52, %v3022_v54  ;;  %v3811_v43 = vld [vmem:[#allocation11 + $0x14] sm:$0xf0] }
 0x106   :  { %v585_v57 = vmul.f32 %v583_v55, %v297_v53  ;;  %v3049_v53 = vor.u32 %v3825_v44, %v3046_v45  ;;  %v3028_v55 = vld [vmem:[#allocation11 + $0x68] sm:$0xf]  ;;  %1085 = vmatpush.bf16.msrb.mxu0 %v3021_v2  ;;  %v3809_v44 = vld [vmem:[#allocation11 + $0xc] sm:$0xf]  ;;  %v2982_v45 = vld [vmem:[#allocation11 + $0x18] sm:$0xf0]  ;;  %v2981_v48 = vor.u32 %v3811_v43, %v2980_v42 }
 0x107   :  { %v3029_v5 = vor.u32 %v3823_v56, %v3028_v55  ;;  %1098 = vmatpush.bf16.msrb.mxu1 %v3025_v4  ;;  %v2985_v50 = vor.u32 %v3809_v44, %v2982_v45  ;;  %v3191_v42 = vld [vmem:[#allocation11 + $0xb8] sm:$0xf0]  ;;  %v3165_v45 = vld [vmem:[#allocation11 + $0x80] sm:$0xf] }
 0x108   :  { %v4382_v59 = vadd.f32 %v586_v58, %v585_v57  ;;  %1123 = vmatpush.bf16.msrb.mxu3 %v3049_v53 }
 0x109   :  { %1111 = vmatpush.bf16.msrb.mxu2 %v3029_v5 }
 0x10a   :  { %4020 = vtanh.f32 %v4382_v59  ;;  %1086 = vmatpush.bf16.msrb.mxu0 %v3005_v19  ;;  %v3197_v19 = vld [vmem:[#allocation11 + $0xc0] sm:$0xf] }
 0x10b   :  { %1099 = vmatpush.bf16.msrb.mxu1 %v3009_v21  ;;  %v3866_v21 = vld [vmem:[#allocation11 + $0xcc] sm:$0xf0] }
 0x10c   :  { %v3198_v24 = vor.u32 %v3866_v21, %v3197_v19  ;;  %v3141_v21 = vld [vmem:[#allocation11 + $0x48] sm:$0xf] }
 0x10d   :  { %1112 = vmatpush.bf16.msrb.mxu2 %v3013_v22  ;;  %v3864_v22 = vld [vmem:[#allocation11 + $0xc4] sm:$0xf] }
 0x10e   :  { %1087 = vmatpush.bf16.msrb.mxu0 %v2989_v34  ;;  %v3202_v25 = vor.u32 %v3864_v22, %v3199_v23  ;;  %v3860_v34 = vld [vmem:[#allocation11 + $0xa4] sm:$0xf]  ;;  %v3851_v22 = vld [vmem:[#allocation11 + $0x54] sm:$0xf0] }
 0x10f   :  { %1100 = vmatpush.bf16.msrb.mxu1 %v2993_v35  ;;  %v3183_v35 = vld [vmem:[#allocation11 + $0xb0] sm:$0xf0] }
 0x110   :  { %v4021_v61 = vpop.eup %4020  ;;  %v3186_v43 = vor.u32 %v3860_v34, %v3183_v35 }
 0x111   :  { %v591_v62 = vmul.f32 %v4021_v61, %v589_v60  ;;  %v3821_v60 = vld [vmem:[#allocation11 + $0x6c] sm:$0xf]  ;;  %v3030_v61 = vld [vmem:[#allocation11 + $0x78] sm:$0xf0] }
 0x112   :  { %v3033_v11 = vor.u32 %v3821_v60, %v3030_v61 }
 0x113   :  { %592 = vst [vmem:[#allocation14] sm:$0x1] %v591_v62  ;;  %v595_v63 = vpack.c.bf16 %v591_v62, %v591_v62  ;;  %1101 = vmatpush.bf16.msrb.mxu1 %v2977_v47  ;;  %v3194_v47 = vor.u32 %v3861_v41, %v3191_v42  ;;  %v3127_v41 = vld [vmem:[#allocation11 + $0x38] sm:$0xf0] }
 0x114   :  { %1124 = vmatpush.bf16.msrb.mxu3 %v3033_v11  ;;  %v3868_v11 = vld [vmem:[#allocation11 + $0xe4] sm:$0xf] }
 0x115   :  { %796 = vmatmul.bf16.vlgmr.msra.gmra.mxu0 %v595_v63  ;;  %809 = vmatmul.bf16.vlgmr.msra.gmra.mxu1 %v595_v63 }
 0x116   :  { %822 = vmatmul.bf16.vlgmr.msra.gmra.mxu2 %v595_v63  ;;  %835 = vmatmul.bf16.vlgmr.msra.gmra.mxu3 %v595_v63 }
 0x118   :  { %1125 = vmatpush.bf16.msrb.mxu3 %v3017_v27  ;;  %v3867_v27 = vld [vmem:[#allocation11 + $0xd4] sm:$0xf0] }
 0x11c   :  { %1126 = vmatpush.bf16.msrb.mxu3 %v3001_v40  ;;  %v3863_v40 = vld [vmem:[#allocation11 + $0xb4] sm:$0xf0] }
 0x120   :  { %1127 = vmatpush.bf16.msrb.mxu3 %v2985_v50  ;;  %v3173_v50 = vld [vmem:[#allocation11 + $0x88] sm:$0xf] }
 0x192   :  { %v797_v29 = vpop.f32.mrf.mxu0  ;;  %v810_v30 = vpop.f32.mrf.mxu1 }
 0x193   :  { %v844_v46 = vrot.slane %v810_v30, 7 }
 0x195   :  { %v847_v9 = vsel %vm551_vm0, %v797_v29, %v844_v46  ;;  %v3815_v29 = vld [vmem:[#allocation11 + $0x34] sm:$0xf0]  ;;  %v2973_v46 = vor.u32 %v3810_v38, %v2972_v37 }
 0x196   :  { %v2997_v36 = vor.u32 %v3815_v29, %v2996_v28  ;;  %v3865_v28 = vld [vmem:[#allocation11 + $0xcc] sm:$0xf] }
 0x197   :  { %1088 = vmatpush.bf16.msrb.mxu0 %v2973_v46  ;;  %v3858_v46 = vld [vmem:[#allocation11 + $0x8c] sm:$0xf0] }
 0x198   :  { %1113 = vmatpush.bf16.msrb.mxu2 %v2997_v36  ;;  %v3189_v36 = vld [vmem:[#allocation11 + $0xa8] sm:$0xf] }
 0x199   :  { %v823_v57 = vpop.f32.mrf.mxu2  ;;  %v836_v58 = vpop.f32.mrf.mxu3  ;;  %v3190_v44 = vor.u32 %v3863_v40, %v3189_v36  ;;  %v3125_v36 = vld [vmem:[#allocation11 + $0x28] sm:$0xf]  ;;  %v3845_v40 = vld [vmem:[#allocation11 + $0x2c] sm:$0xf] }
 0x19a   :  { %v845_v62 = vrot.slane %v823_v57, 6  ;;  %v846_v63 = vrot.slane %v836_v58, 5  ;;  %v799_v0 = vpop.f32.mrf.mxu0  ;;  %v812_v1 = vpop.f32.mrf.mxu1 }
 0x19c   :  { %v848_v10 = vsel %vm553_vm1, %v845_v62, %v846_v63  ;;  %1114 = vmatpush.bf16.msrb.mxu2 %v2981_v48  ;;  %v3856_v48 = vld [vmem:[#allocation11 + $0x84] sm:$0xf] }
 0x19d   :  { %v849_v15 = vsel %vm555_vm2, %v847_v9, %v848_v10  ;;  %v3213_v9 = vld [vmem:[#allocation11 + $0xe0] sm:$0xf]  ;;  %v3870_v10 = vld [vmem:[#allocation11 + $0xec] sm:$0xf0] }
 0x19e   :  { %v851_v18 = vadd.f32 %v849_v15, %v594_v3  ;;  %v3214_v12 = vor.u32 %v3870_v10, %v3213_v9  ;;  %v3218_v15 = vor.u32 %v3868_v11, %v3215_v13 }
 0x1a0   :  { %v2969_v26 = vmul.f32 -1.442695, %v851_v18  ;;  %v872_v54 = vrot.slane %v851_v18, 2  ;;  %v3223_v18 = vld [vmem:[#allocation11 + $0xf8] sm:$0xf0]  ;;  %1374 = vmatpush.bf16.msra.mxu0 %v3214_v12  ;;  %1387 = vmatpush.bf16.msra.mxu1 %v3218_v15 }
 0x1a1   :  { %v825_v30 = vpop.f32.mrf.mxu2  ;;  %v838_v31 = vpop.f32.mrf.mxu3  ;;  %v3226_v20 = vor.u32 %v3869_v17, %v3223_v18  ;;  %v887_v12 = vld [vmem:[#allocation3 + $0x2] ss:$8 sm:$0xf] }
 0x1a2   :  { %4022 = vpow2.f32 %v2969_v26  ;;  %v3205_v26 = vld [vmem:[#allocation11 + $0xc8] sm:$0xf]  ;;  %v3207_v30 = vld [vmem:[#allocation11 + $0xd8] sm:$0xf0]  ;;  %v3181_v31 = vld [vmem:[#allocation11 + $0xa0] sm:$0xf] }
 0x1a3   :  { %1413 = vmatpush.bf16.msra.mxu3 %v3226_v20  ;;  %v3206_v29 = vor.u32 %v3867_v27, %v3205_v26  ;;  %v3210_v33 = vor.u32 %v3865_v28, %v3207_v30  ;;  %v3182_v39 = vor.u32 %v3862_v32, %v3181_v31  ;;  %v3850_v15 = vld [vmem:[#allocation11 + $0x4c] sm:$0xf0]  ;;  %v3135_v20 = vld [vmem:[#allocation11 + $0x50] sm:$0xf0]  ;;  %v3117_v28 = vld [vmem:[#allocation11 + $0x20] sm:$0xf]  ;;  %v3142_v30 = vor.u32 %v3851_v22, %v3141_v21 }
 0x1a4   :  { %1375 = vmatpush.bf16.msra.mxu0 %v3198_v24  ;;  %1388 = vmatpush.bf16.msra.mxu1 %v3202_v25  ;;  %v3849_v24 = vld [vmem:[#allocation11 + $0x4c] sm:$0xf]  ;;  %v3143_v25 = vld [vmem:[#allocation11 + $0x58] sm:$0xf0]  ;;  %v3846_v31 = vld [vmem:[#allocation11 + $0x2c] sm:$0xf0] }
 0x1a5   :  { %v3844_v32 = vld [vmem:[#allocation11 + $0x24] sm:$0xf]  ;;  %v3146_v35 = vor.u32 %v3849_v24, %v3143_v25  ;;  %v3118_v42 = vor.u32 %v3846_v31, %v3117_v28  ;;  %v3344_v21 = vld [vmem:[#allocation11 + $0xf0] sm:$0xf0]  ;;  %v3903_v22 = vld [vmem:[#allocation11 + $0xf4] sm:$0xf0] }
 0x1a6   :  { %v3901_v25 = vld [vmem:[#allocation11 + $0xec] sm:$0xf]  ;;  %v3328_v31 = vld [vmem:[#allocation11 + $0xd0] sm:$0xf0] }
 0x1a7   :  { %1414 = vmatpush.bf16.msra.mxu3 %v3210_v33  ;;  %v3119_v33 = vld [vmem:[#allocation11 + $0x30] sm:$0xf0] }
 0x1a8   :  { %v4023_v49 = vpop.eup %4022  ;;  %1376 = vmatpush.bf16.msra.mxu0 %v3182_v39  ;;  %1389 = vmatpush.bf16.msra.mxu1 %v3186_v43  ;;  %v3122_v43 = vor.u32 %v3844_v32, %v3119_v33 }
 0x1a9   :  { %v855_v51 = vadd.f32 1.0, %v4023_v49  ;;  %v3167_v49 = vld [vmem:[#allocation11 + $0x90] sm:$0xf0] }
 0x1ab   :  { %4024 = vrcp.f32 %v855_v51  ;;  %v867_v56 = vand.u32 2147483648, %v855_v51  ;;  %v865_v58 = vand.u32 2147483647, %v855_v51  ;;  %vm861_vm8 = vweird.f32 %v855_v51  ;;  %1415 = vmatpush.bf16.msra.mxu3 %v3194_v47  ;;  %v3840_v47 = vld [vmem:[#allocation11 + $0x4] sm:$0xf] }
 0x1ac   :  { %4026 = vtanh.f32 %v872_v54 }
 0x1ad   :  { %v868_v61 = vor.u32 1.1754944e-38, %v867_v56  ;;  %vm866_vm10 = vcmp.eq.f32.partialorder %v865_v58, 8.507059e+37  ;;  %v3170_v56 = vor.u32 %v3856_v48, %v3167_v49  ;;  %v3149_v58 = vld [vmem:[#allocation11 + $0x60] sm:$0xf]  ;;  %v3130_v48 = vor.u32 %v3845_v40, %v3127_v41  ;;  %v3103_v49 = vld [vmem:[#allocation11 + $0x10] sm:$0xf0] }
 0x1ae   :  { %v3894_v40 = vld [vmem:[#allocation11 + $0xac] sm:$0xf0] }
 0x1af   :  { %1390 = vmatpush.bf16.msra.mxu1 %v3170_v56 }
 0x1b1   :  { %v4025_v52 = vpop.eup %4024 }
 0x1b2   :  { %v857_v53 = vmul.f32 %v4025_v52, %v855_v51  ;;  %vm862_vm7 = vweird.f32 %v4025_v52  ;;  %v4027_v1 = vpop.eup %4026  ;;  %v3859_v51 = vld [vmem:[#allocation11 + $0x94] sm:$0xf0] }
 0x1b3   :  { %vm863_vm9 = vmor %vm861_vm8, %vm862_vm7 }
 0x1b4   :  { %v858_v55 = vsub.f32 1.0, %v857_v53  ;;  %v3175_v53 = vld [vmem:[#allocation11 + $0x98] sm:$0xf0] }
 0x1b6   :  { %v859_v57 = vmul.f32 %v4025_v52, %v858_v55  ;;  %v3166_v55 = vor.u32 %v3858_v46, %v3165_v45  ;;  %v3101_v45 = vld [vmem:[#allocation11] sm:$0xf]  ;;  %v3842_v46 = vld [vmem:[#allocation11 + $0xc] sm:$0xf0] }
 0x1b8   :  { %v860_v60 = vadd.f32 %v4025_v52, %v859_v57  ;;  %v3174_v57 = vor.u32 %v3859_v51, %v3173_v50  ;;  %1377 = vmatpush.bf16.msra.mxu0 %v3166_v55  ;;  %v3109_v50 = vld [vmem:[#allocation11 + $0x8] sm:$0xf]  ;;  %v3843_v51 = vld [vmem:[#allocation11 + $0x14] sm:$0xf0]  ;;  %v3106_v55 = vor.u32 %v3840_v47, %v3103_v49  ;;  %v3893_v49 = vld [vmem:[#allocation11 + $0xac] sm:$0xf] }
 0x1b9   :  { %v3110_v56 = vor.u32 %v3843_v51, %v3109_v50  ;;  %v3320_v50 = vld [vmem:[#allocation11 + $0xb8] sm:$0xf0] }
 0x1ba   :  { %v864_v62 = vsel %vm863_vm9, %v4025_v52, %v860_v60  ;;  %v3857_v52 = vld [vmem:[#allocation11 + $0x8c] sm:$0xf]  ;;  %v3854_v60 = vld [vmem:[#allocation11 + $0x6c] sm:$0xf0] }
 0x1bb   :  { %v869_v63 = vsel %vm866_vm10, %v868_v61, %v864_v62  ;;  %v3852_v61 = vld [vmem:[#allocation11 + $0x64] sm:$0xf]  ;;  %v3178_v62 = vor.u32 %v3857_v52, %v3175_v53  ;;  %v3150_v11 = vor.u32 %v3854_v60, %v3149_v58  ;;  %v3841_v52 = vld [vmem:[#allocation11 + $0xc] sm:$0xf]  ;;  %v3111_v53 = vld [vmem:[#allocation11 + $0x18] sm:$0xf0] }
 0x1bc   :  { %v876_v0 = vrot.slane %v869_v63, 1  ;;  %v879_v3 = vmul.f32 %v4027_v1, %v869_v63  ;;  %v882_v5 = vrot.slane %v869_v63, 3  ;;  %v3151_v63 = vld [vmem:[#allocation11 + $0x70] sm:$0xf0]  ;;  %v3855_v1 = vld [vmem:[#allocation11 + $0x74] sm:$0xf0]  ;;  %v3114_v58 = vor.u32 %v3841_v52, %v3111_v53 }
 0x1bd   :  { %v3154_v13 = vor.u32 %v3852_v61, %v3151_v63  ;;  %1416 = vmatpush.bf16.msra.mxu3 %v3178_v62  ;;  %1378 = vmatpush.bf16.msra.mxu0 %v3150_v11  ;;  %v3294_v53 = vld [vmem:[#allocation11 + $0x80] sm:$0xf] }
 0x1be   :  { %v878_v2 = vmul.f32 %v876_v0, %v4382_v59  ;;  %v3221_v59 = vld [vmem:[#allocation11 + $0xe8] sm:$0xf] }
 0x1bf   :  { %v3222_v16 = vor.u32 %v3871_v14, %v3221_v59  ;;  %v3157_v0 = vld [vmem:[#allocation11 + $0x68] sm:$0xf]  ;;  %v3133_v14 = vld [vmem:[#allocation11 + $0x40] sm:$0xf]  ;;  %1391 = vmatpush.bf16.msra.mxu1 %v3154_v13 }
 0x1c0   :  { %v4389_v4 = vadd.f32 %v879_v3, %v878_v2  ;;  %v3158_v59 = vor.u32 %v3855_v1, %v3157_v0  ;;  %v3134_v27 = vor.u32 %v3850_v15, %v3133_v14 }
 0x1c1   :  { %1400 = vmatpush.bf16.msra.mxu2 %v3222_v16  ;;  %v3848_v16 = vld [vmem:[#allocation11 + $0x44] sm:$0xf] }
 0x1c2   :  { %4028 = vtanh.f32 %v4389_v4  ;;  %1379 = vmatpush.bf16.msra.mxu0 %v3134_v27  ;;  %v3326_v27 = vld [vmem:[#allocation11 + $0xc0] sm:$0xf] }
 0x1c5   :  { %1401 = vmatpush.bf16.msra.mxu2 %v3206_v29  ;;  %v3138_v29 = vor.u32 %v3848_v16, %v3135_v20 }
 0x1c6   :  { %1380 = vmatpush.bf16.msra.mxu0 %v3118_v42  ;;  %v3892_v42 = vld [vmem:[#allocation11 + $0xa4] sm:$0xf] }
 0x1c7   :  { %1392 = vmatpush.bf16.msra.mxu1 %v3138_v29  ;;  %v3898_v29 = vld [vmem:[#allocation11 + $0xcc] sm:$0xf0] }
 0x1c8   :  { %v4029_v6 = vpop.eup %4028  ;;  %v3327_v32 = vor.u32 %v3898_v29, %v3326_v27  ;;  %v3270_v29 = vld [vmem:[#allocation11 + $0x48] sm:$0xf] }
 0x1c9   :  { %v884_v7 = vmul.f32 %v4029_v6, %v882_v5  ;;  %1402 = vmatpush.bf16.msra.mxu2 %v3190_v44  ;;  %v3853_v5 = vld [vmem:[#allocation11 + $0x6c] sm:$0xf]  ;;  %v3159_v6 = vld [vmem:[#allocation11 + $0x78] sm:$0xf0] }
 0x1ca   :  { %v3162_v19 = vor.u32 %v3853_v5, %v3159_v6 }
 0x1cb   :  { %885 = vst [vmem:[#allocation14 + $0x1] sm:$0x1] %v884_v7  ;;  %v888_v8 = vpack.c.bf16 %v884_v7, %v884_v7  ;;  %1393 = vmatpush.bf16.msra.mxu1 %v3122_v43  ;;  %v3312_v43 = vld [vmem:[#allocation11 + $0xb0] sm:$0xf0] }
 0x1cc   :  { %1417 = vmatpush.bf16.msra.mxu3 %v3162_v19  ;;  %v3900_v19 = vld [vmem:[#allocation11 + $0xe4] sm:$0xf]  ;;  %v3315_v51 = vor.u32 %v3892_v42, %v3312_v43 }
 0x1cd   :  { %1089 = vmatmul.bf16.vlgmr.msrb.gmra.mxu0 %v888_v8  ;;  %1102 = vmatmul.bf16.vlgmr.msrb.gmra.mxu1 %v888_v8 }
 0x1ce   :  { %1115 = vmatmul.bf16.vlgmr.msrb.gmra.mxu2 %v888_v8  ;;  %1128 = vmatmul.bf16.vlgmr.msrb.gmra.mxu3 %v888_v8 }
 0x1cf   :  { %1403 = vmatpush.bf16.msra.mxu2 %v3174_v57  ;;  %1394 = vmatpush.bf16.msra.mxu1 %v3106_v55  ;;  %v3323_v55 = vor.u32 %v3893_v49, %v3320_v50  ;;  %v3256_v49 = vld [vmem:[#allocation11 + $0x38] sm:$0xf0] }
 0x1d0   :  { %1418 = vmatpush.bf16.msra.mxu3 %v3146_v35  ;;  %v3899_v35 = vld [vmem:[#allocation11 + $0xd4] sm:$0xf0] }
 0x1d3   :  { %1404 = vmatpush.bf16.msra.mxu2 %v3158_v59 }
 0x1d4   :  { %1419 = vmatpush.bf16.msra.mxu3 %v3130_v48  ;;  %v3895_v48 = vld [vmem:[#allocation11 + $0xb4] sm:$0xf0] }
 0x1d7   :  { %1405 = vmatpush.bf16.msra.mxu2 %v3142_v30  ;;  %v3896_v30 = vld [vmem:[#allocation11 + $0xc4] sm:$0xf] }
 0x1d8   :  { %1420 = vmatpush.bf16.msra.mxu3 %v3114_v58  ;;  %v3331_v33 = vor.u32 %v3896_v30, %v3328_v31  ;;  %v3302_v58 = vld [vmem:[#allocation11 + $0x88] sm:$0xf]  ;;  %v3883_v30 = vld [vmem:[#allocation11 + $0x54] sm:$0xf0] }
 0x24a   :  { %v1090_v37 = vpop.f32.mrf.mxu0  ;;  %v1103_v38 = vpop.f32.mrf.mxu1 }
 0x24b   :  { %v1137_v54 = vrot.slane %v1103_v38, 7 }
 0x24d   :  { %v1140_v17 = vsel %vm551_vm0, %v1090_v37, %v1137_v54  ;;  %v3847_v37 = vld [vmem:[#allocation11 + $0x34] sm:$0xf0]  ;;  %v3102_v54 = vor.u32 %v3842_v46, %v3101_v45 }
 0x24e   :  { %v3126_v44 = vor.u32 %v3847_v37, %v3125_v36  ;;  %v3897_v36 = vld [vmem:[#allocation11 + $0xcc] sm:$0xf] }
 0x24f   :  { %1381 = vmatpush.bf16.msra.mxu0 %v3102_v54  ;;  %v3890_v54 = vld [vmem:[#allocation11 + $0x8c] sm:$0xf0] }
 0x250   :  { %1406 = vmatpush.bf16.msra.mxu2 %v3126_v44  ;;  %v3318_v44 = vld [vmem:[#allocation11 + $0xa8] sm:$0xf] }
 0x251   :  { %v1116_v2 = vpop.f32.mrf.mxu2  ;;  %v1129_v3 = vpop.f32.mrf.mxu3  ;;  %v3319_v52 = vor.u32 %v3895_v48, %v3318_v44  ;;  %v3254_v44 = vld [vmem:[#allocation11 + $0x28] sm:$0xf]  ;;  %v3877_v48 = vld [vmem:[#allocation11 + $0x2c] sm:$0xf] }
 0x252   :  { %v1138_v7 = vrot.slane %v1116_v2, 6  ;;  %v1139_v8 = vrot.slane %v1129_v3, 5  ;;  %v1092_v9 = vpop.f32.mrf.mxu0  ;;  %v1105_v10 = vpop.f32.mrf.mxu1 }
 0x254   :  { %v1141_v18 = vsel %vm553_vm1, %v1138_v7, %v1139_v8  ;;  %1407 = vmatpush.bf16.msra.mxu2 %v3110_v56  ;;  %v3888_v56 = vld [vmem:[#allocation11 + $0x84] sm:$0xf] }
 0x255   :  { %v1142_v23 = vsel %vm555_vm2, %v1140_v17, %v1141_v18  ;;  %v3342_v17 = vld [vmem:[#allocation11 + $0xe0] sm:$0xf]  ;;  %v3902_v18 = vld [vmem:[#allocation11 + $0xec] sm:$0xf0] }
 0x256   :  { %v1144_v26 = vadd.f32 %v1142_v23, %v887_v12  ;;  %v3343_v20 = vor.u32 %v3902_v18, %v3342_v17  ;;  %v3347_v23 = vor.u32 %v3900_v19, %v3344_v21 }
 0x258   :  { %v3098_v34 = vmul.f32 -1.442695, %v1144_v26  ;;  %v1165_v63 = vrot.slane %v1144_v26, 2  ;;  %v3352_v26 = vld [vmem:[#allocation11 + $0xf8] sm:$0xf0]  ;;  %1667 = vmatpush.bf16.msrb.mxu0 %v3343_v20  ;;  %1680 = vmatpush.bf16.msrb.mxu1 %v3347_v23 }
 0x259   :  { %v1118_v38 = vpop.f32.mrf.mxu2  ;;  %v1131_v39 = vpop.f32.mrf.mxu3  ;;  %v3355_v28 = vor.u32 %v3901_v25, %v3352_v26  ;;  %v1180_v20 = vld [vmem:[#allocation3 + $0x3] ss:$8 sm:$0xf] }
 0x25a   :  { %4030 = vpow2.f32 %v3098_v34  ;;  %v3334_v34 = vld [vmem:[#allocation11 + $0xc8] sm:$0xf]  ;;  %v3336_v38 = vld [vmem:[#allocation11 + $0xd8] sm:$0xf0]  ;;  %v3310_v39 = vld [vmem:[#allocation11 + $0xa0] sm:$0xf] }
 0x25b   :  { %1706 = vmatpush.bf16.msrb.mxu3 %v3355_v28  ;;  %v3335_v37 = vor.u32 %v3899_v35, %v3334_v34  ;;  %v3339_v41 = vor.u32 %v3897_v36, %v3336_v38  ;;  %v3311_v47 = vor.u32 %v3894_v40, %v3310_v39  ;;  %v3882_v23 = vld [vmem:[#allocation11 + $0x4c] sm:$0xf0]  ;;  %v3264_v28 = vld [vmem:[#allocation11 + $0x50] sm:$0xf0]  ;;  %v3246_v36 = vld [vmem:[#allocation11 + $0x20] sm:$0xf]  ;;  %v3271_v38 = vor.u32 %v3883_v30, %v3270_v29 }
 0x25c   :  { %1668 = vmatpush.bf16.msrb.mxu0 %v3327_v32  ;;  %1681 = vmatpush.bf16.msrb.mxu1 %v3331_v33  ;;  %v3881_v32 = vld [vmem:[#allocation11 + $0x4c] sm:$0xf]  ;;  %v3272_v33 = vld [vmem:[#allocation11 + $0x58] sm:$0xf0]  ;;  %v3878_v39 = vld [vmem:[#allocation11 + $0x2c] sm:$0xf0] }
 0x25d   :  { %v3876_v40 = vld [vmem:[#allocation11 + $0x24] sm:$0xf]  ;;  %v3275_v43 = vor.u32 %v3881_v32, %v3272_v33  ;;  %v3247_v50 = vor.u32 %v3878_v39, %v3246_v36  ;;  %v3473_v29 = vld [vmem:[#allocation11 + $0xf0] sm:$0xf0]  ;;  %v3935_v30 = vld [vmem:[#allocation11 + $0xf4] sm:$0xf0] }
 0x25e   :  { %v3933_v33 = vld [vmem:[#allocation11 + $0xec] sm:$0xf]  ;;  %v3457_v39 = vld [vmem:[#allocation11 + $0xd0] sm:$0xf0] }
 0x25f   :  { %1707 = vmatpush.bf16.msrb.mxu3 %v3339_v41  ;;  %v3248_v41 = vld [vmem:[#allocation11 + $0x30] sm:$0xf0] }
 0x260   :  { %v4031_v57 = vpop.eup %4030  ;;  %1669 = vmatpush.bf16.msrb.mxu0 %v3311_v47  ;;  %1682 = vmatpush.bf16.msrb.mxu1 %v3315_v51  ;;  %v3251_v51 = vor.u32 %v3876_v40, %v3248_v41 }
 0x261   :  { %v1148_v60 = vadd.f32 1.0, %v4031_v57  ;;  %v3296_v57 = vld [vmem:[#allocation11 + $0x90] sm:$0xf0] }
 0x263   :  { %4032 = vrcp.f32 %v1148_v60  ;;  %v1160_v1 = vand.u32 2147483648, %v1148_v60  ;;  %v1158_v3 = vand.u32 2147483647, %v1148_v60  ;;  %vm1154_vm12 = vweird.f32 %v1148_v60  ;;  %1708 = vmatpush.bf16.msrb.mxu3 %v3323_v55  ;;  %v3872_v55 = vld [vmem:[#allocation11 + $0x4] sm:$0xf] }
 0x264   :  { %4034 = vtanh.f32 %v1165_v63 }
 0x265   :  { %v1161_v6 = vor.u32 1.1754944e-38, %v1160_v1  ;;  %vm1159_vm14 = vcmp.eq.f32.partialorder %v1158_v3, 8.507059e+37  ;;  %v3299_v1 = vor.u32 %v3888_v56, %v3296_v57  ;;  %v3278_v3 = vld [vmem:[#allocation11 + $0x60] sm:$0xf]  ;;  %v3259_v56 = vor.u32 %v3877_v48, %v3256_v49  ;;  %v3232_v57 = vld [vmem:[#allocation11 + $0x10] sm:$0xf0] }
 0x266   :  { %v3926_v48 = vld [vmem:[#allocation11 + $0xac] sm:$0xf0] }
 0x267   :  { %1683 = vmatpush.bf16.msrb.mxu1 %v3299_v1 }
 0x269   :  { %v4033_v61 = vpop.eup %4032 }
 0x26a   :  { %v1150_v62 = vmul.f32 %v4033_v61, %v1148_v60  ;;  %vm1155_vm11 = vweird.f32 %v4033_v61  ;;  %v4035_v10 = vpop.eup %4034  ;;  %v3891_v60 = vld [vmem:[#allocation11 + $0x94] sm:$0xf0] }
 0x26b   :  { %vm1156_vm13 = vmor %vm1154_vm12, %vm1155_vm11 }
 0x26c   :  { %v1151_v0 = vsub.f32 1.0, %v1150_v62  ;;  %v3304_v62 = vld [vmem:[#allocation11 + $0x98] sm:$0xf0] }
 0x26e   :  { %v1152_v2 = vmul.f32 %v4033_v61, %v1151_v0  ;;  %v3295_v0 = vor.u32 %v3890_v54, %v3294_v53  ;;  %v3230_v53 = vld [vmem:[#allocation11] sm:$0xf]  ;;  %v3874_v54 = vld [vmem:[#allocation11 + $0xc] sm:$0xf0] }
 0x270   :  { %v1153_v5 = vadd.f32 %v4033_v61, %v1152_v2  ;;  %v3303_v2 = vor.u32 %v3891_v60, %v3302_v58  ;;  %1670 = vmatpush.bf16.msrb.mxu0 %v3295_v0  ;;  %v3238_v58 = vld [vmem:[#allocation11 + $0x8] sm:$0xf]  ;;  %v3875_v60 = vld [vmem:[#allocation11 + $0x14] sm:$0xf0]  ;;  %v3235_v0 = vor.u32 %v3872_v55, %v3232_v57  ;;  %v3925_v57 = vld [vmem:[#allocation11 + $0xac] sm:$0xf] }
 0x271   :  { %v3239_v1 = vor.u32 %v3875_v60, %v3238_v58  ;;  %v3449_v58 = vld [vmem:[#allocation11 + $0xb8] sm:$0xf0] }
 0x272   :  { %v1157_v7 = vsel %vm1156_vm13, %v4033_v61, %v1153_v5  ;;  %v3889_v61 = vld [vmem:[#allocation11 + $0x8c] sm:$0xf]  ;;  %v3886_v5 = vld [vmem:[#allocation11 + $0x6c] sm:$0xf0] }
 0x273   :  { %v1162_v8 = vsel %vm1159_vm14, %v1161_v6, %v1157_v7  ;;  %v3884_v6 = vld [vmem:[#allocation11 + $0x64] sm:$0xf]  ;;  %v3307_v7 = vor.u32 %v3889_v61, %v3304_v62  ;;  %v3279_v19 = vor.u32 %v3886_v5, %v3278_v3  ;;  %v3873_v61 = vld [vmem:[#allocation11 + $0xc] sm:$0xf]  ;;  %v3240_v62 = vld [vmem:[#allocation11 + $0x18] sm:$0xf0] }
 0x274   :  { %v1169_v9 = vrot.slane %v1162_v8, 1  ;;  %v1172_v12 = vmul.f32 %v4035_v10, %v1162_v8  ;;  %v1175_v59 = vrot.slane %v1162_v8, 3  ;;  %v3280_v8 = vld [vmem:[#allocation11 + $0x70] sm:$0xf0]  ;;  %v3887_v10 = vld [vmem:[#allocation11 + $0x74] sm:$0xf0]  ;;  %v3243_v3 = vor.u32 %v3873_v61, %v3240_v62 }
 0x275   :  { %v3283_v21 = vor.u32 %v3884_v6, %v3280_v8  ;;  %1709 = vmatpush.bf16.msrb.mxu3 %v3307_v7  ;;  %1671 = vmatpush.bf16.msrb.mxu0 %v3279_v19  ;;  %v3423_v62 = vld [vmem:[#allocation11 + $0x80] sm:$0xf] }
 0x276   :  { %v1171_v11 = vmul.f32 %v1169_v9, %v4389_v4  ;;  %v3350_v4 = vld [vmem:[#allocation11 + $0xe8] sm:$0xf] }
 0x277   :  { %v3351_v24 = vor.u32 %v3903_v22, %v3350_v4  ;;  %v3286_v9 = vld [vmem:[#allocation11 + $0x68] sm:$0xf]  ;;  %v3262_v22 = vld [vmem:[#allocation11 + $0x40] sm:$0xf]  ;;  %1684 = vmatpush.bf16.msrb.mxu1 %v3283_v21 }
 0x278   :  { %v4396_v13 = vadd.f32 %v1172_v12, %v1171_v11  ;;  %v3287_v4 = vor.u32 %v3887_v10, %v3286_v9  ;;  %v3263_v35 = vor.u32 %v3882_v23, %v3262_v22 }
 0x279   :  { %1693 = vmatpush.bf16.msrb.mxu2 %v3351_v24  ;;  %v3880_v24 = vld [vmem:[#allocation11 + $0x44] sm:$0xf] }
 0x27a   :  { %4036 = vtanh.f32 %v4396_v13  ;;  %1672 = vmatpush.bf16.msrb.mxu0 %v3263_v35  ;;  %v3455_v35 = vld [vmem:[#allocation11 + $0xc0] sm:$0xf] }
 0x27d   :  { %1694 = vmatpush.bf16.msrb.mxu2 %v3335_v37  ;;  %v3267_v37 = vor.u32 %v3880_v24, %v3264_v28 }
 0x27e   :  { %1673 = vmatpush.bf16.msrb.mxu0 %v3247_v50  ;;  %v3924_v50 = vld [vmem:[#allocation11 + $0xa4] sm:$0xf] }
 0x27f   :  { %1685 = vmatpush.bf16.msrb.mxu1 %v3267_v37  ;;  %v3930_v37 = vld [vmem:[#allocation11 + $0xcc] sm:$0xf0] }
 0x280   :  { %v4037_v14 = vpop.eup %4036  ;;  %v3456_v40 = vor.u32 %v3930_v37, %v3455_v35  ;;  %v3399_v37 = vld [vmem:[#allocation11 + $0x48] sm:$0xf] }
 0x281   :  { %v1177_v15 = vmul.f32 %v4037_v14, %v1175_v59  ;;  %1695 = vmatpush.bf16.msrb.mxu2 %v3319_v52  ;;  %v3885_v59 = vld [vmem:[#allocation11 + $0x6c] sm:$0xf]  ;;  %v3288_v14 = vld [vmem:[#allocation11 + $0x78] sm:$0xf0] }
 0x282   :  { %v3291_v27 = vor.u32 %v3885_v59, %v3288_v14 }
 0x283   :  { %1178 = vst [vmem:[#allocation14 + $0x2] sm:$0x1] %v1177_v15  ;;  %v1181_v16 = vpack.c.bf16 %v1177_v15, %v1177_v15  ;;  %1686 = vmatpush.bf16.msrb.mxu1 %v3251_v51  ;;  %v3441_v51 = vld [vmem:[#allocation11 + $0xb0] sm:$0xf0] }
 0x284   :  { %1710 = vmatpush.bf16.msrb.mxu3 %v3291_v27  ;;  %v3932_v27 = vld [vmem:[#allocation11 + $0xe4] sm:$0xf]  ;;  %v3444_v60 = vor.u32 %v3924_v50, %v3441_v51 }
 0x285   :  { %1382 = vmatmul.bf16.vlgmr.msra.gmra.mxu0 %v1181_v16  ;;  %1395 = vmatmul.bf16.vlgmr.msra.gmra.mxu1 %v1181_v16 }
 0x286   :  { %1408 = vmatmul.bf16.vlgmr.msra.gmra.mxu2 %v1181_v16  ;;  %1421 = vmatmul.bf16.vlgmr.msra.gmra.mxu3 %v1181_v16 }
 0x287   :  { %1696 = vmatpush.bf16.msrb.mxu2 %v3303_v2  ;;  %1687 = vmatpush.bf16.msrb.mxu1 %v3235_v0  ;;  %v3452_v0 = vor.u32 %v3925_v57, %v3449_v58  ;;  %v3385_v57 = vld [vmem:[#allocation11 + $0x38] sm:$0xf0] }
 0x288   :  { %1711 = vmatpush.bf16.msrb.mxu3 %v3275_v43  ;;  %v3931_v43 = vld [vmem:[#allocation11 + $0xd4] sm:$0xf0] }
 0x28b   :  { %1697 = vmatpush.bf16.msrb.mxu2 %v3287_v4 }
 0x28c   :  { %1712 = vmatpush.bf16.msrb.mxu3 %v3259_v56  ;;  %v3927_v56 = vld [vmem:[#allocation11 + $0xb4] sm:$0xf0] }
 0x28f   :  { %1698 = vmatpush.bf16.msrb.mxu2 %v3271_v38  ;;  %v3928_v38 = vld [vmem:[#allocation11 + $0xc4] sm:$0xf] }
 0x290   :  { %1713 = vmatpush.bf16.msrb.mxu3 %v3243_v3  ;;  %v3460_v41 = vor.u32 %v3928_v38, %v3457_v39  ;;  %v3431_v3 = vld [vmem:[#allocation11 + $0x88] sm:$0xf]  ;;  %v3915_v38 = vld [vmem:[#allocation11 + $0x54] sm:$0xf0] }
 0x302   :  { %v1383_v45 = vpop.f32.mrf.mxu0  ;;  %v1396_v46 = vpop.f32.mrf.mxu1 }
 0x303   :  { %v1430_v63 = vrot.slane %v1396_v46, 7 }
 0x305   :  { %v1433_v25 = vsel %vm551_vm0, %v1383_v45, %v1430_v63  ;;  %v3879_v45 = vld [vmem:[#allocation11 + $0x34] sm:$0xf0]  ;;  %v3231_v63 = vor.u32 %v3874_v54, %v3230_v53 }
 0x306   :  { %v3255_v52 = vor.u32 %v3879_v45, %v3254_v44  ;;  %v3929_v44 = vld [vmem:[#allocation11 + $0xcc] sm:$0xf] }
 0x307   :  { %1674 = vmatpush.bf16.msrb.mxu0 %v3231_v63  ;;  %v3922_v63 = vld [vmem:[#allocation11 + $0x8c] sm:$0xf0] }
 0x308   :  { %1699 = vmatpush.bf16.msrb.mxu2 %v3255_v52  ;;  %v3447_v52 = vld [vmem:[#allocation11 + $0xa8] sm:$0xf] }
 0x309   :  { %v1409_v11 = vpop.f32.mrf.mxu2  ;;  %v1422_v12 = vpop.f32.mrf.mxu3  ;;  %v3448_v61 = vor.u32 %v3927_v56, %v3447_v52  ;;  %v3383_v52 = vld [vmem:[#allocation11 + $0x28] sm:$0xf]  ;;  %v3909_v56 = vld [vmem:[#allocation11 + $0x2c] sm:$0xf] }
 0x30a   :  { %v1431_v15 = vrot.slane %v1409_v11, 6  ;;  %v1432_v16 = vrot.slane %v1422_v12, 5  ;;  %v1385_v17 = vpop.f32.mrf.mxu0  ;;  %v1398_v18 = vpop.f32.mrf.mxu1 }
 0x30c   :  { %v1434_v26 = vsel %vm553_vm1, %v1431_v15, %v1432_v16  ;;  %1700 = vmatpush.bf16.msrb.mxu2 %v3239_v1  ;;  %v3920_v1 = vld [vmem:[#allocation11 + $0x84] sm:$0xf] }
 0x30d   :  { %v1435_v31 = vsel %vm555_vm2, %v1433_v25, %v1434_v26  ;;  %v3471_v25 = vld [vmem:[#allocation11 + $0xe0] sm:$0xf]  ;;  %v3934_v26 = vld [vmem:[#allocation11 + $0xec] sm:$0xf0] }
 0x30e   :  { %v1437_v34 = vadd.f32 %v1435_v31, %v1180_v20  ;;  %v3472_v28 = vor.u32 %v3934_v26, %v3471_v25  ;;  %v3476_v31 = vor.u32 %v3932_v27, %v3473_v29 }
 0x310   :  { %v3227_v42 = vmul.f32 -1.442695, %v1437_v34  ;;  %v1458_v8 = vrot.slane %v1437_v34, 2  ;;  %v3481_v34 = vld [vmem:[#allocation11 + $0xf8] sm:$0xf0]  ;;  %1960 = vmatpush.bf16.msra.mxu0 %v3472_v28  ;;  %1973 = vmatpush.bf16.msra.mxu1 %v3476_v31 }
 0x311   :  { %v1411_v46 = vpop.f32.mrf.mxu2  ;;  %v1424_v47 = vpop.f32.mrf.mxu3  ;;  %v3484_v36 = vor.u32 %v3933_v33, %v3481_v34  ;;  %v1473_v28 = vld [vmem:[#allocation3 + $0x4] ss:$8 sm:$0xf]  ;;  %v3914_v31 = vld [vmem:[#allocation11 + $0x4c] sm:$0xf0] }
 0x312   :  { %4038 = vpow2.f32 %v3227_v42  ;;  %v3463_v42 = vld [vmem:[#allocation11 + $0xc8] sm:$0xf]  ;;  %v3465_v46 = vld [vmem:[#allocation11 + $0xd8] sm:$0xf0]  ;;  %v3439_v47 = vld [vmem:[#allocation11 + $0xa0] sm:$0xf] }
 0x313   :  { %1999 = vmatpush.bf16.msra.mxu3 %v3484_v36  ;;  %v3464_v45 = vor.u32 %v3931_v43, %v3463_v42  ;;  %v3468_v49 = vor.u32 %v3929_v44, %v3465_v46  ;;  %v3440_v55 = vor.u32 %v3926_v48, %v3439_v47  ;;  %v3393_v36 = vld [vmem:[#allocation11 + $0x50] sm:$0xf0]  ;;  %v3375_v44 = vld [vmem:[#allocation11 + $0x20] sm:$0xf]  ;;  %v3400_v46 = vor.u32 %v3915_v38, %v3399_v37  ;;  %v3910_v47 = vld [vmem:[#allocation11 + $0x2c] sm:$0xf0] }
 0x314   :  { %1961 = vmatpush.bf16.msra.mxu0 %v3456_v40  ;;  %1974 = vmatpush.bf16.msra.mxu1 %v3460_v41  ;;  %v3913_v40 = vld [vmem:[#allocation11 + $0x4c] sm:$0xf]  ;;  %v3401_v41 = vld [vmem:[#allocation11 + $0x58] sm:$0xf0]  ;;  %v3908_v48 = vld [vmem:[#allocation11 + $0x24] sm:$0xf]  ;;  %v3376_v58 = vor.u32 %v3910_v47, %v3375_v44 }
 0x315   :  { %v3404_v51 = vor.u32 %v3913_v40, %v3401_v41  ;;  %v3602_v37 = vld [vmem:[#allocation11 + $0xf0] sm:$0xf0]  ;;  %v3967_v38 = vld [vmem:[#allocation11 + $0xf4] sm:$0xf0]  ;;  %v3965_v41 = vld [vmem:[#allocation11 + $0xec] sm:$0xf] }
 0x316   :  { %v3586_v47 = vld [vmem:[#allocation11 + $0xd0] sm:$0xf0] }
 0x317   :  { %2000 = vmatpush.bf16.msra.mxu3 %v3468_v49  ;;  %v3377_v49 = vld [vmem:[#allocation11 + $0x30] sm:$0xf0] }
 0x318   :  { %v4039_v2 = vpop.eup %4038  ;;  %1962 = vmatpush.bf16.msra.mxu0 %v3440_v55  ;;  %1975 = vmatpush.bf16.msra.mxu1 %v3444_v60  ;;  %v3380_v60 = vor.u32 %v3908_v48, %v3377_v49 }
 0x319   :  { %v1441_v5 = vadd.f32 1.0, %v4039_v2  ;;  %v3425_v2 = vld [vmem:[#allocation11 + $0x90] sm:$0xf0] }
 0x31b   :  { %4040 = vrcp.f32 %v1441_v5  ;;  %v1453_v10 = vand.u32 2147483648, %v1441_v5  ;;  %v1451_v12 = vand.u32 2147483647, %v1441_v5  ;;  %vm1447_vm3 = vweird.f32 %v1441_v5  ;;  %2001 = vmatpush.bf16.msra.mxu3 %v3452_v0  ;;  %v3904_v0 = vld [vmem:[#allocation11 + $0x4] sm:$0xf] }
 0x31c   :  { %4042 = vtanh.f32 %v1458_v8 }
 0x31d   :  { %v1454_v14 = vor.u32 1.1754944e-38, %v1453_v10  ;;  %vm1452_vm5 = vcmp.eq.f32.partialorder %v1451_v12, 8.507059e+37  ;;  %v3428_v10 = vor.u32 %v3920_v1, %v3425_v2  ;;  %v3407_v12 = vld [vmem:[#allocation11 + $0x60] sm:$0xf]  ;;  %v3388_v1 = vor.u32 %v3909_v56, %v3385_v57  ;;  %v3361_v2 = vld [vmem:[#allocation11 + $0x10] sm:$0xf0] }
 0x31e   :  { %v3958_v56 = vld [vmem:[#allocation11 + $0xac] sm:$0xf0] }
 0x31f   :  { %1976 = vmatpush.bf16.msra.mxu1 %v3428_v10 }
 0x321   :  { %v4041_v6 = vpop.eup %4040 }
 0x322   :  { %v1443_v7 = vmul.f32 %v4041_v6, %v1441_v5  ;;  %vm1448_vm15 = vweird.f32 %v4041_v6  ;;  %v4043_v18 = vpop.eup %4042  ;;  %v3923_v5 = vld [vmem:[#allocation11 + $0x94] sm:$0xf0] }
 0x323   :  { %vm1449_vm4 = vmor %vm1447_vm3, %vm1448_vm15 }
 0x324   :  { %v1444_v9 = vsub.f32 1.0, %v1443_v7  ;;  %v3433_v7 = vld [vmem:[#allocation11 + $0x98] sm:$0xf0] }
 0x326   :  { %v1445_v11 = vmul.f32 %v4041_v6, %v1444_v9  ;;  %v3424_v9 = vor.u32 %v3922_v63, %v3423_v62  ;;  %v3359_v62 = vld [vmem:[#allocation11] sm:$0xf]  ;;  %v3906_v63 = vld [vmem:[#allocation11 + $0xc] sm:$0xf0] }
 0x328   :  { %v1446_v59 = vadd.f32 %v4041_v6, %v1445_v11  ;;  %v3432_v11 = vor.u32 %v3923_v5, %v3431_v3  ;;  %1963 = vmatpush.bf16.msra.mxu0 %v3424_v9  ;;  %v3367_v3 = vld [vmem:[#allocation11 + $0x8] sm:$0xf]  ;;  %v3907_v5 = vld [vmem:[#allocation11 + $0x14] sm:$0xf0]  ;;  %v3364_v9 = vor.u32 %v3904_v0, %v3361_v2  ;;  %v3957_v2 = vld [vmem:[#allocation11 + $0xac] sm:$0xf] }
 0x329   :  { %v3368_v10 = vor.u32 %v3907_v5, %v3367_v3  ;;  %v3578_v3 = vld [vmem:[#allocation11 + $0xb8] sm:$0xf0] }
 0x32a   :  { %v1450_v15 = vsel %vm1449_vm4, %v4041_v6, %v1446_v59  ;;  %v3921_v6 = vld [vmem:[#allocation11 + $0x8c] sm:$0xf]  ;;  %v3918_v59 = vld [vmem:[#allocation11 + $0x6c] sm:$0xf0] }
 0x32b   :  { %v1455_v16 = vsel %vm1452_vm5, %v1454_v14, %v1450_v15  ;;  %v3916_v14 = vld [vmem:[#allocation11 + $0x64] sm:$0xf]  ;;  %v3436_v15 = vor.u32 %v3921_v6, %v3433_v7  ;;  %v3408_v27 = vor.u32 %v3918_v59, %v3407_v12  ;;  %v3905_v6 = vld [vmem:[#allocation11 + $0xc] sm:$0xf]  ;;  %v3369_v7 = vld [vmem:[#allocation11 + $0x18] sm:$0xf0] }
 0x32c   :  { %v1462_v17 = vrot.slane %v1455_v16, 1  ;;  %v1465_v20 = vmul.f32 %v4043_v18, %v1455_v16  ;;  %v1468_v4 = vrot.slane %v1455_v16, 3  ;;  %v3409_v16 = vld [vmem:[#allocation11 + $0x70] sm:$0xf0]  ;;  %v3919_v18 = vld [vmem:[#allocation11 + $0x74] sm:$0xf0]  ;;  %v3372_v12 = vor.u32 %v3905_v6, %v3369_v7 }
 0x32d   :  { %v3412_v29 = vor.u32 %v3916_v14, %v3409_v16  ;;  %2002 = vmatpush.bf16.msra.mxu3 %v3436_v15  ;;  %1964 = vmatpush.bf16.msra.mxu0 %v3408_v27  ;;  %v3552_v7 = vld [vmem:[#allocation11 + $0x80] sm:$0xf] }
 0x32e   :  { %v1464_v19 = vmul.f32 %v1462_v17, %v4396_v13  ;;  %v3479_v13 = vld [vmem:[#allocation11 + $0xe8] sm:$0xf] }
 0x32f   :  { %v3480_v32 = vor.u32 %v3935_v30, %v3479_v13  ;;  %v3415_v17 = vld [vmem:[#allocation11 + $0x68] sm:$0xf]  ;;  %v3391_v30 = vld [vmem:[#allocation11 + $0x40] sm:$0xf]  ;;  %1977 = vmatpush.bf16.msra.mxu1 %v3412_v29 }
 0x330   :  { %v4403_v21 = vadd.f32 %v1465_v20, %v1464_v19  ;;  %v3416_v13 = vor.u32 %v3919_v18, %v3415_v17  ;;  %v3392_v43 = vor.u32 %v3914_v31, %v3391_v30 }
 0x331   :  { %1986 = vmatpush.bf16.msra.mxu2 %v3480_v32  ;;  %v3912_v32 = vld [vmem:[#allocation11 + $0x44] sm:$0xf] }
 0x332   :  { %4044 = vtanh.f32 %v4403_v21  ;;  %1965 = vmatpush.bf16.msra.mxu0 %v3392_v43  ;;  %v3584_v43 = vld [vmem:[#allocation11 + $0xc0] sm:$0xf] }
 0x335   :  { %1987 = vmatpush.bf16.msra.mxu2 %v3464_v45  ;;  %v3396_v45 = vor.u32 %v3912_v32, %v3393_v36 }
 0x336   :  { %1966 = vmatpush.bf16.msra.mxu0 %v3376_v58  ;;  %v3956_v58 = vld [vmem:[#allocation11 + $0xa4] sm:$0xf] }
 0x337   :  { %1978 = vmatpush.bf16.msra.mxu1 %v3396_v45  ;;  %v3962_v45 = vld [vmem:[#allocation11 + $0xcc] sm:$0xf0] }
 0x338   :  { %v4045_v22 = vpop.eup %4044  ;;  %v3585_v48 = vor.u32 %v3962_v45, %v3584_v43  ;;  %v3528_v45 = vld [vmem:[#allocation11 + $0x48] sm:$0xf] }
 0x339   :  { %v1470_v23 = vmul.f32 %v4045_v22, %v1468_v4  ;;  %1988 = vmatpush.bf16.msra.mxu2 %v3448_v61  ;;  %v3917_v4 = vld [vmem:[#allocation11 + $0x6c] sm:$0xf]  ;;  %v3417_v22 = vld [vmem:[#allocation11 + $0x78] sm:$0xf0] }
 0x33a   :  { %v3420_v35 = vor.u32 %v3917_v4, %v3417_v22 }
 0x33b   :  { %1471 = vst [vmem:[#allocation14 + $0x3] sm:$0x1] %v1470_v23  ;;  %v1474_v24 = vpack.c.bf16 %v1470_v23, %v1470_v23  ;;  %1979 = vmatpush.bf16.msra.mxu1 %v3380_v60  ;;  %v3570_v60 = vld [vmem:[#allocation11 + $0xb0] sm:$0xf0] }
 0x33c   :  { %2003 = vmatpush.bf16.msra.mxu3 %v3420_v35  ;;  %v3964_v35 = vld [vmem:[#allocation11 + $0xe4] sm:$0xf]  ;;  %v3573_v5 = vor.u32 %v3956_v58, %v3570_v60 }
 0x33d   :  { %1675 = vmatmul.bf16.vlgmr.msrb.gmra.mxu0 %v1474_v24  ;;  %1688 = vmatmul.bf16.vlgmr.msrb.gmra.mxu1 %v1474_v24 }
 0x33e   :  { %1701 = vmatmul.bf16.vlgmr.msrb.gmra.mxu2 %v1474_v24  ;;  %1714 = vmatmul.bf16.vlgmr.msrb.gmra.mxu3 %v1474_v24 }
 0x33f   :  { %1989 = vmatpush.bf16.msra.mxu2 %v3432_v11  ;;  %1980 = vmatpush.bf16.msra.mxu1 %v3364_v9  ;;  %v3581_v9 = vor.u32 %v3957_v2, %v3578_v3  ;;  %v3514_v2 = vld [vmem:[#allocation11 + $0x38] sm:$0xf0] }
 0x340   :  { %2004 = vmatpush.bf16.msra.mxu3 %v3404_v51  ;;  %v3963_v51 = vld [vmem:[#allocation11 + $0xd4] sm:$0xf0] }
 0x343   :  { %1990 = vmatpush.bf16.msra.mxu2 %v3416_v13 }
 0x344   :  { %2005 = vmatpush.bf16.msra.mxu3 %v3388_v1  ;;  %v3959_v1 = vld [vmem:[#allocation11 + $0xb4] sm:$0xf0] }
 0x347   :  { %1991 = vmatpush.bf16.msra.mxu2 %v3400_v46  ;;  %v3960_v46 = vld [vmem:[#allocation11 + $0xc4] sm:$0xf] }
 0x348   :  { %2006 = vmatpush.bf16.msra.mxu3 %v3372_v12  ;;  %v3589_v49 = vor.u32 %v3960_v46, %v3586_v47  ;;  %v3560_v12 = vld [vmem:[#allocation11 + $0x88] sm:$0xf]  ;;  %v3947_v46 = vld [vmem:[#allocation11 + $0x54] sm:$0xf0] }
 0x3ba   :  { %v1676_v53 = vpop.f32.mrf.mxu0  ;;  %v1689_v54 = vpop.f32.mrf.mxu1 }
 0x3bb   :  { %v1723_v8 = vrot.slane %v1689_v54, 7 }
 0x3bd   :  { %v1726_v33 = vsel %vm551_vm0, %v1676_v53, %v1723_v8  ;;  %v3911_v53 = vld [vmem:[#allocation11 + $0x34] sm:$0xf0]  ;;  %v3360_v8 = vor.u32 %v3906_v63, %v3359_v62 }
 0x3be   :  { %v3384_v61 = vor.u32 %v3911_v53, %v3383_v52  ;;  %v3961_v52 = vld [vmem:[#allocation11 + $0xcc] sm:$0xf] }
 0x3bf   :  { %1967 = vmatpush.bf16.msra.mxu0 %v3360_v8  ;;  %v3954_v8 = vld [vmem:[#allocation11 + $0x8c] sm:$0xf0] }
 0x3c0   :  { %1992 = vmatpush.bf16.msra.mxu2 %v3384_v61  ;;  %v3576_v61 = vld [vmem:[#allocation11 + $0xa8] sm:$0xf] }
 0x3c1   :  { %v1702_v19 = vpop.f32.mrf.mxu2  ;;  %v1715_v20 = vpop.f32.mrf.mxu3  ;;  %v3577_v6 = vor.u32 %v3959_v1, %v3576_v61  ;;  %v3512_v61 = vld [vmem:[#allocation11 + $0x28] sm:$0xf]  ;;  %v3941_v1 = vld [vmem:[#allocation11 + $0x2c] sm:$0xf] }
 0x3c2   :  { %v1724_v23 = vrot.slane %v1702_v19, 6  ;;  %v1725_v24 = vrot.slane %v1715_v20, 5  ;;  %v1678_v25 = vpop.f32.mrf.mxu0  ;;  %v1691_v26 = vpop.f32.mrf.mxu1 }
 0x3c4   :  { %v1727_v34 = vsel %vm553_vm1, %v1724_v23, %v1725_v24  ;;  %1993 = vmatpush.bf16.msra.mxu2 %v3368_v10  ;;  %v3952_v10 = vld [vmem:[#allocation11 + $0x84] sm:$0xf] }
 0x3c5   :  { %v1728_v39 = vsel %vm555_vm2, %v1726_v33, %v1727_v34  ;;  %v3600_v33 = vld [vmem:[#allocation11 + $0xe0] sm:$0xf]  ;;  %v3966_v34 = vld [vmem:[#allocation11 + $0xec] sm:$0xf0] }
 0x3c6   :  { %v1730_v42 = vadd.f32 %v1728_v39, %v1473_v28  ;;  %v3601_v36 = vor.u32 %v3966_v34, %v3600_v33  ;;  %v3605_v39 = vor.u32 %v3964_v35, %v3602_v37 }
 0x3c8   :  { %v3356_v50 = vmul.f32 -1.442695, %v1730_v42  ;;  %v1751_v16 = vrot.slane %v1730_v42, 2  ;;  %v3610_v42 = vld [vmem:[#allocation11 + $0xf8] sm:$0xf0]  ;;  %2253 = vmatpush.bf16.msrb.mxu0 %v3601_v36  ;;  %2266 = vmatpush.bf16.msrb.mxu1 %v3605_v39 }
 0x3c9   :  { %v1704_v54 = vpop.f32.mrf.mxu2  ;;  %v1717_v55 = vpop.f32.mrf.mxu3  ;;  %v3613_v44 = vor.u32 %v3965_v41, %v3610_v42  ;;  %v1766_v36 = vld [vmem:[#allocation3 + $0x5] ss:$8 sm:$0xf]  ;;  %v3946_v39 = vld [vmem:[#allocation11 + $0x4c] sm:$0xf0] }
 0x3ca   :  { %4046 = vpow2.f32 %v3356_v50  ;;  %v3592_v50 = vld [vmem:[#allocation11 + $0xc8] sm:$0xf]  ;;  %v3594_v54 = vld [vmem:[#allocation11 + $0xd8] sm:$0xf0]  ;;  %v3568_v55 = vld [vmem:[#allocation11 + $0xa0] sm:$0xf] }
 0x3cb   :  { %2292 = vmatpush.bf16.msrb.mxu3 %v3613_v44  ;;  %v3593_v53 = vor.u32 %v3963_v51, %v3592_v50  ;;  %v3597_v57 = vor.u32 %v3961_v52, %v3594_v54  ;;  %v3569_v0 = vor.u32 %v3958_v56, %v3568_v55  ;;  %v3522_v44 = vld [vmem:[#allocation11 + $0x50] sm:$0xf0]  ;;  %v3504_v52 = vld [vmem:[#allocation11 + $0x20] sm:$0xf]  ;;  %v3529_v54 = vor.u32 %v3947_v46, %v3528_v45  ;;  %v3942_v55 = vld [vmem:[#allocation11 + $0x2c] sm:$0xf0] }
 0x3cc   :  { %2254 = vmatpush.bf16.msrb.mxu0 %v3585_v48  ;;  %2267 = vmatpush.bf16.msrb.mxu1 %v3589_v49  ;;  %v3945_v48 = vld [vmem:[#allocation11 + $0x4c] sm:$0xf]  ;;  %v3530_v49 = vld [vmem:[#allocation11 + $0x58] sm:$0xf0]  ;;  %v3940_v56 = vld [vmem:[#allocation11 + $0x24] sm:$0xf]  ;;  %v3505_v3 = vor.u32 %v3942_v55, %v3504_v52 }
 0x3cd   :  { %v3533_v60 = vor.u32 %v3945_v48, %v3530_v49  ;;  %v3731_v45 = vld [vmem:[#allocation11 + $0xf0] sm:$0xf0]  ;;  %v3999_v46 = vld [vmem:[#allocation11 + $0xf4] sm:$0xf0]  ;;  %v3997_v49 = vld [vmem:[#allocation11 + $0xec] sm:$0xf] }
 0x3ce   :  { %v3715_v55 = vld [vmem:[#allocation11 + $0xd0] sm:$0xf0] }
 0x3cf   :  { %2293 = vmatpush.bf16.msrb.mxu3 %v3597_v57  ;;  %v3506_v57 = vld [vmem:[#allocation11 + $0x30] sm:$0xf0] }
 0x3d0   :  { %v4047_v11 = vpop.eup %4046  ;;  %2255 = vmatpush.bf16.msrb.mxu0 %v3569_v0  ;;  %2268 = vmatpush.bf16.msrb.mxu1 %v3573_v5  ;;  %v3509_v5 = vor.u32 %v3940_v56, %v3506_v57 }
 0x3d1   :  { %v1734_v59 = vadd.f32 1.0, %v4047_v11  ;;  %v3554_v11 = vld [vmem:[#allocation11 + $0x90] sm:$0xf0] }
 0x3d3   :  { %4048 = vrcp.f32 %v1734_v59  ;;  %v1746_v18 = vand.u32 2147483648, %v1734_v59  ;;  %v1744_v20 = vand.u32 2147483647, %v1734_v59  ;;  %vm1740_vm7 = vweird.f32 %v1734_v59  ;;  %2294 = vmatpush.bf16.msrb.mxu3 %v3581_v9  ;;  %v3936_v9 = vld [vmem:[#allocation11 + $0x4] sm:$0xf] }
 0x3d4   :  { %4050 = vtanh.f32 %v1751_v16 }
 0x3d5   :  { %v1747_v22 = vor.u32 1.1754944e-38, %v1746_v18  ;;  %vm1745_vm9 = vcmp.eq.f32.partialorder %v1744_v20, 8.507059e+37  ;;  %v3557_v18 = vor.u32 %v3952_v10, %v3554_v11  ;;  %v3536_v20 = vld [vmem:[#allocation11 + $0x60] sm:$0xf]  ;;  %v3517_v10 = vor.u32 %v3941_v1, %v3514_v2  ;;  %v3490_v11 = vld [vmem:[#allocation11 + $0x10] sm:$0xf0] }
 0x3d6   :  { %v3990_v1 = vld [vmem:[#allocation11 + $0xac] sm:$0xf0] }
 0x3d7   :  { %2269 = vmatpush.bf16.msrb.mxu1 %v3557_v18 }
 0x3d9   :  { %v4049_v14 = vpop.eup %4048 }
 0x3da   :  { %v1736_v15 = vmul.f32 %v4049_v14, %v1734_v59  ;;  %vm1741_vm6 = vweird.f32 %v4049_v14  ;;  %v4051_v26 = vpop.eup %4050  ;;  %v3955_v59 = vld [vmem:[#allocation11 + $0x94] sm:$0xf0] }
 0x3db   :  { %vm1742_vm8 = vmor %vm1740_vm7, %vm1741_vm6 }
 0x3dc   :  { %v1737_v17 = vsub.f32 1.0, %v1736_v15  ;;  %v3562_v15 = vld [vmem:[#allocation11 + $0x98] sm:$0xf0] }
 0x3de   :  { %v1738_v19 = vmul.f32 %v4049_v14, %v1737_v17  ;;  %v3553_v17 = vor.u32 %v3954_v8, %v3552_v7  ;;  %v3488_v7 = vld [vmem:[#allocation11] sm:$0xf]  ;;  %v3938_v8 = vld [vmem:[#allocation11 + $0xc] sm:$0xf0] }
 0x3e0   :  { %v1739_v4 = vadd.f32 %v4049_v14, %v1738_v19  ;;  %v3561_v19 = vor.u32 %v3955_v59, %v3560_v12  ;;  %2256 = vmatpush.bf16.msrb.mxu0 %v3553_v17  ;;  %v3496_v12 = vld [vmem:[#allocation11 + $0x8] sm:$0xf]  ;;  %v3939_v59 = vld [vmem:[#allocation11 + $0x14] sm:$0xf0]  ;;  %v3493_v17 = vor.u32 %v3936_v9, %v3490_v11  ;;  %v3989_v11 = vld [vmem:[#allocation11 + $0xac] sm:$0xf] }
 0x3e1   :  { %v3497_v18 = vor.u32 %v3939_v59, %v3496_v12  ;;  %v3707_v12 = vld [vmem:[#allocation11 + $0xb8] sm:$0xf0] }
 0x3e2   :  { %v1743_v23 = vsel %vm1742_vm8, %v4049_v14, %v1739_v4  ;;  %v3953_v14 = vld [vmem:[#allocation11 + $0x8c] sm:$0xf]  ;;  %v3950_v4 = vld [vmem:[#allocation11 + $0x6c] sm:$0xf0] }
 0x3e3   :  { %v1748_v24 = vsel %vm1745_vm9, %v1747_v22, %v1743_v23  ;;  %v3948_v22 = vld [vmem:[#allocation11 + $0x64] sm:$0xf]  ;;  %v3565_v23 = vor.u32 %v3953_v14, %v3562_v15  ;;  %v3537_v35 = vor.u32 %v3950_v4, %v3536_v20  ;;  %v3937_v14 = vld [vmem:[#allocation11 + $0xc] sm:$0xf]  ;;  %v3498_v15 = vld [vmem:[#allocation11 + $0x18] sm:$0xf0] }
 0x3e4   :  { %v1755_v25 = vrot.slane %v1748_v24, 1  ;;  %v1758_v28 = vmul.f32 %v4051_v26, %v1748_v24  ;;  %v1761_v13 = vrot.slane %v1748_v24, 3  ;;  %v3538_v24 = vld [vmem:[#allocation11 + $0x70] sm:$0xf0]  ;;  %v3951_v26 = vld [vmem:[#allocation11 + $0x74] sm:$0xf0]  ;;  %v3501_v20 = vor.u32 %v3937_v14, %v3498_v15 }
 0x3e5   :  { %v3541_v37 = vor.u32 %v3948_v22, %v3538_v24  ;;  %2295 = vmatpush.bf16.msrb.mxu3 %v3565_v23  ;;  %2257 = vmatpush.bf16.msrb.mxu0 %v3537_v35  ;;  %v3681_v15 = vld [vmem:[#allocation11 + $0x80] sm:$0xf] }
 0x3e6   :  { %v1757_v27 = vmul.f32 %v1755_v25, %v4403_v21  ;;  %v3608_v21 = vld [vmem:[#allocation11 + $0xe8] sm:$0xf] }
 0x3e7   :  { %v3609_v40 = vor.u32 %v3967_v38, %v3608_v21  ;;  %v3544_v25 = vld [vmem:[#allocation11 + $0x68] sm:$0xf]  ;;  %v3520_v38 = vld [vmem:[#allocation11 + $0x40] sm:$0xf]  ;;  %2270 = vmatpush.bf16.msrb.mxu1 %v3541_v37 }
 0x3e8   :  { %v4410_v29 = vadd.f32 %v1758_v28, %v1757_v27  ;;  %v3545_v21 = vor.u32 %v3951_v26, %v3544_v25  ;;  %v3521_v51 = vor.u32 %v3946_v39, %v3520_v38 }
 0x3e9   :  { %2279 = vmatpush.bf16.msrb.mxu2 %v3609_v40  ;;  %v3944_v40 = vld [vmem:[#allocation11 + $0x44] sm:$0xf] }
 0x3ea   :  { %4052 = vtanh.f32 %v4410_v29  ;;  %2258 = vmatpush.bf16.msrb.mxu0 %v3521_v51  ;;  %v3713_v51 = vld [vmem:[#allocation11 + $0xc0] sm:$0xf] }
 0x3ed   :  { %2280 = vmatpush.bf16.msrb.mxu2 %v3593_v53  ;;  %v3525_v53 = vor.u32 %v3944_v40, %v3522_v44 }
 0x3ee   :  { %2259 = vmatpush.bf16.msrb.mxu0 %v3505_v3  ;;  %v3988_v3 = vld [vmem:[#allocation11 + $0xa4] sm:$0xf] }
 0x3ef   :  { %2271 = vmatpush.bf16.msrb.mxu1 %v3525_v53  ;;  %v3994_v53 = vld [vmem:[#allocation11 + $0xcc] sm:$0xf0] }
 0x3f0   :  { %v4053_v30 = vpop.eup %4052  ;;  %v3714_v56 = vor.u32 %v3994_v53, %v3713_v51  ;;  %v3657_v53 = vld [vmem:[#allocation11 + $0x48] sm:$0xf] }
 0x3f1   :  { %v1763_v31 = vmul.f32 %v4053_v30, %v1761_v13  ;;  %2281 = vmatpush.bf16.msrb.mxu2 %v3577_v6  ;;  %v3949_v13 = vld [vmem:[#allocation11 + $0x6c] sm:$0xf]  ;;  %v3546_v30 = vld [vmem:[#allocation11 + $0x78] sm:$0xf0] }
 0x3f2   :  { %v3549_v43 = vor.u32 %v3949_v13, %v3546_v30 }
 0x3f3   :  { %1764 = vst [vmem:[#allocation14 + $0x4] sm:$0x1] %v1763_v31  ;;  %v1767_v32 = vpack.c.bf16 %v1763_v31, %v1763_v31  ;;  %2272 = vmatpush.bf16.msrb.mxu1 %v3509_v5  ;;  %v3699_v5 = vld [vmem:[#allocation11 + $0xb0] sm:$0xf0] }
 0x3f4   :  { %2296 = vmatpush.bf16.msrb.mxu3 %v3549_v43  ;;  %v3996_v43 = vld [vmem:[#allocation11 + $0xe4] sm:$0xf]  ;;  %v3702_v59 = vor.u32 %v3988_v3, %v3699_v5 }
 0x3f5   :  { %1968 = vmatmul.bf16.vlgmr.msra.gmra.mxu0 %v1767_v32  ;;  %1981 = vmatmul.bf16.vlgmr.msra.gmra.mxu1 %v1767_v32 }
 0x3f6   :  { %1994 = vmatmul.bf16.vlgmr.msra.gmra.mxu2 %v1767_v32  ;;  %2007 = vmatmul.bf16.vlgmr.msra.gmra.mxu3 %v1767_v32 }
 0x3f7   :  { %2282 = vmatpush.bf16.msrb.mxu2 %v3561_v19  ;;  %2273 = vmatpush.bf16.msrb.mxu1 %v3493_v17  ;;  %v3710_v17 = vor.u32 %v3989_v11, %v3707_v12  ;;  %v3643_v11 = vld [vmem:[#allocation11 + $0x38] sm:$0xf0] }
 0x3f8   :  { %2297 = vmatpush.bf16.msrb.mxu3 %v3533_v60  ;;  %v3995_v60 = vld [vmem:[#allocation11 + $0xd4] sm:$0xf0] }
 0x3fb   :  { %2283 = vmatpush.bf16.msrb.mxu2 %v3545_v21 }
 0x3fc   :  { %2298 = vmatpush.bf16.msrb.mxu3 %v3517_v10  ;;  %v3991_v10 = vld [vmem:[#allocation11 + $0xb4] sm:$0xf0] }
 0x3ff   :  { %2284 = vmatpush.bf16.msrb.mxu2 %v3529_v54  ;;  %v3992_v54 = vld [vmem:[#allocation11 + $0xc4] sm:$0xf] }
 0x400   :  { %2299 = vmatpush.bf16.msrb.mxu3 %v3501_v20  ;;  %v3718_v57 = vor.u32 %v3992_v54, %v3715_v55  ;;  %v3689_v20 = vld [vmem:[#allocation11 + $0x88] sm:$0xf]  ;;  %v3979_v54 = vld [vmem:[#allocation11 + $0x54] sm:$0xf0] }
 0x472   :  { %v1969_v62 = vpop.f32.mrf.mxu0  ;;  %v1982_v63 = vpop.f32.mrf.mxu1 }
 0x473   :  { %v2016_v16 = vrot.slane %v1982_v63, 7 }
 0x475   :  { %v2019_v41 = vsel %vm551_vm0, %v1969_v62, %v2016_v16  ;;  %v3943_v62 = vld [vmem:[#allocation11 + $0x34] sm:$0xf0]  ;;  %v3489_v16 = vor.u32 %v3938_v8, %v3488_v7 }
 0x476   :  { %v3513_v6 = vor.u32 %v3943_v62, %v3512_v61  ;;  %v3993_v61 = vld [vmem:[#allocation11 + $0xcc] sm:$0xf] }
 0x477   :  { %2260 = vmatpush.bf16.msrb.mxu0 %v3489_v16  ;;  %v3986_v16 = vld [vmem:[#allocation11 + $0x8c] sm:$0xf0] }
 0x478   :  { %2285 = vmatpush.bf16.msrb.mxu2 %v3513_v6  ;;  %v3705_v6 = vld [vmem:[#allocation11 + $0xa8] sm:$0xf] }
 0x479   :  { %v1995_v27 = vpop.f32.mrf.mxu2  ;;  %v2008_v28 = vpop.f32.mrf.mxu3  ;;  %v3706_v14 = vor.u32 %v3991_v10, %v3705_v6  ;;  %v3641_v6 = vld [vmem:[#allocation11 + $0x28] sm:$0xf]  ;;  %v3973_v10 = vld [vmem:[#allocation11 + $0x2c] sm:$0xf] }
 0x47a   :  { %v2017_v31 = vrot.slane %v1995_v27, 6  ;;  %v2018_v32 = vrot.slane %v2008_v28, 5  ;;  %v1971_v33 = vpop.f32.mrf.mxu0  ;;  %v1984_v34 = vpop.f32.mrf.mxu1 }
 0x47c   :  { %v2020_v42 = vsel %vm553_vm1, %v2017_v31, %v2018_v32  ;;  %2286 = vmatpush.bf16.msrb.mxu2 %v3497_v18  ;;  %v3984_v18 = vld [vmem:[#allocation11 + $0x84] sm:$0xf] }
 0x47d   :  { %v2021_v47 = vsel %vm555_vm2, %v2019_v41, %v2020_v42  ;;  %v3729_v41 = vld [vmem:[#allocation11 + $0xe0] sm:$0xf]  ;;  %v3998_v42 = vld [vmem:[#allocation11 + $0xec] sm:$0xf0] }
 0x47e   :  { %v2023_v50 = vadd.f32 %v2021_v47, %v1766_v36  ;;  %v3730_v44 = vor.u32 %v3998_v42, %v3729_v41  ;;  %v3734_v47 = vor.u32 %v3996_v43, %v3731_v45 }
 0x480   :  { %v3485_v58 = vmul.f32 -1.442695, %v2023_v50  ;;  %v2044_v24 = vrot.slane %v2023_v50, 2  ;;  %v3739_v50 = vld [vmem:[#allocation11 + $0xf8] sm:$0xf0]  ;;  %2546 = vmatpush.bf16.msra.mxu0 %v3730_v44  ;;  %2559 = vmatpush.bf16.msra.mxu1 %v3734_v47 }
 0x481   :  { %v1997_v63 = vpop.f32.mrf.mxu2  ;;  %v2010_v0 = vpop.f32.mrf.mxu3  ;;  %v3742_v52 = vor.u32 %v3997_v49, %v3739_v50  ;;  %v2059_v44 = vld [vmem:[#allocation3 + $0x6] ss:$8 sm:$0xf]  ;;  %v3978_v47 = vld [vmem:[#allocation11 + $0x4c] sm:$0xf0] }
 0x482   :  { %4054 = vpow2.f32 %v3485_v58  ;;  %v3721_v58 = vld [vmem:[#allocation11 + $0xc8] sm:$0xf]  ;;  %v3723_v63 = vld [vmem:[#allocation11 + $0xd8] sm:$0xf0]  ;;  %v3697_v0 = vld [vmem:[#allocation11 + $0xa0] sm:$0xf] }
 0x483   :  { %2585 = vmatpush.bf16.msra.mxu3 %v3742_v52  ;;  %v3722_v62 = vor.u32 %v3995_v60, %v3721_v58  ;;  %v3726_v2 = vor.u32 %v3993_v61, %v3723_v63  ;;  %v3698_v9 = vor.u32 %v3990_v1, %v3697_v0  ;;  %v3651_v52 = vld [vmem:[#allocation11 + $0x50] sm:$0xf0]  ;;  %v3633_v61 = vld [vmem:[#allocation11 + $0x20] sm:$0xf]  ;;  %v3658_v63 = vor.u32 %v3979_v54, %v3657_v53  ;;  %v3974_v0 = vld [vmem:[#allocation11 + $0x2c] sm:$0xf0] }
 0x484   :  { %2547 = vmatpush.bf16.msra.mxu0 %v3714_v56  ;;  %2560 = vmatpush.bf16.msra.mxu1 %v3718_v57  ;;  %v3977_v56 = vld [vmem:[#allocation11 + $0x4c] sm:$0xf]  ;;  %v3659_v57 = vld [vmem:[#allocation11 + $0x58] sm:$0xf0]  ;;  %v3972_v1 = vld [vmem:[#allocation11 + $0x24] sm:$0xf]  ;;  %v3634_v12 = vor.u32 %v3974_v0, %v3633_v61 }
 0x485   :  { %v3662_v5 = vor.u32 %v3977_v56, %v3659_v57 }
 0x487   :  { %2586 = vmatpush.bf16.msra.mxu3 %v3726_v2  ;;  %v3635_v2 = vld [vmem:[#allocation11 + $0x30] sm:$0xf0] }
 0x488   :  { %v4055_v19 = vpop.eup %4054  ;;  %2548 = vmatpush.bf16.msra.mxu0 %v3698_v9  ;;  %2561 = vmatpush.bf16.msra.mxu1 %v3702_v59  ;;  %v3638_v59 = vor.u32 %v3972_v1, %v3635_v2 }
 0x489   :  { %v2027_v4 = vadd.f32 1.0, %v4055_v19  ;;  %v3683_v19 = vld [vmem:[#allocation11 + $0x90] sm:$0xf0] }
 0x48b   :  { %4056 = vrcp.f32 %v2027_v4  ;;  %v2039_v26 = vand.u32 2147483648, %v2027_v4  ;;  %v2037_v28 = vand.u32 2147483647, %v2027_v4  ;;  %vm2033_vm11 = vweird.f32 %v2027_v4  ;;  %2587 = vmatpush.bf16.msra.mxu3 %v3710_v17  ;;  %v3968_v17 = vld [vmem:[#allocation11 + $0x4] sm:$0xf] }
 0x48c   :  { %4058 = vtanh.f32 %v2044_v24 }
 0x48d   :  { %v2040_v30 = vor.u32 1.1754944e-38, %v2039_v26  ;;  %vm2038_vm13 = vcmp.eq.f32.partialorder %v2037_v28, 8.507059e+37  ;;  %v3686_v26 = vor.u32 %v3984_v18, %v3683_v19  ;;  %v3665_v28 = vld [vmem:[#allocation11 + $0x60] sm:$0xf]  ;;  %v3646_v18 = vor.u32 %v3973_v10, %v3643_v11  ;;  %v3619_v19 = vld [vmem:[#allocation11 + $0x10] sm:$0xf0] }
 0x48f   :  { %2562 = vmatpush.bf16.msra.mxu1 %v3686_v26 }
 0x491   :  { %v4057_v22 = vpop.eup %4056 }
 0x492   :  { %v2029_v23 = vmul.f32 %v4057_v22, %v2027_v4  ;;  %vm2034_vm10 = vweird.f32 %v4057_v22  ;;  %v4059_v34 = vpop.eup %4058  ;;  %v3987_v4 = vld [vmem:[#allocation11 + $0x94] sm:$0xf0] }
 0x493   :  { %vm2035_vm12 = vmor %vm2033_vm11, %vm2034_vm10 }
 0x494   :  { %v2030_v25 = vsub.f32 1.0, %v2029_v23  ;;  %v3691_v23 = vld [vmem:[#allocation11 + $0x98] sm:$0xf0] }
 0x496   :  { %v2031_v27 = vmul.f32 %v4057_v22, %v2030_v25  ;;  %v3682_v25 = vor.u32 %v3986_v16, %v3681_v15  ;;  %v3617_v15 = vld [vmem:[#allocation11] sm:$0xf]  ;;  %v3970_v16 = vld [vmem:[#allocation11 + $0xc] sm:$0xf0] }
 0x498   :  { %v2032_v13 = vadd.f32 %v4057_v22, %v2031_v27  ;;  %v3690_v27 = vor.u32 %v3987_v4, %v3689_v20  ;;  %2549 = vmatpush.bf16.msra.mxu0 %v3682_v25  ;;  %v3625_v20 = vld [vmem:[#allocation11 + $0x8] sm:$0xf]  ;;  %v3971_v4 = vld [vmem:[#allocation11 + $0x14] sm:$0xf0]  ;;  %v3622_v25 = vor.u32 %v3968_v17, %v3619_v19 }
 0x499   :  { %v3626_v26 = vor.u32 %v3971_v4, %v3625_v20 }
 0x49a   :  { %v2036_v31 = vsel %vm2035_vm12, %v4057_v22, %v2032_v13  ;;  %v3985_v22 = vld [vmem:[#allocation11 + $0x8c] sm:$0xf]  ;;  %v3982_v13 = vld [vmem:[#allocation11 + $0x6c] sm:$0xf0] }
 0x49b   :  { %v2041_v32 = vsel %vm2038_vm13, %v2040_v30, %v2036_v31  ;;  %v3980_v30 = vld [vmem:[#allocation11 + $0x64] sm:$0xf]  ;;  %v3694_v31 = vor.u32 %v3985_v22, %v3691_v23  ;;  %v3666_v43 = vor.u32 %v3982_v13, %v3665_v28  ;;  %v3969_v22 = vld [vmem:[#allocation11 + $0xc] sm:$0xf]  ;;  %v3627_v23 = vld [vmem:[#allocation11 + $0x18] sm:$0xf0] }
 0x49c   :  { %v2048_v33 = vrot.slane %v2041_v32, 1  ;;  %v2051_v36 = vmul.f32 %v4059_v34, %v2041_v32  ;;  %v2054_v21 = vrot.slane %v2041_v32, 3  ;;  %v3667_v32 = vld [vmem:[#allocation11 + $0x70] sm:$0xf0]  ;;  %v3983_v34 = vld [vmem:[#allocation11 + $0x74] sm:$0xf0]  ;;  %v3630_v28 = vor.u32 %v3969_v22, %v3627_v23 }
 0x49d   :  { %v3670_v45 = vor.u32 %v3980_v30, %v3667_v32  ;;  %2588 = vmatpush.bf16.msra.mxu3 %v3694_v31  ;;  %2550 = vmatpush.bf16.msra.mxu0 %v3666_v43 }
 0x49e   :  { %v2050_v35 = vmul.f32 %v2048_v33, %v4410_v29  ;;  %v3737_v29 = vld [vmem:[#allocation11 + $0xe8] sm:$0xf] }
 0x49f   :  { %v3738_v48 = vor.u32 %v3999_v46, %v3737_v29  ;;  %v3673_v33 = vld [vmem:[#allocation11 + $0x68] sm:$0xf]  ;;  %v3649_v46 = vld [vmem:[#allocation11 + $0x40] sm:$0xf]  ;;  %2563 = vmatpush.bf16.msra.mxu1 %v3670_v45 }
 0x4a0   :  { %v4417_v37 = vadd.f32 %v2051_v36, %v2050_v35  ;;  %v3674_v29 = vor.u32 %v3983_v34, %v3673_v33  ;;  %v3650_v60 = vor.u32 %v3978_v47, %v3649_v46 }
 0x4a1   :  { %2572 = vmatpush.bf16.msra.mxu2 %v3738_v48  ;;  %v3976_v48 = vld [vmem:[#allocation11 + $0x44] sm:$0xf] }
 0x4a2   :  { %4060 = vtanh.f32 %v4417_v37  ;;  %2551 = vmatpush.bf16.msra.mxu0 %v3650_v60  ;;  %v2352_v60 = vld [vmem:[#allocation3 + $0x7] ss:$8 sm:$0xf] }
 0x4a5   :  { %2573 = vmatpush.bf16.msra.mxu2 %v3722_v62  ;;  %v3654_v62 = vor.u32 %v3976_v48, %v3651_v52 }
 0x4a6   :  { %2552 = vmatpush.bf16.msra.mxu0 %v3634_v12 }
 0x4a7   :  { %2564 = vmatpush.bf16.msra.mxu1 %v3654_v62 }
 0x4a8   :  { %v4061_v38 = vpop.eup %4060 }
 0x4a9   :  { %v2056_v39 = vmul.f32 %v4061_v38, %v2054_v21  ;;  %2574 = vmatpush.bf16.msra.mxu2 %v3706_v14  ;;  %v3981_v21 = vld [vmem:[#allocation11 + $0x6c] sm:$0xf]  ;;  %v3675_v38 = vld [vmem:[#allocation11 + $0x78] sm:$0xf0] }
 0x4aa   :  { %v3678_v51 = vor.u32 %v3981_v21, %v3675_v38 }
 0x4ab   :  { %2057 = vst [vmem:[#allocation14 + $0x5] sm:$0x1] %v2056_v39  ;;  %v2060_v40 = vpack.c.bf16 %v2056_v39, %v2056_v39  ;;  %2565 = vmatpush.bf16.msra.mxu1 %v3638_v59 }
 0x4ac   :  { %2589 = vmatpush.bf16.msra.mxu3 %v3678_v51 }
 0x4ad   :  { %2261 = vmatmul.bf16.vlgmr.msrb.gmra.mxu0 %v2060_v40  ;;  %2274 = vmatmul.bf16.vlgmr.msrb.gmra.mxu1 %v2060_v40 }
 0x4ae   :  { %2287 = vmatmul.bf16.vlgmr.msrb.gmra.mxu2 %v2060_v40  ;;  %2300 = vmatmul.bf16.vlgmr.msrb.gmra.mxu3 %v2060_v40 }
 0x4af   :  { %2575 = vmatpush.bf16.msra.mxu2 %v3690_v27  ;;  %2566 = vmatpush.bf16.msra.mxu1 %v3622_v25 }
 0x4b0   :  { %2590 = vmatpush.bf16.msra.mxu3 %v3662_v5 }
 0x4b3   :  { %2576 = vmatpush.bf16.msra.mxu2 %v3674_v29 }
 0x4b4   :  { %2591 = vmatpush.bf16.msra.mxu3 %v3646_v18 }
 0x4b7   :  { %2577 = vmatpush.bf16.msra.mxu2 %v3658_v63 }
 0x4b8   :  { %2592 = vmatpush.bf16.msra.mxu3 %v3630_v28 }
 0x52a   :  { %v2262_v7 = vpop.f32.mrf.mxu0  ;;  %v2275_v8 = vpop.f32.mrf.mxu1 }
 0x52b   :  { %v2309_v24 = vrot.slane %v2275_v8, 7 }
 0x52d   :  { %v2312_v49 = vsel %vm551_vm0, %v2262_v7, %v2309_v24  ;;  %v3975_v7 = vld [vmem:[#allocation11 + $0x34] sm:$0xf0]  ;;  %v3618_v24 = vor.u32 %v3970_v16, %v3617_v15 }
 0x52e   :  { %v3642_v14 = vor.u32 %v3975_v7, %v3641_v6 }
 0x52f   :  { %2553 = vmatpush.bf16.msra.mxu0 %v3618_v24 }
 0x530   :  { %2578 = vmatpush.bf16.msra.mxu2 %v3642_v14 }
 0x531   :  { %v2288_v35 = vpop.f32.mrf.mxu2  ;;  %v2301_v36 = vpop.f32.mrf.mxu3 }
 0x532   :  { %v2310_v39 = vrot.slane %v2288_v35, 6  ;;  %v2311_v40 = vrot.slane %v2301_v36, 5  ;;  %v2264_v41 = vpop.f32.mrf.mxu0  ;;  %v2277_v42 = vpop.f32.mrf.mxu1 }
 0x534   :  { %v2313_v50 = vsel %vm553_vm1, %v2310_v39, %v2311_v40  ;;  %2579 = vmatpush.bf16.msra.mxu2 %v3626_v26 }
 0x535   :  { %v2314_v55 = vsel %vm555_vm2, %v2312_v49, %v2313_v50 }
 0x536   :  { %v2316_v58 = vadd.f32 %v2314_v55, %v2059_v44 }
 0x538   :  { %v3614_v3 = vmul.f32 -1.442695, %v2316_v58  ;;  %v2337_v32 = vrot.slane %v2316_v58, 2 }
 0x539   :  { %v2290_v8 = vpop.f32.mrf.mxu2  ;;  %v2303_v9 = vpop.f32.mrf.mxu3 }
 0x53a   :  { %4062 = vpow2.f32 %v3614_v3 }
 0x540   :  { %v4063_v27 = vpop.eup %4062 }
 0x541   :  { %v2320_v13 = vadd.f32 1.0, %v4063_v27 }
 0x543   :  { %4064 = vrcp.f32 %v2320_v13  ;;  %v2332_v34 = vand.u32 2147483648, %v2320_v13  ;;  %v2330_v36 = vand.u32 2147483647, %v2320_v13  ;;  %vm2326_vm15 = vweird.f32 %v2320_v13 }
 0x544   :  { %4066 = vtanh.f32 %v2337_v32 }
 0x545   :  { %v2333_v38 = vor.u32 1.1754944e-38, %v2332_v34  ;;  %vm2331_vm4 = vcmp.eq.f32.partialorder %v2330_v36, 8.507059e+37 }
 0x549   :  { %v4065_v30 = vpop.eup %4064 }
 0x54a   :  { %v2322_v31 = vmul.f32 %v4065_v30, %v2320_v13  ;;  %vm2327_vm14 = vweird.f32 %v4065_v30  ;;  %v4067_v42 = vpop.eup %4066 }
 0x54b   :  { %vm2328_vm3 = vmor %vm2326_vm15, %vm2327_vm14 }
 0x54c   :  { %v2323_v33 = vsub.f32 1.0, %v2322_v31 }
 0x54e   :  { %v2324_v35 = vmul.f32 %v4065_v30, %v2323_v33 }
 0x550   :  { %v2325_v21 = vadd.f32 %v4065_v30, %v2324_v35 }
 0x552   :  { %v2329_v39 = vsel %vm2328_vm3, %v4065_v30, %v2325_v21 }
 0x553   :  { %v2334_v40 = vsel %vm2331_vm4, %v2333_v38, %v2329_v39 }
 0x554   :  { %v2341_v41 = vrot.slane %v2334_v40, 1  ;;  %v2344_v44 = vmul.f32 %v4067_v42, %v2334_v40  ;;  %v2347_v29 = vrot.slane %v2334_v40, 3 }
 0x556   :  { %v2343_v43 = vmul.f32 %v2341_v41, %v4417_v37 }
 0x558   :  { %v2345_v45 = vadd.f32 %v2344_v44, %v2343_v43 }
 0x55a   :  { %4068 = vtanh.f32 %v2345_v45 }
 0x560   :  { %v4069_v46 = vpop.eup %4068 }
 0x561   :  { %v2349_v47 = vmul.f32 %v4069_v46, %v2347_v29 }
 0x563   :  { %2350 = vst [vmem:[#allocation14 + $0x6] sm:$0x1] %v2349_v47  ;;  %v2353_v48 = vpack.c.bf16 %v2349_v47, %v2349_v47 }
 0x565   :  { %2554 = vmatmul.bf16.vlgmr.msra.gmra.mxu0 %v2353_v48  ;;  %2567 = vmatmul.bf16.vlgmr.msra.gmra.mxu1 %v2353_v48 }
 0x566   :  { %2580 = vmatmul.bf16.vlgmr.msra.gmra.mxu2 %v2353_v48  ;;  %2593 = vmatmul.bf16.vlgmr.msra.gmra.mxu3 %v2353_v48 }
 0x5e2   :  { %v2555_v49 = vpop.f32.mrf.mxu0  ;;  %v2568_v50 = vpop.f32.mrf.mxu1 }
 0x5e3   :  { %v2602_v51 = vrot.slane %v2568_v50, 7 }
 0x5e5   :  { %v2605_v57 = vsel %vm551_vm0, %v2555_v49, %v2602_v51 }
 0x5e9   :  { %v2581_v52 = vpop.f32.mrf.mxu2  ;;  %v2594_v53 = vpop.f32.mrf.mxu3 }
 0x5ea   :  { %v2603_v54 = vrot.slane %v2581_v52, 6  ;;  %v2604_v55 = vrot.slane %v2594_v53, 5  ;;  %v2557_v37 = vpop.f32.mrf.mxu0  ;;  %v2570_v56 = vpop.f32.mrf.mxu1 }
 0x5ec   :  { %v2606_v58 = vsel %vm553_vm1, %v2603_v54, %v2604_v55 }
 0x5ed   :  { %v2607_v61 = vsel %vm555_vm2, %v2605_v57, %v2606_v58 }
 0x5ee   :  { %v2609_v62 = vadd.f32 %v2607_v61, %v2352_v60 }
 0x5f0   :  { %v3743_v63 = vmul.f32 -1.442695, %v2609_v62  ;;  %v2630_v7 = vrot.slane %v2609_v62, 2 }
 0x5f1   :  { %v2583_v0 = vpop.f32.mrf.mxu2  ;;  %v2596_v1 = vpop.f32.mrf.mxu3 }
 0x5f2   :  { %4070 = vpow2.f32 %v3743_v63 }
 0x5f8   :  { %v4071_v2 = vpop.eup %4070 }
 0x5f9   :  { %v2613_v3 = vadd.f32 1.0, %v4071_v2 }
 0x5fb   :  { %4072 = vrcp.f32 %v2613_v3  ;;  %v2625_v9 = vand.u32 2147483648, %v2613_v3  ;;  %v2623_v11 = vand.u32 2147483647, %v2613_v3  ;;  %vm2619_vm1 = vweird.f32 %v2613_v3 }
 0x5fc   :  { %4074 = vtanh.f32 %v2630_v7 }
 0x5fd   :  { %v2626_v59 = vor.u32 1.1754944e-38, %v2625_v9  ;;  %vm2624_vm5 = vcmp.eq.f32.partialorder %v2623_v11, 8.507059e+37 }
 0x601   :  { %v4073_v5 = vpop.eup %4072 }
 0x602   :  { %v2615_v6 = vmul.f32 %v4073_v5, %v2613_v3  ;;  %vm2620_vm0 = vweird.f32 %v4073_v5  ;;  %v4075_v17 = vpop.eup %4074 }
 0x603   :  { %vm2621_vm2 = vmor %vm2619_vm1, %vm2620_vm0 }
 0x604   :  { %v2616_v8 = vsub.f32 1.0, %v2615_v6 }
 0x606   :  { %v2617_v10 = vmul.f32 %v4073_v5, %v2616_v8 }
 0x608   :  { %v2618_v12 = vadd.f32 %v4073_v5, %v2617_v10 }
 0x60a   :  { %v2622_v14 = vsel %vm2621_vm2, %v4073_v5, %v2618_v12 }
 0x60b   :  { %v2627_v15 = vsel %vm2624_vm5, %v2626_v59, %v2622_v14 }
 0x60c   :  { %v2634_v16 = vrot.slane %v2627_v15, 1  ;;  %v2637_v19 = vmul.f32 %v4075_v17, %v2627_v15  ;;  %v2640_v4 = vrot.slane %v2627_v15, 3 }
 0x60e   :  { %v2636_v18 = vmul.f32 %v2634_v16, %v2345_v45 }
 0x610   :  { %v2638_v20 = vadd.f32 %v2637_v19, %v2636_v18 }
 0x612   :  { %4076 = vtanh.f32 %v2638_v20  ;;  %2645 = vst [vmem:[#allocation17] sm:$0x1] %v2638_v20 }
 0x618   :  { %v4077_v22 = vpop.eup %4076 }
 0x619   :  { %v2642_v23 = vmul.f32 %v4077_v22, %v2640_v4 }
 0x61b   :  { %2643 = vst [vmem:[#allocation14 + $0x7] sm:$0x1] %v2642_v23 }
 0x61c   :  { %2644 = vst [vmem:[#allocation15] sm:$0x1] %v2642_v23  ;;  %2656 = dma.vmem_to_hbm [thread:$0]  %s2652_s30, 128, %s2654_s1, [#allocation6]  }
 0x61d   :  { %2667 = dma.vmem_to_hbm [thread:$0]  %s2663_s13, 16, %s2665_s4, [#allocation16]  }
 0x61e   :  { %2678 = dma.vmem_to_hbm [thread:$0]  %s2674_s16, 16, %s2676_s19, [#allocation16]  }
 0x61f   :  { %4266 = dma.done.wait [#allocation6], 128  }
 0x620   :  { %4267 = vsyncadd [#allocation6], 4294967168 }
 0x621   :  { %4268 = dma.done.wait [#allocation16], 32  }
 0x622   :  { %4269 = vsyncadd [#allocation16], 4294967264 }
 0x623   :  { %2691 = vsyncpa [#allocation5], 1 }
 0x624   :  { %2692 = vsyncpa [#allocation10], 1 }
 0x625   :  { %2693 = vsyncpa [#allocation13], 1 }
 0x626   :  { %2694 = vsyncpa [#allocation6], 1 }
 0x627   :  { %2695 = vsyncpa [#allocation16], 1 }
 0x628   :  { %2696 = vsyncpa [#allocation7], 1 }

</bundles_post_ra>
